<compile_context>
chip_gen: v7x
topology: tpu7x:2x2x1
jax: 0.10.0
libtpu: 0.0.40
codegen_flags: <defaults>
</compile_context>

<pallas_src>
import functools

import jax
import jax.numpy as jnp
import numpy as np
from jax.experimental import pallas as pl
from jax.experimental.pallas import tpu as pltpu

PredStep = 20


# ----------------------------- fused Pallas kernel ---------------------------

def fused_lstm_kernel(x_ref, *refs, T, Bp, H, P, L):
    """Fused multi-layer LSTM (wavefront) + FC + tanh.

    x_ref:    (T*Bp, I)   time-major, batch padded to Bp (row = t*Bp + b)
    per layer l: wih_ref (in_l, 4H), whh_ref (H, 4H), b_ref (1, 4H)
    wfc_ref:  (H, Cp), bfc_ref: (1, Cp)   (Cp = num_classes padded to 128)
    out_ref:  (P*Bp, Cp)  tanh(fc) of the last P timesteps of the last layer
    hid_ref:  (Bp, H)     final hidden state of the last layer
    gx0_sc:   (T*Bp, 4H)  scratch: precomputed layer-0 input projections
    tail_sc:  (P*Bp, H)   scratch: last-layer hidden states for t >= T-P
    """
    layer_refs = [tuple(refs[3 * l: 3 * l + 3]) for l in range(L)]
    wfc_ref, bfc_ref = refs[3 * L], refs[3 * L + 1]
    out_ref, hid_ref = refs[3 * L + 2], refs[3 * L + 3]
    gx0_sc, tail_sc = refs[3 * L + 4], refs[3 * L + 5]

    # Hoist all weight / bias loads out of the recurrence.
    wih = [layer_refs[l][0][...] for l in range(L)]
    whh = [layer_refs[l][1][...] for l in range(L)]
    bias = [layer_refs[l][2][...] for l in range(L)]

    # Layer-0 input projection for ALL timesteps at once (off the serial chain).
    gx0_sc[...] = (jnp.dot(x_ref[...], wih[0],
                           preferred_element_type=jnp.float32) + bias[0])

    zeros = jnp.zeros((Bp, H), jnp.float32)
    h = [zeros] * L
    c = [zeros] * L

    def lstm_cell(gates, c_prev):
        # gates is exactly one (8, 128) f32 vreg: do the nonlinearities on the
        # full vreg (1 sigmoid pass + 1 tanh pass) and slice i/f/g/o out.
        # sigmoid(x) == 0.5 * tanh(0.5 * x) + 0.5  (no divide on the EUP path)
        sg = 0.5 * jnp.tanh(0.5 * gates) + 0.5
        tg = jnp.tanh(gates)
        i_g = sg[:, 0 * H:1 * H]
        f_g = sg[:, 1 * H:2 * H]
        g_g = tg[:, 2 * H:3 * H]
        o_g = sg[:, 3 * H:4 * H]
        c_new = f_g * c_prev + i_g * g_g
        h_new = o_g * jnp.tanh(c_new)
        return h_new, c_new

    # Wavefront over (timestep, layer).  Statically unrolled (T, L small) so
    # every scratch slice is static and sublane-aligned.
    # TODO(synk): switch to lax.fori_loop(unroll=2-4) with pl.multiple_of'd
    # pl.ds indices if T or L ever grows large.
    for s in range(T + L - 1):
        h_in = list(h)  # snapshot of the previous wavefront step's outputs
        for l in range(L):
            t = s - l
            if not (0 <= t < T):
                continue
            if l == 0:
                gates = (gx0_sc[t * Bp:(t + 1) * Bp, :]
                         + jnp.dot(h_in[0], whh[0],
                                   preferred_element_type=jnp.float32))
            else:
                gates = (jnp.dot(h_in[l - 1], wih[l],
                                 preferred_element_type=jnp.float32)
                         + jnp.dot(h_in[l], whh[l],
                                   preferred_element_type=jnp.float32)
                         + bias[l])
            h[l], c[l] = lstm_cell(gates, c[l])
            if l == L - 1 and t >= T - P:
                r = (t - (T - P)) * Bp
                tail_sc[r:r + Bp, :] = h[l]

    hid_ref[...] = h[L - 1].astype(hid_ref.dtype)

    # FC + tanh on the last P timesteps: one matmul into a lane-dense slab,
    # one unmasked writeback.
    y = (jnp.dot(tail_sc[...], wfc_ref[...],
                 preferred_element_type=jnp.float32) + bfc_ref[...])
    out_ref[...] = jnp.tanh(y).astype(out_ref.dtype)


# ------------------------------ wrappers ------------------------------------

def fused_forward_call(x2d, layer_params, w_fc_t, b_fc, *, T, Bp, H, P, Cp, L):
    """One pallas_call for the whole forward pass."""
    args = [x2d]
    in_specs = [pl.BlockSpec(x2d.shape, lambda i: (0, 0))]
    for lyr in layer_params:
        for name in ("w_ih_t", "w_hh_t", "b"):
            arr = lyr[name]
            args.append(arr)
            in_specs.append(pl.BlockSpec(arr.shape, lambda i: (0, 0)))
    for arr in (w_fc_t, b_fc):
        args.append(arr)
        in_specs.append(pl.BlockSpec(arr.shape, lambda i: (0, 0)))

    out_shape = (jax.ShapeDtypeStruct((P * Bp, Cp), jnp.float32),
                 jax.ShapeDtypeStruct((Bp, H), jnp.float32))
    out_specs = [pl.BlockSpec((P * Bp, Cp), lambda i: (0, 0)),
                 pl.BlockSpec((Bp, H), lambda i: (0, 0))]

    kernel = functools.partial(fused_lstm_kernel, T=T, Bp=Bp, H=H, P=P, L=L)
    return pl.pallas_call(
        kernel,
        out_shape=out_shape,
        grid_spec=pltpu.PrefetchScalarGridSpec(
            num_scalar_prefetch=0,
            grid=(1,),
            in_specs=in_specs,
            out_specs=out_specs,
            scratch_shapes=[pltpu.VMEM((T * Bp, 4 * H), jnp.float32),
                            pltpu.VMEM((P * Bp, H), jnp.float32)],
        ),
        compiler_params=pltpu.CompilerParams(
            dimension_semantics=("arbitrary",)),
    )(*args)


@jax.jit
def task_lstm_forward(x, params):
    """Pallas implementation of task_LSTM.forward.

    x: (B, T, input_size) batch_first, float32.
    Returns (out (B, PredStep, num_classes), hidden_info (B, hidden_size)).
    """
    B, T, I = x.shape
    H = params["lstm"][0]["w_hh_t"].shape[0]
    C = params["fc"]["w_t"].shape[1]
    L = len(params["lstm"])
    P = PredStep
    Bp = ((B + 7) // 8) * 8          # pad batch to a sublane multiple
    Cp = ((C + 127) // 128) * 128    # pad classes to a lane multiple

    # time-major, batch-padded, flattened to 2D (row = t*Bp + b)
    x_tm = jnp.transpose(x, (1, 0, 2))                                # (T, B, I)
    x_pad = jnp.zeros((T, Bp, I), jnp.float32).at[:, :B, :].set(x_tm)
    x2d = x_pad.reshape(T * Bp, I)

    # lane-pad the FC weights so the kernel writes a lane-dense output slab
    w_fc_p = jnp.zeros((H, Cp), jnp.float32).at[:, :C].set(params["fc"]["w_t"])
    b_fc_p = jnp.zeros((1, Cp), jnp.float32).at[:, :C].set(params["fc"]["b"])

    out2d, hid = fused_forward_call(
        x2d, params["lstm"], w_fc_p, b_fc_p,
        T=T, Bp=Bp, H=H, P=P, Cp=Cp, L=L)

    out = out2d.reshape(P, Bp, Cp)[:, :B, :C].transpose(1, 0, 2)      # (B, P, C)
    hidden_info = hid[:B]                                             # (B, H)
    return out, hidden_info


# --------------------------- parameter creation ------------------------------

def init_params(key, input_size, hidden_size, num_layers, num_classes):
    """Deterministic init mimicking PyTorch's U(-1/sqrt(H), 1/sqrt(H))."""
    params = {"lstm": [], "fc": {}}
    k = 1.0 / np.sqrt(hidden_size)
    for layer in range(num_layers):
        in_sz = input_size if layer == 0 else hidden_size
        key, k1, k2, k3, k4 = jax.random.split(key, 5)
        w_ih = jax.random.uniform(k1, (4 * hidden_size, in_sz), jnp.float32, -k, k)
        w_hh = jax.random.uniform(k2, (4 * hidden_size, hidden_size), jnp.float32, -k, k)
        b_ih = jax.random.uniform(k3, (4 * hidden_size,), jnp.float32, -k, k)
        b_hh = jax.random.uniform(k4, (4 * hidden_size,), jnp.float32, -k, k)
        params["lstm"].append({
            "w_ih_t": w_ih.T,                        # (in, 4H)
            "w_hh_t": w_hh.T,                        # (H, 4H)
            "b": (b_ih + b_hh)[None, :],             # (1, 4H)
        })
    key, k1, k2 = jax.random.split(key, 3)
    w_fc = jax.random.uniform(k1, (num_classes, hidden_size), jnp.float32, -k, k)
    b_fc = jax.random.uniform(k2, (num_classes,), jnp.float32, -k, k)
    params["fc"] = {"w_t": w_fc.T, "b": b_fc[None, :]}
    return params


# ------------------------------ pure-JAX reference ---------------------------

def reference_forward(x, params):
    def one_layer(x_seq, layer):
        H = layer["w_hh_t"].shape[0]

        def step(carry, x_t):
            h, c = carry
            g = x_t @ layer["w_ih_t"] + h @ layer["w_hh_t"] + layer["b"]
            i = jax.nn.sigmoid(g[:, :H])
            f = jax.nn.sigmoid(g[:, H:2 * H])
            gg = jnp.tanh(g[:, 2 * H:3 * H])
            o = jax.nn.sigmoid(g[:, 3 * H:])
            c = f * c + i * gg
            h = o * jnp.tanh(c)
            return (h, c), h

        B = x_seq.shape[1]
        init = (jnp.zeros((B, H), jnp.float32), jnp.zeros((B, H), jnp.float32))
        (_, _), hs = jax.lax.scan(step, init, x_seq)
        return hs

    x_tm = jnp.transpose(x, (1, 0, 2))
    for layer in params["lstm"]:
        x_tm = one_layer(x_tm, layer)
    out_bf = jnp.transpose(x_tm, (1, 0, 2))
    hidden_info = out_bf[:, -1, :]
    out = jnp.tanh(out_bf[:, -PredStep:, :] @ params["fc"]["w_t"] + params["fc"]["b"])
    return out, hidden_info


# ---------------------------------- main -------------------------------------

if __name__ == "__main__":
    input_size, hidden_size, num_layers, num_classes = 8, 32, 2, 4
    batch, seq_len = 2, 24   # seq_len >= PredStep

    key = jax.random.PRNGKey(0)
    key, kx, kp = jax.random.split(key, 3)
    x = jax.random.normal(kx, (batch, seq_len, input_size), jnp.float32)
    params = init_params(kp, input_size, hidden_size, num_layers, num_classes)

    out, hidden_info = task_lstm_forward(x, params)
    out, hidden_info = jax.block_until_ready((out, hidden_info))

    ref_out, ref_hidden = reference_forward(x, params)
    # Tolerance slightly relaxed vs 1e-5: the kernel evaluates sigmoid via the
    # mathematically exact (but differently rounded) 0.5*tanh(0.5*x)+0.5 form,
    # accumulated over a 24-step recurrence.
    np.testing.assert_allclose(np.asarray(out), np.asarray(ref_out),
                               rtol=1e-4, atol=1e-4)
    np.testing.assert_allclose(np.asarray(hidden_info), np.asarray(ref_hidden),
                               rtol=1e-4, atol=1e-4)

    assert out.shape == (batch, PredStep, num_classes)
    assert hidden_info.shape == (batch, hidden_size)
    print("KERNEL_OK")
</pallas_src>

<mosaic_0001>
module attributes {stable_mosaic.version = 11 : i64} {
  func.func @fused_lstm_kernel(%arg0: i32, %arg1: memref<192x8xf32, #tpu.memory_space<vmem>>, %arg2: memref<8x128xf32, #tpu.memory_space<vmem>>, %arg3: memref<32x128xf32, #tpu.memory_space<vmem>>, %arg4: memref<1x128xf32, #tpu.memory_space<vmem>>, %arg5: memref<32x128xf32, #tpu.memory_space<vmem>>, %arg6: memref<32x128xf32, #tpu.memory_space<vmem>>, %arg7: memref<1x128xf32, #tpu.memory_space<vmem>>, %arg8: memref<32x128xf32, #tpu.memory_space<vmem>>, %arg9: memref<1x128xf32, #tpu.memory_space<vmem>>, %arg10: memref<160x128xf32, #tpu.memory_space<vmem>>, %arg11: memref<8x32xf32, #tpu.memory_space<vmem>>, %arg12: memref<192x128xf32, #tpu.memory_space<vmem>>, %arg13: memref<160x32xf32, #tpu.memory_space<vmem>>) attributes {dimension_semantics = [#tpu.dimension_semantics<arbitrary>], iteration_bounds = array<i64: 1>, scalar_prefetch = 0 : i64, scratch_operands = 2 : i64, tpu.core_type = #tpu.core_type<tc>, window_params = [{pipeline_mode = #tpu.pipeline_mode<synchronous>, transform_indices = @transform_0, window_bounds = array<i64: 192, 8>}, {pipeline_mode = #tpu.pipeline_mode<synchronous>, transform_indices = @transform_1, window_bounds = array<i64: 8, 128>}, {pipeline_mode = #tpu.pipeline_mode<synchronous>, transform_indices = @transform_2, window_bounds = array<i64: 32, 128>}, {pipeline_mode = #tpu.pipeline_mode<synchronous>, transform_indices = @transform_3, window_bounds = array<i64: 1, 128>}, {pipeline_mode = #tpu.pipeline_mode<synchronous>, transform_indices = @transform_4, window_bounds = array<i64: 32, 128>}, {pipeline_mode = #tpu.pipeline_mode<synchronous>, transform_indices = @transform_5, window_bounds = array<i64: 32, 128>}, {pipeline_mode = #tpu.pipeline_mode<synchronous>, transform_indices = @transform_6, window_bounds = array<i64: 1, 128>}, {pipeline_mode = #tpu.pipeline_mode<synchronous>, transform_indices = @transform_7, window_bounds = array<i64: 32, 128>}, {pipeline_mode = #tpu.pipeline_mode<synchronous>, transform_indices = @transform_8, window_bounds = array<i64: 1, 128>}, {pipeline_mode = #tpu.pipeline_mode<synchronous>, transform_indices = @transform_9, window_bounds = array<i64: 160, 128>}, {pipeline_mode = #tpu.pipeline_mode<synchronous>, transform_indices = @transform_10, window_bounds = array<i64: 8, 32>}]} {
    %c0 = arith.constant 0 : index
    %c0_0 = arith.constant 0 : index
    %0 = vector.load %arg2[%c0, %c0_0] : memref<8x128xf32, #tpu.memory_space<vmem>>, vector<8x128xf32>
    %c0_1 = arith.constant 0 : index
    %c0_2 = arith.constant 0 : index
    %1 = vector.load %arg5[%c0_1, %c0_2] : memref<32x128xf32, #tpu.memory_space<vmem>>, vector<32x128xf32>
    %c0_3 = arith.constant 0 : index
    %c0_4 = arith.constant 0 : index
    %2 = vector.load %arg3[%c0_3, %c0_4] : memref<32x128xf32, #tpu.memory_space<vmem>>, vector<32x128xf32>
    %c0_5 = arith.constant 0 : index
    %c0_6 = arith.constant 0 : index
    %3 = vector.load %arg6[%c0_5, %c0_6] : memref<32x128xf32, #tpu.memory_space<vmem>>, vector<32x128xf32>
    %c0_7 = arith.constant 0 : index
    %c0_8 = arith.constant 0 : index
    %4 = vector.load %arg4[%c0_7, %c0_8] : memref<1x128xf32, #tpu.memory_space<vmem>>, vector<1x128xf32>
    %c0_9 = arith.constant 0 : index
    %c0_10 = arith.constant 0 : index
    %5 = vector.load %arg7[%c0_9, %c0_10] : memref<1x128xf32, #tpu.memory_space<vmem>>, vector<1x128xf32>
    %c0_11 = arith.constant 0 : index
    %c0_12 = arith.constant 0 : index
    %6 = vector.load %arg1[%c0_11, %c0_12] : memref<192x8xf32, #tpu.memory_space<vmem>>, vector<192x8xf32>
    %cst = arith.constant dense<0.000000e+00> : vector<192x128xf32>
    %7 = tpu.matmul %6, %0, %cst {dimension_numbers = #tpu.dot_dimension_numbers<[1], [0], [0], [1], [0, 0, 1, 1], [], []>} : vector<192x8xf32>, vector<8x128xf32>, vector<192x128xf32> -> vector<192x128xf32>
    %8 = vector.broadcast %4 : vector<1x128xf32> to vector<192x128xf32>
    %9 = arith.addf %7, %8 : vector<192x128xf32>
    %c0_13 = arith.constant 0 : index
    %c0_14 = arith.constant 0 : index
    %10 = vector.load %arg12[%c0_13, %c0_14] : memref<192x128xf32, #tpu.memory_space<vmem>>, vector<192x128xf32>
    tpu.vector_store %arg12[%c0_13, %c0_14], %9 {strides = array<i32>} : memref<192x128xf32, #tpu.memory_space<vmem>>, vector<192x128xf32>,
    %cst_15 = arith.constant 0.000000e+00 : f32
    %11 = vector.broadcast %cst_15 : f32 to vector<8x32xf32>
    %c0_16 = arith.constant 0 : index
    %c0_17 = arith.constant 0 : index
    %12 = vector.load %arg12[%c0_16, %c0_17] : memref<192x128xf32, #tpu.memory_space<vmem>>, vector<8x128xf32>
    %cst_18 = arith.constant dense<0.000000e+00> : vector<8x128xf32>
    %13 = tpu.matmul %11, %2, %cst_18 {dimension_numbers = #tpu.dot_dimension_numbers<[1], [0], [0], [1], [0, 0, 1, 1], [], []>} : vector<8x32xf32>, vector<32x128xf32>, vector<8x128xf32> -> vector<8x128xf32>
    %14 = arith.addf %12, %13 : vector<8x128xf32>
    %cst_19 = arith.constant 5.000000e-01 : f32
    %15 = vector.broadcast %cst_19 : f32 to vector<8x128xf32>
    %16 = arith.mulf %15, %14 : vector<8x128xf32>
    %17 = math.tanh %16 : vector<8x128xf32>
    %cst_20 = arith.constant 5.000000e-01 : f32
    %18 = vector.broadcast %cst_20 : f32 to vector<8x128xf32>
    %19 = arith.mulf %18, %17 : vector<8x128xf32>
    %cst_21 = arith.constant 5.000000e-01 : f32
    %20 = vector.broadcast %cst_21 : f32 to vector<8x128xf32>
    %21 = arith.addf %19, %20 : vector<8x128xf32>
    %22 = math.tanh %14 : vector<8x128xf32>
    %23 = vector.extract_strided_slice %21 {offsets = [0, 0], sizes = [8, 32], strides = [1, 1]} : vector<8x128xf32> to vector<8x32xf32>
    %24 = vector.extract_strided_slice %21 {offsets = [0, 32], sizes = [8, 32], strides = [1, 1]} : vector<8x128xf32> to vector<8x32xf32>
    %25 = vector.extract_strided_slice %22 {offsets = [0, 64], sizes = [8, 32], strides = [1, 1]} : vector<8x128xf32> to vector<8x32xf32>
    %26 = vector.extract_strided_slice %21 {offsets = [0, 96], sizes = [8, 32], strides = [1, 1]} : vector<8x128xf32> to vector<8x32xf32>
    %27 = arith.mulf %24, %11 : vector<8x32xf32>
    %28 = arith.mulf %23, %25 : vector<8x32xf32>
    %29 = arith.addf %27, %28 : vector<8x32xf32>
    %30 = math.tanh %29 : vector<8x32xf32>
    %31 = arith.mulf %26, %30 : vector<8x32xf32>
    %c8 = arith.constant 8 : index
    %c0_22 = arith.constant 0 : index
    %32 = vector.load %arg12[%c8, %c0_22] : memref<192x128xf32, #tpu.memory_space<vmem>>, vector<8x128xf32>
    %cst_23 = arith.constant dense<0.000000e+00> : vector<8x128xf32>
    %33 = tpu.matmul %31, %2, %cst_23 {dimension_numbers = #tpu.dot_dimension_numbers<[1], [0], [0], [1], [0, 0, 1, 1], [], []>} : vector<8x32xf32>, vector<32x128xf32>, vector<8x128xf32> -> vector<8x128xf32>
    %34 = arith.addf %32, %33 : vector<8x128xf32>
    %cst_24 = arith.constant 5.000000e-01 : f32
    %35 = vector.broadcast %cst_24 : f32 to vector<8x128xf32>
    %36 = arith.mulf %35, %34 : vector<8x128xf32>
    %37 = math.tanh %36 : vector<8x128xf32>
    %cst_25 = arith.constant 5.000000e-01 : f32
    %38 = vector.broadcast %cst_25 : f32 to vector<8x128xf32>
    %39 = arith.mulf %38, %37 : vector<8x128xf32>
    %cst_26 = arith.constant 5.000000e-01 : f32
    %40 = vector.broadcast %cst_26 : f32 to vector<8x128xf32>
    %41 = arith.addf %39, %40 : vector<8x128xf32>
    %42 = math.tanh %34 : vector<8x128xf32>
    %43 = vector.extract_strided_slice %41 {offsets = [0, 0], sizes = [8, 32], strides = [1, 1]} : vector<8x128xf32> to vector<8x32xf32>
    %44 = vector.extract_strided_slice %41 {offsets = [0, 32], sizes = [8, 32], strides = [1, 1]} : vector<8x128xf32> to vector<8x32xf32>
    %45 = vector.extract_strided_slice %42 {offsets = [0, 64], sizes = [8, 32], strides = [1, 1]} : vector<8x128xf32> to vector<8x32xf32>
    %46 = vector.extract_strided_slice %41 {offsets = [0, 96], sizes = [8, 32], strides = [1, 1]} : vector<8x128xf32> to vector<8x32xf32>
    %47 = arith.mulf %44, %29 : vector<8x32xf32>
    %48 = arith.mulf %43, %45 : vector<8x32xf32>
    %49 = arith.addf %47, %48 : vector<8x32xf32>
    %50 = math.tanh %49 : vector<8x32xf32>
    %51 = arith.mulf %46, %50 : vector<8x32xf32>
    %cst_27 = arith.constant dense<0.000000e+00> : vector<8x128xf32>
    %52 = tpu.matmul %31, %1, %cst_27 {dimension_numbers = #tpu.dot_dimension_numbers<[1], [0], [0], [1], [0, 0, 1, 1], [], []>} : vector<8x32xf32>, vector<32x128xf32>, vector<8x128xf32> -> vector<8x128xf32>
    %cst_28 = arith.constant dense<0.000000e+00> : vector<8x128xf32>
    %53 = tpu.matmul %11, %3, %cst_28 {dimension_numbers = #tpu.dot_dimension_numbers<[1], [0], [0], [1], [0, 0, 1, 1], [], []>} : vector<8x32xf32>, vector<32x128xf32>, vector<8x128xf32> -> vector<8x128xf32>
    %54 = arith.addf %52, %53 : vector<8x128xf32>
    %55 = vector.broadcast %5 : vector<1x128xf32> to vector<8x128xf32>
    %56 = arith.addf %54, %55 : vector<8x128xf32>
    %cst_29 = arith.constant 5.000000e-01 : f32
    %57 = vector.broadcast %cst_29 : f32 to vector<8x128xf32>
    %58 = arith.mulf %57, %56 : vector<8x128xf32>
    %59 = math.tanh %58 : vector<8x128xf32>
    %cst_30 = arith.constant 5.000000e-01 : f32
    %60 = vector.broadcast %cst_30 : f32 to vector<8x128xf32>
    %61 = arith.mulf %60, %59 : vector<8x128xf32>
    %cst_31 = arith.constant 5.000000e-01 : f32
    %62 = vector.broadcast %cst_31 : f32 to vector<8x128xf32>
    %63 = arith.addf %61, %62 : vector<8x128xf32>
    %64 = math.tanh %56 : vector<8x128xf32>
    %65 = vector.extract_strided_slice %63 {offsets = [0, 0], sizes = [8, 32], strides = [1, 1]} : vector<8x128xf32> to vector<8x32xf32>
    %66 = vector.extract_strided_slice %63 {offsets = [0, 32], sizes = [8, 32], strides = [1, 1]} : vector<8x128xf32> to vector<8x32xf32>
    %67 = vector.extract_strided_slice %64 {offsets = [0, 64], sizes = [8, 32], strides = [1, 1]} : vector<8x128xf32> to vector<8x32xf32>
    %68 = vector.extract_strided_slice %63 {offsets = [0, 96], sizes = [8, 32], strides = [1, 1]} : vector<8x128xf32> to vector<8x32xf32>
    %69 = arith.mulf %66, %11 : vector<8x32xf32>
    %70 = arith.mulf %65, %67 : vector<8x32xf32>
    %71 = arith.addf %69, %70 : vector<8x32xf32>
    %72 = math.tanh %71 : vector<8x32xf32>
    %73 = arith.mulf %68, %72 : vector<8x32xf32>
    %c16 = arith.constant 16 : index
    %c0_32 = arith.constant 0 : index
    %74 = vector.load %arg12[%c16, %c0_32] : memref<192x128xf32, #tpu.memory_space<vmem>>, vector<8x128xf32>
    %cst_33 = arith.constant dense<0.000000e+00> : vector<8x128xf32>
    %75 = tpu.matmul %51, %2, %cst_33 {dimension_numbers = #tpu.dot_dimension_numbers<[1], [0], [0], [1], [0, 0, 1, 1], [], []>} : vector<8x32xf32>, vector<32x128xf32>, vector<8x128xf32> -> vector<8x128xf32>
    %76 = arith.addf %74, %75 : vector<8x128xf32>
    %cst_34 = arith.constant 5.000000e-01 : f32
    %77 = vector.broadcast %cst_34 : f32 to vector<8x128xf32>
    %78 = arith.mulf %77, %76 : vector<8x128xf32>
    %79 = math.tanh %78 : vector<8x128xf32>
    %cst_35 = arith.constant 5.000000e-01 : f32
    %80 = vector.broadcast %cst_35 : f32 to vector<8x128xf32>
    %81 = arith.mulf %80, %79 : vector<8x128xf32>
    %cst_36 = arith.constant 5.000000e-01 : f32
    %82 = vector.broadcast %cst_36 : f32 to vector<8x128xf32>
    %83 = arith.addf %81, %82 : vector<8x128xf32>
    %84 = math.tanh %76 : vector<8x128xf32>
    %85 = vector.extract_strided_slice %83 {offsets = [0, 0], sizes = [8, 32], strides = [1, 1]} : vector<8x128xf32> to vector<8x32xf32>
    %86 = vector.extract_strided_slice %83 {offsets = [0, 32], sizes = [8, 32], strides = [1, 1]} : vector<8x128xf32> to vector<8x32xf32>
    %87 = vector.extract_strided_slice %84 {offsets = [0, 64], sizes = [8, 32], strides = [1, 1]} : vector<8x128xf32> to vector<8x32xf32>
    %88 = vector.extract_strided_slice %83 {offsets = [0, 96], sizes = [8, 32], strides = [1, 1]} : vector<8x128xf32> to vector<8x32xf32>
    %89 = arith.mulf %86, %49 : vector<8x32xf32>
    %90 = arith.mulf %85, %87 : vector<8x32xf32>
    %91 = arith.addf %89, %90 : vector<8x32xf32>
    %92 = math.tanh %91 : vector<8x32xf32>
    %93 = arith.mulf %88, %92 : vector<8x32xf32>
    %cst_37 = arith.constant dense<0.000000e+00> : vector<8x128xf32>
    %94 = tpu.matmul %51, %1, %cst_37 {dimension_numbers = #tpu.dot_dimension_numbers<[1], [0], [0], [1], [0, 0, 1, 1], [], []>} : vector<8x32xf32>, vector<32x128xf32>, vector<8x128xf32> -> vector<8x128xf32>
    %cst_38 = arith.constant dense<0.000000e+00> : vector<8x128xf32>
    %95 = tpu.matmul %73, %3, %cst_38 {dimension_numbers = #tpu.dot_dimension_numbers<[1], [0], [0], [1], [0, 0, 1, 1], [], []>} : vector<8x32xf32>, vector<32x128xf32>, vector<8x128xf32> -> vector<8x128xf32>
    %96 = arith.addf %94, %95 : vector<8x128xf32>
    %97 = vector.broadcast %5 : vector<1x128xf32> to vector<8x128xf32>
    %98 = arith.addf %96, %97 : vector<8x128xf32>
    %cst_39 = arith.constant 5.000000e-01 : f32
    %99 = vector.broadcast %cst_39 : f32 to vector<8x128xf32>
    %100 = arith.mulf %99, %98 : vector<8x128xf32>
    %101 = math.tanh %100 : vector<8x128xf32>
    %cst_40 = arith.constant 5.000000e-01 : f32
    %102 = vector.broadcast %cst_40 : f32 to vector<8x128xf32>
    %103 = arith.mulf %102, %101 : vector<8x128xf32>
    %cst_41 = arith.constant 5.000000e-01 : f32
    %104 = vector.broadcast %cst_41 : f32 to vector<8x128xf32>
    %105 = arith.addf %103, %104 : vector<8x128xf32>
    %106 = math.tanh %98 : vector<8x128xf32>
    %107 = vector.extract_strided_slice %105 {offsets = [0, 0], sizes = [8, 32], strides = [1, 1]} : vector<8x128xf32> to vector<8x32xf32>
    %108 = vector.extract_strided_slice %105 {offsets = [0, 32], sizes = [8, 32], strides = [1, 1]} : vector<8x128xf32> to vector<8x32xf32>
    %109 = vector.extract_strided_slice %106 {offsets = [0, 64], sizes = [8, 32], strides = [1, 1]} : vector<8x128xf32> to vector<8x32xf32>
    %110 = vector.extract_strided_slice %105 {offsets = [0, 96], sizes = [8, 32], strides = [1, 1]} : vector<8x128xf32> to vector<8x32xf32>
    %111 = arith.mulf %108, %71 : vector<8x32xf32>
    %112 = arith.mulf %107, %109 : vector<8x32xf32>
    %113 = arith.addf %111, %112 : vector<8x32xf32>
    %114 = math.tanh %113 : vector<8x32xf32>
    %115 = arith.mulf %110, %114 : vector<8x32xf32>
    %c24 = arith.constant 24 : index
    %c0_42 = arith.constant 0 : index
    %116 = vector.load %arg12[%c24, %c0_42] : memref<192x128xf32, #tpu.memory_space<vmem>>, vector<8x128xf32>
    %cst_43 = arith.constant dense<0.000000e+00> : vector<8x128xf32>
    %117 = tpu.matmul %93, %2, %cst_43 {dimension_numbers = #tpu.dot_dimension_numbers<[1], [0], [0], [1], [0, 0, 1, 1], [], []>} : vector<8x32xf32>, vector<32x128xf32>, vector<8x128xf32> -> vector<8x128xf32>
    %118 = arith.addf %116, %117 : vector<8x128xf32>
    %cst_44 = arith.constant 5.000000e-01 : f32
    %119 = vector.broadcast %cst_44 : f32 to vector<8x128xf32>
    %120 = arith.mulf %119, %118 : vector<8x128xf32>
    %121 = math.tanh %120 : vector<8x128xf32>
    %cst_45 = arith.constant 5.000000e-01 : f32
    %122 = vector.broadcast %cst_45 : f32 to vector<8x128xf32>
    %123 = arith.mulf %122, %121 : vector<8x128xf32>
    %cst_46 = arith.constant 5.000000e-01 : f32
    %124 = vector.broadcast %cst_46 : f32 to vector<8x128xf32>
    %125 = arith.addf %123, %124 : vector<8x128xf32>
    %126 = math.tanh %118 : vector<8x128xf32>
    %127 = vector.extract_strided_slice %125 {offsets = [0, 0], sizes = [8, 32], strides = [1, 1]} : vector<8x128xf32> to vector<8x32xf32>
    %128 = vector.extract_strided_slice %125 {offsets = [0, 32], sizes = [8, 32], strides = [1, 1]} : vector<8x128xf32> to vector<8x32xf32>
    %129 = vector.extract_strided_slice %126 {offsets = [0, 64], sizes = [8, 32], strides = [1, 1]} : vector<8x128xf32> to vector<8x32xf32>
    %130 = vector.extract_strided_slice %125 {offsets = [0, 96], sizes = [8, 32], strides = [1, 1]} : vector<8x128xf32> to vector<8x32xf32>
    %131 = arith.mulf %128, %91 : vector<8x32xf32>
    %132 = arith.mulf %127, %129 : vector<8x32xf32>
    %133 = arith.addf %131, %132 : vector<8x32xf32>
    %134 = math.tanh %133 : vector<8x32xf32>
    %135 = arith.mulf %130, %134 : vector<8x32xf32>
    %cst_47 = arith.constant dense<0.000000e+00> : vector<8x128xf32>
    %136 = tpu.matmul %93, %1, %cst_47 {dimension_numbers = #tpu.dot_dimension_numbers<[1], [0], [0], [1], [0, 0, 1, 1], [], []>} : vector<8x32xf32>, vector<32x128xf32>, vector<8x128xf32> -> vector<8x128xf32>
    %cst_48 = arith.constant dense<0.000000e+00> : vector<8x128xf32>
    %137 = tpu.matmul %115, %3, %cst_48 {dimension_numbers = #tpu.dot_dimension_numbers<[1], [0], [0], [1], [0, 0, 1, 1], [], []>} : vector<8x32xf32>, vector<32x128xf32>, vector<8x128xf32> -> vector<8x128xf32>
    %138 = arith.addf %136, %137 : vector<8x128xf32>
    %139 = vector.broadcast %5 : vector<1x128xf32> to vector<8x128xf32>
    %140 = arith.addf %138, %139 : vector<8x128xf32>
    %cst_49 = arith.constant 5.000000e-01 : f32
    %141 = vector.broadcast %cst_49 : f32 to vector<8x128xf32>
    %142 = arith.mulf %141, %140 : vector<8x128xf32>
    %143 = math.tanh %142 : vector<8x128xf32>
    %cst_50 = arith.constant 5.000000e-01 : f32
    %144 = vector.broadcast %cst_50 : f32 to vector<8x128xf32>
    %145 = arith.mulf %144, %143 : vector<8x128xf32>
    %cst_51 = arith.constant 5.000000e-01 : f32
    %146 = vector.broadcast %cst_51 : f32 to vector<8x128xf32>
    %147 = arith.addf %145, %146 : vector<8x128xf32>
    %148 = math.tanh %140 : vector<8x128xf32>
    %149 = vector.extract_strided_slice %147 {offsets = [0, 0], sizes = [8, 32], strides = [1, 1]} : vector<8x128xf32> to vector<8x32xf32>
    %150 = vector.extract_strided_slice %147 {offsets = [0, 32], sizes = [8, 32], strides = [1, 1]} : vector<8x128xf32> to vector<8x32xf32>
    %151 = vector.extract_strided_slice %148 {offsets = [0, 64], sizes = [8, 32], strides = [1, 1]} : vector<8x128xf32> to vector<8x32xf32>
    %152 = vector.extract_strided_slice %147 {offsets = [0, 96], sizes = [8, 32], strides = [1, 1]} : vector<8x128xf32> to vector<8x32xf32>
    %153 = arith.mulf %150, %113 : vector<8x32xf32>
    %154 = arith.mulf %149, %151 : vector<8x32xf32>
    %155 = arith.addf %153, %154 : vector<8x32xf32>
    %156 = math.tanh %155 : vector<8x32xf32>
    %157 = arith.mulf %152, %156 : vector<8x32xf32>
    %c32 = arith.constant 32 : index
    %c0_52 = arith.constant 0 : index
    %158 = vector.load %arg12[%c32, %c0_52] : memref<192x128xf32, #tpu.memory_space<vmem>>, vector<8x128xf32>
    %cst_53 = arith.constant dense<0.000000e+00> : vector<8x128xf32>
    %159 = tpu.matmul %135, %2, %cst_53 {dimension_numbers = #tpu.dot_dimension_numbers<[1], [0], [0], [1], [0, 0, 1, 1], [], []>} : vector<8x32xf32>, vector<32x128xf32>, vector<8x128xf32> -> vector<8x128xf32>
    %160 = arith.addf %158, %159 : vector<8x128xf32>
    %cst_54 = arith.constant 5.000000e-01 : f32
    %161 = vector.broadcast %cst_54 : f32 to vector<8x128xf32>
    %162 = arith.mulf %161, %160 : vector<8x128xf32>
    %163 = math.tanh %162 : vector<8x128xf32>
    %cst_55 = arith.constant 5.000000e-01 : f32
    %164 = vector.broadcast %cst_55 : f32 to vector<8x128xf32>
    %165 = arith.mulf %164, %163 : vector<8x128xf32>
    %cst_56 = arith.constant 5.000000e-01 : f32
    %166 = vector.broadcast %cst_56 : f32 to vector<8x128xf32>
    %167 = arith.addf %165, %166 : vector<8x128xf32>
    %168 = math.tanh %160 : vector<8x128xf32>
    %169 = vector.extract_strided_slice %167 {offsets = [0, 0], sizes = [8, 32], strides = [1, 1]} : vector<8x128xf32> to vector<8x32xf32>
    %170 = vector.extract_strided_slice %167 {offsets = [0, 32], sizes = [8, 32], strides = [1, 1]} : vector<8x128xf32> to vector<8x32xf32>
    %171 = vector.extract_strided_slice %168 {offsets = [0, 64], sizes = [8, 32], strides = [1, 1]} : vector<8x128xf32> to vector<8x32xf32>
    %172 = vector.extract_strided_slice %167 {offsets = [0, 96], sizes = [8, 32], strides = [1, 1]} : vector<8x128xf32> to vector<8x32xf32>
    %173 = arith.mulf %170, %133 : vector<8x32xf32>
    %174 = arith.mulf %169, %171 : vector<8x32xf32>
    %175 = arith.addf %173, %174 : vector<8x32xf32>
    %176 = math.tanh %175 : vector<8x32xf32>
    %177 = arith.mulf %172, %176 : vector<8x32xf32>
    %cst_57 = arith.constant dense<0.000000e+00> : vector<8x128xf32>
    %178 = tpu.matmul %135, %1, %cst_57 {dimension_numbers = #tpu.dot_dimension_numbers<[1], [0], [0], [1], [0, 0, 1, 1], [], []>} : vector<8x32xf32>, vector<32x128xf32>, vector<8x128xf32> -> vector<8x128xf32>
    %cst_58 = arith.constant dense<0.000000e+00> : vector<8x128xf32>
    %179 = tpu.matmul %157, %3, %cst_58 {dimension_numbers = #tpu.dot_dimension_numbers<[1], [0], [0], [1], [0, 0, 1, 1], [], []>} : vector<8x32xf32>, vector<32x128xf32>, vector<8x128xf32> -> vector<8x128xf32>
    %180 = arith.addf %178, %179 : vector<8x128xf32>
    %181 = vector.broadcast %5 : vector<1x128xf32> to vector<8x128xf32>
    %182 = arith.addf %180, %181 : vector<8x128xf32>
    %cst_59 = arith.constant 5.000000e-01 : f32
    %183 = vector.broadcast %cst_59 : f32 to vector<8x128xf32>
    %184 = arith.mulf %183, %182 : vector<8x128xf32>
    %185 = math.tanh %184 : vector<8x128xf32>
    %cst_60 = arith.constant 5.000000e-01 : f32
    %186 = vector.broadcast %cst_60 : f32 to vector<8x128xf32>
    %187 = arith.mulf %186, %185 : vector<8x128xf32>
    %cst_61 = arith.constant 5.000000e-01 : f32
    %188 = vector.broadcast %cst_61 : f32 to vector<8x128xf32>
    %189 = arith.addf %187, %188 : vector<8x128xf32>
    %190 = math.tanh %182 : vector<8x128xf32>
    %191 = vector.extract_strided_slice %189 {offsets = [0, 0], sizes = [8, 32], strides = [1, 1]} : vector<8x128xf32> to vector<8x32xf32>
    %192 = vector.extract_strided_slice %189 {offsets = [0, 32], sizes = [8, 32], strides = [1, 1]} : vector<8x128xf32> to vector<8x32xf32>
    %193 = vector.extract_strided_slice %190 {offsets = [0, 64], sizes = [8, 32], strides = [1, 1]} : vector<8x128xf32> to vector<8x32xf32>
    %194 = vector.extract_strided_slice %189 {offsets = [0, 96], sizes = [8, 32], strides = [1, 1]} : vector<8x128xf32> to vector<8x32xf32>
    %195 = arith.mulf %192, %155 : vector<8x32xf32>
    %196 = arith.mulf %191, %193 : vector<8x32xf32>
    %197 = arith.addf %195, %196 : vector<8x32xf32>
    %198 = math.tanh %197 : vector<8x32xf32>
    %199 = arith.mulf %194, %198 : vector<8x32xf32>
    %c40 = arith.constant 40 : index
    %c0_62 = arith.constant 0 : index
    %200 = vector.load %arg12[%c40, %c0_62] : memref<192x128xf32, #tpu.memory_space<vmem>>, vector<8x128xf32>
    %cst_63 = arith.constant dense<0.000000e+00> : vector<8x128xf32>
    %201 = tpu.matmul %177, %2, %cst_63 {dimension_numbers = #tpu.dot_dimension_numbers<[1], [0], [0], [1], [0, 0, 1, 1], [], []>} : vector<8x32xf32>, vector<32x128xf32>, vector<8x128xf32> -> vector<8x128xf32>
    %202 = arith.addf %200, %201 : vector<8x128xf32>
    %cst_64 = arith.constant 5.000000e-01 : f32
    %203 = vector.broadcast %cst_64 : f32 to vector<8x128xf32>
    %204 = arith.mulf %203, %202 : vector<8x128xf32>
    %205 = math.tanh %204 : vector<8x128xf32>
    %cst_65 = arith.constant 5.000000e-01 : f32
    %206 = vector.broadcast %cst_65 : f32 to vector<8x128xf32>
    %207 = arith.mulf %206, %205 : vector<8x128xf32>
    %cst_66 = arith.constant 5.000000e-01 : f32
    %208 = vector.broadcast %cst_66 : f32 to vector<8x128xf32>
    %209 = arith.addf %207, %208 : vector<8x128xf32>
    %210 = math.tanh %202 : vector<8x128xf32>
    %211 = vector.extract_strided_slice %209 {offsets = [0, 0], sizes = [8, 32], strides = [1, 1]} : vector<8x128xf32> to vector<8x32xf32>
    %212 = vector.extract_strided_slice %209 {offsets = [0, 32], sizes = [8, 32], strides = [1, 1]} : vector<8x128xf32> to vector<8x32xf32>
    %213 = vector.extract_strided_slice %210 {offsets = [0, 64], sizes = [8, 32], strides = [1, 1]} : vector<8x128xf32> to vector<8x32xf32>
    %214 = vector.extract_strided_slice %209 {offsets = [0, 96], sizes = [8, 32], strides = [1, 1]} : vector<8x128xf32> to vector<8x32xf32>
    %215 = arith.mulf %212, %175 : vector<8x32xf32>
    %216 = arith.mulf %211, %213 : vector<8x32xf32>
    %217 = arith.addf %215, %216 : vector<8x32xf32>
    %218 = math.tanh %217 : vector<8x32xf32>
    %219 = arith.mulf %214, %218 : vector<8x32xf32>
    %cst_67 = arith.constant dense<0.000000e+00> : vector<8x128xf32>
    %220 = tpu.matmul %177, %1, %cst_67 {dimension_numbers = #tpu.dot_dimension_numbers<[1], [0], [0], [1], [0, 0, 1, 1], [], []>} : vector<8x32xf32>, vector<32x128xf32>, vector<8x128xf32> -> vector<8x128xf32>
    %cst_68 = arith.constant dense<0.000000e+00> : vector<8x128xf32>
    %221 = tpu.matmul %199, %3, %cst_68 {dimension_numbers = #tpu.dot_dimension_numbers<[1], [0], [0], [1], [0, 0, 1, 1], [], []>} : vector<8x32xf32>, vector<32x128xf32>, vector<8x128xf32> -> vector<8x128xf32>
    %222 = arith.addf %220, %221 : vector<8x128xf32>
    %223 = vector.broadcast %5 : vector<1x128xf32> to vector<8x128xf32>
    %224 = arith.addf %222, %223 : vector<8x128xf32>
    %cst_69 = arith.constant 5.000000e-01 : f32
    %225 = vector.broadcast %cst_69 : f32 to vector<8x128xf32>
    %226 = arith.mulf %225, %224 : vector<8x128xf32>
    %227 = math.tanh %226 : vector<8x128xf32>
    %cst_70 = arith.constant 5.000000e-01 : f32
    %228 = vector.broadcast %cst_70 : f32 to vector<8x128xf32>
    %229 = arith.mulf %228, %227 : vector<8x128xf32>
    %cst_71 = arith.constant 5.000000e-01 : f32
    %230 = vector.broadcast %cst_71 : f32 to vector<8x128xf32>
    %231 = arith.addf %229, %230 : vector<8x128xf32>
    %232 = math.tanh %224 : vector<8x128xf32>
    %233 = vector.extract_strided_slice %231 {offsets = [0, 0], sizes = [8, 32], strides = [1, 1]} : vector<8x128xf32> to vector<8x32xf32>
    %234 = vector.extract_strided_slice %231 {offsets = [0, 32], sizes = [8, 32], strides = [1, 1]} : vector<8x128xf32> to vector<8x32xf32>
    %235 = vector.extract_strided_slice %232 {offsets = [0, 64], sizes = [8, 32], strides = [1, 1]} : vector<8x128xf32> to vector<8x32xf32>
    %236 = vector.extract_strided_slice %231 {offsets = [0, 96], sizes = [8, 32], strides = [1, 1]} : vector<8x128xf32> to vector<8x32xf32>
    %237 = arith.mulf %234, %197 : vector<8x32xf32>
    %238 = arith.mulf %233, %235 : vector<8x32xf32>
    %239 = arith.addf %237, %238 : vector<8x32xf32>
    %240 = math.tanh %239 : vector<8x32xf32>
    %241 = arith.mulf %236, %240 : vector<8x32xf32>
    %c0_72 = arith.constant 0 : index
    %c0_73 = arith.constant 0 : index
    %242 = vector.load %arg13[%c0_72, %c0_73] : memref<160x32xf32, #tpu.memory_space<vmem>>, vector<8x32xf32>
    tpu.vector_store %arg13[%c0_72, %c0_73], %241 {strides = array<i32>} : memref<160x32xf32, #tpu.memory_space<vmem>>, vector<8x32xf32>,
    %c48 = arith.constant 48 : index
    %c0_74 = arith.constant 0 : index
    %243 = vector.load %arg12[%c48, %c0_74] : memref<192x128xf32, #tpu.memory_space<vmem>>, vector<8x128xf32>
    %cst_75 = arith.constant dense<0.000000e+00> : vector<8x128xf32>
    %244 = tpu.matmul %219, %2, %cst_75 {dimension_numbers = #tpu.dot_dimension_numbers<[1], [0], [0], [1], [0, 0, 1, 1], [], []>} : vector<8x32xf32>, vector<32x128xf32>, vector<8x128xf32> -> vector<8x128xf32>
    %245 = arith.addf %243, %244 : vector<8x128xf32>
    %cst_76 = arith.constant 5.000000e-01 : f32
    %246 = vector.broadcast %cst_76 : f32 to vector<8x128xf32>
    %247 = arith.mulf %246, %245 : vector<8x128xf32>
    %248 = math.tanh %247 : vector<8x128xf32>
    %cst_77 = arith.constant 5.000000e-01 : f32
    %249 = vector.broadcast %cst_77 : f32 to vector<8x128xf32>
    %250 = arith.mulf %249, %248 : vector<8x128xf32>
    %cst_78 = arith.constant 5.000000e-01 : f32
    %251 = vector.broadcast %cst_78 : f32 to vector<8x128xf32>
    %252 = arith.addf %250, %251 : vector<8x128xf32>
    %253 = math.tanh %245 : vector<8x128xf32>
    %254 = vector.extract_strided_slice %252 {offsets = [0, 0], sizes = [8, 32], strides = [1, 1]} : vector<8x128xf32> to vector<8x32xf32>
    %255 = vector.extract_strided_slice %252 {offsets = [0, 32], sizes = [8, 32], strides = [1, 1]} : vector<8x128xf32> to vector<8x32xf32>
    %256 = vector.extract_strided_slice %253 {offsets = [0, 64], sizes = [8, 32], strides = [1, 1]} : vector<8x128xf32> to vector<8x32xf32>
    %257 = vector.extract_strided_slice %252 {offsets = [0, 96], sizes = [8, 32], strides = [1, 1]} : vector<8x128xf32> to vector<8x32xf32>
    %258 = arith.mulf %255, %217 : vector<8x32xf32>
    %259 = arith.mulf %254, %256 : vector<8x32xf32>
    %260 = arith.addf %258, %259 : vector<8x32xf32>
    %261 = math.tanh %260 : vector<8x32xf32>
    %262 = arith.mulf %257, %261 : vector<8x32xf32>
    %cst_79 = arith.constant dense<0.000000e+00> : vector<8x128xf32>
    %263 = tpu.matmul %219, %1, %cst_79 {dimension_numbers = #tpu.dot_dimension_numbers<[1], [0], [0], [1], [0, 0, 1, 1], [], []>} : vector<8x32xf32>, vector<32x128xf32>, vector<8x128xf32> -> vector<8x128xf32>
    %cst_80 = arith.constant dense<0.000000e+00> : vector<8x128xf32>
    %264 = tpu.matmul %241, %3, %cst_80 {dimension_numbers = #tpu.dot_dimension_numbers<[1], [0], [0], [1], [0, 0, 1, 1], [], []>} : vector<8x32xf32>, vector<32x128xf32>, vector<8x128xf32> -> vector<8x128xf32>
    %265 = arith.addf %263, %264 : vector<8x128xf32>
    %266 = vector.broadcast %5 : vector<1x128xf32> to vector<8x128xf32>
    %267 = arith.addf %265, %266 : vector<8x128xf32>
    %cst_81 = arith.constant 5.000000e-01 : f32
    %268 = vector.broadcast %cst_81 : f32 to vector<8x128xf32>
    %269 = arith.mulf %268, %267 : vector<8x128xf32>
    %270 = math.tanh %269 : vector<8x128xf32>
    %cst_82 = arith.constant 5.000000e-01 : f32
    %271 = vector.broadcast %cst_82 : f32 to vector<8x128xf32>
    %272 = arith.mulf %271, %270 : vector<8x128xf32>
    %cst_83 = arith.constant 5.000000e-01 : f32
    %273 = vector.broadcast %cst_83 : f32 to vector<8x128xf32>
    %274 = arith.addf %272, %273 : vector<8x128xf32>
    %275 = math.tanh %267 : vector<8x128xf32>
    %276 = vector.extract_strided_slice %274 {offsets = [0, 0], sizes = [8, 32], strides = [1, 1]} : vector<8x128xf32> to vector<8x32xf32>
    %277 = vector.extract_strided_slice %274 {offsets = [0, 32], sizes = [8, 32], strides = [1, 1]} : vector<8x128xf32> to vector<8x32xf32>
    %278 = vector.extract_strided_slice %275 {offsets = [0, 64], sizes = [8, 32], strides = [1, 1]} : vector<8x128xf32> to vector<8x32xf32>
    %279 = vector.extract_strided_slice %274 {offsets = [0, 96], sizes = [8, 32], strides = [1, 1]} : vector<8x128xf32> to vector<8x32xf32>
    %280 = arith.mulf %277, %239 : vector<8x32xf32>
    %281 = arith.mulf %276, %278 : vector<8x32xf32>
    %282 = arith.addf %280, %281 : vector<8x32xf32>
    %283 = math.tanh %282 : vector<8x32xf32>
    %284 = arith.mulf %279, %283 : vector<8x32xf32>
    %c8_84 = arith.constant 8 : index
    %c0_85 = arith.constant 0 : index
    %285 = vector.load %arg13[%c8_84, %c0_85] : memref<160x32xf32, #tpu.memory_space<vmem>>, vector<8x32xf32>
    tpu.vector_store %arg13[%c8_84, %c0_85], %284 {strides = array<i32>} : memref<160x32xf32, #tpu.memory_space<vmem>>, vector<8x32xf32>,
    %c56 = arith.constant 56 : index
    %c0_86 = arith.constant 0 : index
    %286 = vector.load %arg12[%c56, %c0_86] : memref<192x128xf32, #tpu.memory_space<vmem>>, vector<8x128xf32>
    %cst_87 = arith.constant dense<0.000000e+00> : vector<8x128xf32>
    %287 = tpu.matmul %262, %2, %cst_87 {dimension_numbers = #tpu.dot_dimension_numbers<[1], [0], [0], [1], [0, 0, 1, 1], [], []>} : vector<8x32xf32>, vector<32x128xf32>, vector<8x128xf32> -> vector<8x128xf32>
    %288 = arith.addf %286, %287 : vector<8x128xf32>
    %cst_88 = arith.constant 5.000000e-01 : f32
    %289 = vector.broadcast %cst_88 : f32 to vector<8x128xf32>
    %290 = arith.mulf %289, %288 : vector<8x128xf32>
    %291 = math.tanh %290 : vector<8x128xf32>
    %cst_89 = arith.constant 5.000000e-01 : f32
    %292 = vector.broadcast %cst_89 : f32 to vector<8x128xf32>
    %293 = arith.mulf %292, %291 : vector<8x128xf32>
    %cst_90 = arith.constant 5.000000e-01 : f32
    %294 = vector.broadcast %cst_90 : f32 to vector<8x128xf32>
    %295 = arith.addf %293, %294 : vector<8x128xf32>
    %296 = math.tanh %288 : vector<8x128xf32>
    %297 = vector.extract_strided_slice %295 {offsets = [0, 0], sizes = [8, 32], strides = [1, 1]} : vector<8x128xf32> to vector<8x32xf32>
    %298 = vector.extract_strided_slice %295 {offsets = [0, 32], sizes = [8, 32], strides = [1, 1]} : vector<8x128xf32> to vector<8x32xf32>
    %299 = vector.extract_strided_slice %296 {offsets = [0, 64], sizes = [8, 32], strides = [1, 1]} : vector<8x128xf32> to vector<8x32xf32>
    %300 = vector.extract_strided_slice %295 {offsets = [0, 96], sizes = [8, 32], strides = [1, 1]} : vector<8x128xf32> to vector<8x32xf32>
    %301 = arith.mulf %298, %260 : vector<8x32xf32>
    %302 = arith.mulf %297, %299 : vector<8x32xf32>
    %303 = arith.addf %301, %302 : vector<8x32xf32>
    %304 = math.tanh %303 : vector<8x32xf32>
    %305 = arith.mulf %300, %304 : vector<8x32xf32>
    %cst_91 = arith.constant dense<0.000000e+00> : vector<8x128xf32>
    %306 = tpu.matmul %262, %1, %cst_91 {dimension_numbers = #tpu.dot_dimension_numbers<[1], [0], [0], [1], [0, 0, 1, 1], [], []>} : vector<8x32xf32>, vector<32x128xf32>, vector<8x128xf32> -> vector<8x128xf32>
    %cst_92 = arith.constant dense<0.000000e+00> : vector<8x128xf32>
    %307 = tpu.matmul %284, %3, %cst_92 {dimension_numbers = #tpu.dot_dimension_numbers<[1], [0], [0], [1], [0, 0, 1, 1], [], []>} : vector<8x32xf32>, vector<32x128xf32>, vector<8x128xf32> -> vector<8x128xf32>
    %308 = arith.addf %306, %307 : vector<8x128xf32>
    %309 = vector.broadcast %5 : vector<1x128xf32> to vector<8x128xf32>
    %310 = arith.addf %308, %309 : vector<8x128xf32>
    %cst_93 = arith.constant 5.000000e-01 : f32
    %311 = vector.broadcast %cst_93 : f32 to vector<8x128xf32>
    %312 = arith.mulf %311, %310 : vector<8x128xf32>
    %313 = math.tanh %312 : vector<8x128xf32>
    %cst_94 = arith.constant 5.000000e-01 : f32
    %314 = vector.broadcast %cst_94 : f32 to vector<8x128xf32>
    %315 = arith.mulf %314, %313 : vector<8x128xf32>
    %cst_95 = arith.constant 5.000000e-01 : f32
    %316 = vector.broadcast %cst_95 : f32 to vector<8x128xf32>
    %317 = arith.addf %315, %316 : vector<8x128xf32>
    %318 = math.tanh %310 : vector<8x128xf32>
    %319 = vector.extract_strided_slice %317 {offsets = [0, 0], sizes = [8, 32], strides = [1, 1]} : vector<8x128xf32> to vector<8x32xf32>
    %320 = vector.extract_strided_slice %317 {offsets = [0, 32], sizes = [8, 32], strides = [1, 1]} : vector<8x128xf32> to vector<8x32xf32>
    %321 = vector.extract_strided_slice %318 {offsets = [0, 64], sizes = [8, 32], strides = [1, 1]} : vector<8x128xf32> to vector<8x32xf32>
    %322 = vector.extract_strided_slice %317 {offsets = [0, 96], sizes = [8, 32], strides = [1, 1]} : vector<8x128xf32> to vector<8x32xf32>
    %323 = arith.mulf %320, %282 : vector<8x32xf32>
    %324 = arith.mulf %319, %321 : vector<8x32xf32>
    %325 = arith.addf %323, %324 : vector<8x32xf32>
    %326 = math.tanh %325 : vector<8x32xf32>
    %327 = arith.mulf %322, %326 : vector<8x32xf32>
    %c16_96 = arith.constant 16 : index
    %c0_97 = arith.constant 0 : index
    %328 = vector.load %arg13[%c16_96, %c0_97] : memref<160x32xf32, #tpu.memory_space<vmem>>, vector<8x32xf32>
    tpu.vector_store %arg13[%c16_96, %c0_97], %327 {strides = array<i32>} : memref<160x32xf32, #tpu.memory_space<vmem>>, vector<8x32xf32>,
    %c64 = arith.constant 64 : index
    %c0_98 = arith.constant 0 : index
    %329 = vector.load %arg12[%c64, %c0_98] : memref<192x128xf32, #tpu.memory_space<vmem>>, vector<8x128xf32>
    %cst_99 = arith.constant dense<0.000000e+00> : vector<8x128xf32>
    %330 = tpu.matmul %305, %2, %cst_99 {dimension_numbers = #tpu.dot_dimension_numbers<[1], [0], [0], [1], [0, 0, 1, 1], [], []>} : vector<8x32xf32>, vector<32x128xf32>, vector<8x128xf32> -> vector<8x128xf32>
    %331 = arith.addf %329, %330 : vector<8x128xf32>
    %cst_100 = arith.constant 5.000000e-01 : f32
    %332 = vector.broadcast %cst_100 : f32 to vector<8x128xf32>
    %333 = arith.mulf %332, %331 : vector<8x128xf32>
    %334 = math.tanh %333 : vector<8x128xf32>
    %cst_101 = arith.constant 5.000000e-01 : f32
    %335 = vector.broadcast %cst_101 : f32 to vector<8x128xf32>
    %336 = arith.mulf %335, %334 : vector<8x128xf32>
    %cst_102 = arith.constant 5.000000e-01 : f32
    %337 = vector.broadcast %cst_102 : f32 to vector<8x128xf32>
    %338 = arith.addf %336, %337 : vector<8x128xf32>
    %339 = math.tanh %331 : vector<8x128xf32>
    %340 = vector.extract_strided_slice %338 {offsets = [0, 0], sizes = [8, 32], strides = [1, 1]} : vector<8x128xf32> to vector<8x32xf32>
    %341 = vector.extract_strided_slice %338 {offsets = [0, 32], sizes = [8, 32], strides = [1, 1]} : vector<8x128xf32> to vector<8x32xf32>
    %342 = vector.extract_strided_slice %339 {offsets = [0, 64], sizes = [8, 32], strides = [1, 1]} : vector<8x128xf32> to vector<8x32xf32>
    %343 = vector.extract_strided_slice %338 {offsets = [0, 96], sizes = [8, 32], strides = [1, 1]} : vector<8x128xf32> to vector<8x32xf32>
    %344 = arith.mulf %341, %303 : vector<8x32xf32>
    %345 = arith.mulf %340, %342 : vector<8x32xf32>
    %346 = arith.addf %344, %345 : vector<8x32xf32>
    %347 = math.tanh %346 : vector<8x32xf32>
    %348 = arith.mulf %343, %347 : vector<8x32xf32>
    %cst_103 = arith.constant dense<0.000000e+00> : vector<8x128xf32>
    %349 = tpu.matmul %305, %1, %cst_103 {dimension_numbers = #tpu.dot_dimension_numbers<[1], [0], [0], [1], [0, 0, 1, 1], [], []>} : vector<8x32xf32>, vector<32x128xf32>, vector<8x128xf32> -> vector<8x128xf32>
    %cst_104 = arith.constant dense<0.000000e+00> : vector<8x128xf32>
    %350 = tpu.matmul %327, %3, %cst_104 {dimension_numbers = #tpu.dot_dimension_numbers<[1], [0], [0], [1], [0, 0, 1, 1], [], []>} : vector<8x32xf32>, vector<32x128xf32>, vector<8x128xf32> -> vector<8x128xf32>
    %351 = arith.addf %349, %350 : vector<8x128xf32>
    %352 = vector.broadcast %5 : vector<1x128xf32> to vector<8x128xf32>
    %353 = arith.addf %351, %352 : vector<8x128xf32>
    %cst_105 = arith.constant 5.000000e-01 : f32
    %354 = vector.broadcast %cst_105 : f32 to vector<8x128xf32>
    %355 = arith.mulf %354, %353 : vector<8x128xf32>
    %356 = math.tanh %355 : vector<8x128xf32>
    %cst_106 = arith.constant 5.000000e-01 : f32
    %357 = vector.broadcast %cst_106 : f32 to vector<8x128xf32>
    %358 = arith.mulf %357, %356 : vector<8x128xf32>
    %cst_107 = arith.constant 5.000000e-01 : f32
    %359 = vector.broadcast %cst_107 : f32 to vector<8x128xf32>
    %360 = arith.addf %358, %359 : vector<8x128xf32>
    %361 = math.tanh %353 : vector<8x128xf32>
    %362 = vector.extract_strided_slice %360 {offsets = [0, 0], sizes = [8, 32], strides = [1, 1]} : vector<8x128xf32> to vector<8x32xf32>
    %363 = vector.extract_strided_slice %360 {offsets = [0, 32], sizes = [8, 32], strides = [1, 1]} : vector<8x128xf32> to vector<8x32xf32>
    %364 = vector.extract_strided_slice %361 {offsets = [0, 64], sizes = [8, 32], strides = [1, 1]} : vector<8x128xf32> to vector<8x32xf32>
    %365 = vector.extract_strided_slice %360 {offsets = [0, 96], sizes = [8, 32], strides = [1, 1]} : vector<8x128xf32> to vector<8x32xf32>
    %366 = arith.mulf %363, %325 : vector<8x32xf32>
    %367 = arith.mulf %362, %364 : vector<8x32xf32>
    %368 = arith.addf %366, %367 : vector<8x32xf32>
    %369 = math.tanh %368 : vector<8x32xf32>
    %370 = arith.mulf %365, %369 : vector<8x32xf32>
    %c24_108 = arith.constant 24 : index
    %c0_109 = arith.constant 0 : index
    %371 = vector.load %arg13[%c24_108, %c0_109] : memref<160x32xf32, #tpu.memory_space<vmem>>, vector<8x32xf32>
    tpu.vector_store %arg13[%c24_108, %c0_109], %370 {strides = array<i32>} : memref<160x32xf32, #tpu.memory_space<vmem>>, vector<8x32xf32>,
    %c72 = arith.constant 72 : index
    %c0_110 = arith.constant 0 : index
    %372 = vector.load %arg12[%c72, %c0_110] : memref<192x128xf32, #tpu.memory_space<vmem>>, vector<8x128xf32>
    %cst_111 = arith.constant dense<0.000000e+00> : vector<8x128xf32>
    %373 = tpu.matmul %348, %2, %cst_111 {dimension_numbers = #tpu.dot_dimension_numbers<[1], [0], [0], [1], [0, 0, 1, 1], [], []>} : vector<8x32xf32>, vector<32x128xf32>, vector<8x128xf32> -> vector<8x128xf32>
    %374 = arith.addf %372, %373 : vector<8x128xf32>
    %cst_112 = arith.constant 5.000000e-01 : f32
    %375 = vector.broadcast %cst_112 : f32 to vector<8x128xf32>
    %376 = arith.mulf %375, %374 : vector<8x128xf32>
    %377 = math.tanh %376 : vector<8x128xf32>
    %cst_113 = arith.constant 5.000000e-01 : f32
    %378 = vector.broadcast %cst_113 : f32 to vector<8x128xf32>
    %379 = arith.mulf %378, %377 : vector<8x128xf32>
    %cst_114 = arith.constant 5.000000e-01 : f32
    %380 = vector.broadcast %cst_114 : f32 to vector<8x128xf32>
    %381 = arith.addf %379, %380 : vector<8x128xf32>
    %382 = math.tanh %374 : vector<8x128xf32>
    %383 = vector.extract_strided_slice %381 {offsets = [0, 0], sizes = [8, 32], strides = [1, 1]} : vector<8x128xf32> to vector<8x32xf32>
    %384 = vector.extract_strided_slice %381 {offsets = [0, 32], sizes = [8, 32], strides = [1, 1]} : vector<8x128xf32> to vector<8x32xf32>
    %385 = vector.extract_strided_slice %382 {offsets = [0, 64], sizes = [8, 32], strides = [1, 1]} : vector<8x128xf32> to vector<8x32xf32>
    %386 = vector.extract_strided_slice %381 {offsets = [0, 96], sizes = [8, 32], strides = [1, 1]} : vector<8x128xf32> to vector<8x32xf32>
    %387 = arith.mulf %384, %346 : vector<8x32xf32>
    %388 = arith.mulf %383, %385 : vector<8x32xf32>
    %389 = arith.addf %387, %388 : vector<8x32xf32>
    %390 = math.tanh %389 : vector<8x32xf32>
    %391 = arith.mulf %386, %390 : vector<8x32xf32>
    %cst_115 = arith.constant dense<0.000000e+00> : vector<8x128xf32>
    %392 = tpu.matmul %348, %1, %cst_115 {dimension_numbers = #tpu.dot_dimension_numbers<[1], [0], [0], [1], [0, 0, 1, 1], [], []>} : vector<8x32xf32>, vector<32x128xf32>, vector<8x128xf32> -> vector<8x128xf32>
    %cst_116 = arith.constant dense<0.000000e+00> : vector<8x128xf32>
    %393 = tpu.matmul %370, %3, %cst_116 {dimension_numbers = #tpu.dot_dimension_numbers<[1], [0], [0], [1], [0, 0, 1, 1], [], []>} : vector<8x32xf32>, vector<32x128xf32>, vector<8x128xf32> -> vector<8x128xf32>
    %394 = arith.addf %392, %393 : vector<8x128xf32>
    %395 = vector.broadcast %5 : vector<1x128xf32> to vector<8x128xf32>
    %396 = arith.addf %394, %395 : vector<8x128xf32>
    %cst_117 = arith.constant 5.000000e-01 : f32
    %397 = vector.broadcast %cst_117 : f32 to vector<8x128xf32>
    %398 = arith.mulf %397, %396 : vector<8x128xf32>
    %399 = math.tanh %398 : vector<8x128xf32>
    %cst_118 = arith.constant 5.000000e-01 : f32
    %400 = vector.broadcast %cst_118 : f32 to vector<8x128xf32>
    %401 = arith.mulf %400, %399 : vector<8x128xf32>
    %cst_119 = arith.constant 5.000000e-01 : f32
    %402 = vector.broadcast %cst_119 : f32 to vector<8x128xf32>
    %403 = arith.addf %401, %402 : vector<8x128xf32>
    %404 = math.tanh %396 : vector<8x128xf32>
    %405 = vector.extract_strided_slice %403 {offsets = [0, 0], sizes = [8, 32], strides = [1, 1]} : vector<8x128xf32> to vector<8x32xf32>
    %406 = vector.extract_strided_slice %403 {offsets = [0, 32], sizes = [8, 32], strides = [1, 1]} : vector<8x128xf32> to vector<8x32xf32>
    %407 = vector.extract_strided_slice %404 {offsets = [0, 64], sizes = [8, 32], strides = [1, 1]} : vector<8x128xf32> to vector<8x32xf32>
    %408 = vector.extract_strided_slice %403 {offsets = [0, 96], sizes = [8, 32], strides = [1, 1]} : vector<8x128xf32> to vector<8x32xf32>
    %409 = arith.mulf %406, %368 : vector<8x32xf32>
    %410 = arith.mulf %405, %407 : vector<8x32xf32>
    %411 = arith.addf %409, %410 : vector<8x32xf32>
    %412 = math.tanh %411 : vector<8x32xf32>
    %413 = arith.mulf %408, %412 : vector<8x32xf32>
    %c32_120 = arith.constant 32 : index
    %c0_121 = arith.constant 0 : index
    %414 = vector.load %arg13[%c32_120, %c0_121] : memref<160x32xf32, #tpu.memory_space<vmem>>, vector<8x32xf32>
    tpu.vector_store %arg13[%c32_120, %c0_121], %413 {strides = array<i32>} : memref<160x32xf32, #tpu.memory_space<vmem>>, vector<8x32xf32>,
    %c80 = arith.constant 80 : index
    %c0_122 = arith.constant 0 : index
    %415 = vector.load %arg12[%c80, %c0_122] : memref<192x128xf32, #tpu.memory_space<vmem>>, vector<8x128xf32>
    %cst_123 = arith.constant dense<0.000000e+00> : vector<8x128xf32>
    %416 = tpu.matmul %391, %2, %cst_123 {dimension_numbers = #tpu.dot_dimension_numbers<[1], [0], [0], [1], [0, 0, 1, 1], [], []>} : vector<8x32xf32>, vector<32x128xf32>, vector<8x128xf32> -> vector<8x128xf32>
    %417 = arith.addf %415, %416 : vector<8x128xf32>
    %cst_124 = arith.constant 5.000000e-01 : f32
    %418 = vector.broadcast %cst_124 : f32 to vector<8x128xf32>
    %419 = arith.mulf %418, %417 : vector<8x128xf32>
    %420 = math.tanh %419 : vector<8x128xf32>
    %cst_125 = arith.constant 5.000000e-01 : f32
    %421 = vector.broadcast %cst_125 : f32 to vector<8x128xf32>
    %422 = arith.mulf %421, %420 : vector<8x128xf32>
    %cst_126 = arith.constant 5.000000e-01 : f32
    %423 = vector.broadcast %cst_126 : f32 to vector<8x128xf32>
    %424 = arith.addf %422, %423 : vector<8x128xf32>
    %425 = math.tanh %417 : vector<8x128xf32>
    %426 = vector.extract_strided_slice %424 {offsets = [0, 0], sizes = [8, 32], strides = [1, 1]} : vector<8x128xf32> to vector<8x32xf32>
    %427 = vector.extract_strided_slice %424 {offsets = [0, 32], sizes = [8, 32], strides = [1, 1]} : vector<8x128xf32> to vector<8x32xf32>
    %428 = vector.extract_strided_slice %425 {offsets = [0, 64], sizes = [8, 32], strides = [1, 1]} : vector<8x128xf32> to vector<8x32xf32>
    %429 = vector.extract_strided_slice %424 {offsets = [0, 96], sizes = [8, 32], strides = [1, 1]} : vector<8x128xf32> to vector<8x32xf32>
    %430 = arith.mulf %427, %389 : vector<8x32xf32>
    %431 = arith.mulf %426, %428 : vector<8x32xf32>
    %432 = arith.addf %430, %431 : vector<8x32xf32>
    %433 = math.tanh %432 : vector<8x32xf32>
    %434 = arith.mulf %429, %433 : vector<8x32xf32>
    %cst_127 = arith.constant dense<0.000000e+00> : vector<8x128xf32>
    %435 = tpu.matmul %391, %1, %cst_127 {dimension_numbers = #tpu.dot_dimension_numbers<[1], [0], [0], [1], [0, 0, 1, 1], [], []>} : vector<8x32xf32>, vector<32x128xf32>, vector<8x128xf32> -> vector<8x128xf32>
    %cst_128 = arith.constant dense<0.000000e+00> : vector<8x128xf32>
    %436 = tpu.matmul %413, %3, %cst_128 {dimension_numbers = #tpu.dot_dimension_numbers<[1], [0], [0], [1], [0, 0, 1, 1], [], []>} : vector<8x32xf32>, vector<32x128xf32>, vector<8x128xf32> -> vector<8x128xf32>
    %437 = arith.addf %435, %436 : vector<8x128xf32>
    %438 = vector.broadcast %5 : vector<1x128xf32> to vector<8x128xf32>
    %439 = arith.addf %437, %438 : vector<8x128xf32>
    %cst_129 = arith.constant 5.000000e-01 : f32
    %440 = vector.broadcast %cst_129 : f32 to vector<8x128xf32>
    %441 = arith.mulf %440, %439 : vector<8x128xf32>
    %442 = math.tanh %441 : vector<8x128xf32>
    %cst_130 = arith.constant 5.000000e-01 : f32
    %443 = vector.broadcast %cst_130 : f32 to vector<8x128xf32>
    %444 = arith.mulf %443, %442 : vector<8x128xf32>
    %cst_131 = arith.constant 5.000000e-01 : f32
    %445 = vector.broadcast %cst_131 : f32 to vector<8x128xf32>
    %446 = arith.addf %444, %445 : vector<8x128xf32>
    %447 = math.tanh %439 : vector<8x128xf32>
    %448 = vector.extract_strided_slice %446 {offsets = [0, 0], sizes = [8, 32], strides = [1, 1]} : vector<8x128xf32> to vector<8x32xf32>
    %449 = vector.extract_strided_slice %446 {offsets = [0, 32], sizes = [8, 32], strides = [1, 1]} : vector<8x128xf32> to vector<8x32xf32>
    %450 = vector.extract_strided_slice %447 {offsets = [0, 64], sizes = [8, 32], strides = [1, 1]} : vector<8x128xf32> to vector<8x32xf32>
    %451 = vector.extract_strided_slice %446 {offsets = [0, 96], sizes = [8, 32], strides = [1, 1]} : vector<8x128xf32> to vector<8x32xf32>
    %452 = arith.mulf %449, %411 : vector<8x32xf32>
    %453 = arith.mulf %448, %450 : vector<8x32xf32>
    %454 = arith.addf %452, %453 : vector<8x32xf32>
    %455 = math.tanh %454 : vector<8x32xf32>
    %456 = arith.mulf %451, %455 : vector<8x32xf32>
    %c40_132 = arith.constant 40 : index
    %c0_133 = arith.constant 0 : index
    %457 = vector.load %arg13[%c40_132, %c0_133] : memref<160x32xf32, #tpu.memory_space<vmem>>, vector<8x32xf32>
    tpu.vector_store %arg13[%c40_132, %c0_133], %456 {strides = array<i32>} : memref<160x32xf32, #tpu.memory_space<vmem>>, vector<8x32xf32>,
    %c88 = arith.constant 88 : index
    %c0_134 = arith.constant 0 : index
    %458 = vector.load %arg12[%c88, %c0_134] : memref<192x128xf32, #tpu.memory_space<vmem>>, vector<8x128xf32>
    %cst_135 = arith.constant dense<0.000000e+00> : vector<8x128xf32>
    %459 = tpu.matmul %434, %2, %cst_135 {dimension_numbers = #tpu.dot_dimension_numbers<[1], [0], [0], [1], [0, 0, 1, 1], [], []>} : vector<8x32xf32>, vector<32x128xf32>, vector<8x128xf32> -> vector<8x128xf32>
    %460 = arith.addf %458, %459 : vector<8x128xf32>
    %cst_136 = arith.constant 5.000000e-01 : f32
    %461 = vector.broadcast %cst_136 : f32 to vector<8x128xf32>
    %462 = arith.mulf %461, %460 : vector<8x128xf32>
    %463 = math.tanh %462 : vector<8x128xf32>
    %cst_137 = arith.constant 5.000000e-01 : f32
    %464 = vector.broadcast %cst_137 : f32 to vector<8x128xf32>
    %465 = arith.mulf %464, %463 : vector<8x128xf32>
    %cst_138 = arith.constant 5.000000e-01 : f32
    %466 = vector.broadcast %cst_138 : f32 to vector<8x128xf32>
    %467 = arith.addf %465, %466 : vector<8x128xf32>
    %468 = math.tanh %460 : vector<8x128xf32>
    %469 = vector.extract_strided_slice %467 {offsets = [0, 0], sizes = [8, 32], strides = [1, 1]} : vector<8x128xf32> to vector<8x32xf32>
    %470 = vector.extract_strided_slice %467 {offsets = [0, 32], sizes = [8, 32], strides = [1, 1]} : vector<8x128xf32> to vector<8x32xf32>
    %471 = vector.extract_strided_slice %468 {offsets = [0, 64], sizes = [8, 32], strides = [1, 1]} : vector<8x128xf32> to vector<8x32xf32>
    %472 = vector.extract_strided_slice %467 {offsets = [0, 96], sizes = [8, 32], strides = [1, 1]} : vector<8x128xf32> to vector<8x32xf32>
    %473 = arith.mulf %470, %432 : vector<8x32xf32>
    %474 = arith.mulf %469, %471 : vector<8x32xf32>
    %475 = arith.addf %473, %474 : vector<8x32xf32>
    %476 = math.tanh %475 : vector<8x32xf32>
    %477 = arith.mulf %472, %476 : vector<8x32xf32>
    %cst_139 = arith.constant dense<0.000000e+00> : vector<8x128xf32>
    %478 = tpu.matmul %434, %1, %cst_139 {dimension_numbers = #tpu.dot_dimension_numbers<[1], [0], [0], [1], [0, 0, 1, 1], [], []>} : vector<8x32xf32>, vector<32x128xf32>, vector<8x128xf32> -> vector<8x128xf32>
    %cst_140 = arith.constant dense<0.000000e+00> : vector<8x128xf32>
    %479 = tpu.matmul %456, %3, %cst_140 {dimension_numbers = #tpu.dot_dimension_numbers<[1], [0], [0], [1], [0, 0, 1, 1], [], []>} : vector<8x32xf32>, vector<32x128xf32>, vector<8x128xf32> -> vector<8x128xf32>
    %480 = arith.addf %478, %479 : vector<8x128xf32>
    %481 = vector.broadcast %5 : vector<1x128xf32> to vector<8x128xf32>
    %482 = arith.addf %480, %481 : vector<8x128xf32>
    %cst_141 = arith.constant 5.000000e-01 : f32
    %483 = vector.broadcast %cst_141 : f32 to vector<8x128xf32>
    %484 = arith.mulf %483, %482 : vector<8x128xf32>
    %485 = math.tanh %484 : vector<8x128xf32>
    %cst_142 = arith.constant 5.000000e-01 : f32
    %486 = vector.broadcast %cst_142 : f32 to vector<8x128xf32>
    %487 = arith.mulf %486, %485 : vector<8x128xf32>
    %cst_143 = arith.constant 5.000000e-01 : f32
    %488 = vector.broadcast %cst_143 : f32 to vector<8x128xf32>
    %489 = arith.addf %487, %488 : vector<8x128xf32>
    %490 = math.tanh %482 : vector<8x128xf32>
    %491 = vector.extract_strided_slice %489 {offsets = [0, 0], sizes = [8, 32], strides = [1, 1]} : vector<8x128xf32> to vector<8x32xf32>
    %492 = vector.extract_strided_slice %489 {offsets = [0, 32], sizes = [8, 32], strides = [1, 1]} : vector<8x128xf32> to vector<8x32xf32>
    %493 = vector.extract_strided_slice %490 {offsets = [0, 64], sizes = [8, 32], strides = [1, 1]} : vector<8x128xf32> to vector<8x32xf32>
    %494 = vector.extract_strided_slice %489 {offsets = [0, 96], sizes = [8, 32], strides = [1, 1]} : vector<8x128xf32> to vector<8x32xf32>
    %495 = arith.mulf %492, %454 : vector<8x32xf32>
    %496 = arith.mulf %491, %493 : vector<8x32xf32>
    %497 = arith.addf %495, %496 : vector<8x32xf32>
    %498 = math.tanh %497 : vector<8x32xf32>
    %499 = arith.mulf %494, %498 : vector<8x32xf32>
    %c48_144 = arith.constant 48 : index
    %c0_145 = arith.constant 0 : index
    %500 = vector.load %arg13[%c48_144, %c0_145] : memref<160x32xf32, #tpu.memory_space<vmem>>, vector<8x32xf32>
    tpu.vector_store %arg13[%c48_144, %c0_145], %499 {strides = array<i32>} : memref<160x32xf32, #tpu.memory_space<vmem>>, vector<8x32xf32>,
    %c96 = arith.constant 96 : index
    %c0_146 = arith.constant 0 : index
    %501 = vector.load %arg12[%c96, %c0_146] : memref<192x128xf32, #tpu.memory_space<vmem>>, vector<8x128xf32>
    %cst_147 = arith.constant dense<0.000000e+00> : vector<8x128xf32>
    %502 = tpu.matmul %477, %2, %cst_147 {dimension_numbers = #tpu.dot_dimension_numbers<[1], [0], [0], [1], [0, 0, 1, 1], [], []>} : vector<8x32xf32>, vector<32x128xf32>, vector<8x128xf32> -> vector<8x128xf32>
    %503 = arith.addf %501, %502 : vector<8x128xf32>
    %cst_148 = arith.constant 5.000000e-01 : f32
    %504 = vector.broadcast %cst_148 : f32 to vector<8x128xf32>
    %505 = arith.mulf %504, %503 : vector<8x128xf32>
    %506 = math.tanh %505 : vector<8x128xf32>
    %cst_149 = arith.constant 5.000000e-01 : f32
    %507 = vector.broadcast %cst_149 : f32 to vector<8x128xf32>
    %508 = arith.mulf %507, %506 : vector<8x128xf32>
    %cst_150 = arith.constant 5.000000e-01 : f32
    %509 = vector.broadcast %cst_150 : f32 to vector<8x128xf32>
    %510 = arith.addf %508, %509 : vector<8x128xf32>
    %511 = math.tanh %503 : vector<8x128xf32>
    %512 = vector.extract_strided_slice %510 {offsets = [0, 0], sizes = [8, 32], strides = [1, 1]} : vector<8x128xf32> to vector<8x32xf32>
    %513 = vector.extract_strided_slice %510 {offsets = [0, 32], sizes = [8, 32], strides = [1, 1]} : vector<8x128xf32> to vector<8x32xf32>
    %514 = vector.extract_strided_slice %511 {offsets = [0, 64], sizes = [8, 32], strides = [1, 1]} : vector<8x128xf32> to vector<8x32xf32>
    %515 = vector.extract_strided_slice %510 {offsets = [0, 96], sizes = [8, 32], strides = [1, 1]} : vector<8x128xf32> to vector<8x32xf32>
    %516 = arith.mulf %513, %475 : vector<8x32xf32>
    %517 = arith.mulf %512, %514 : vector<8x32xf32>
    %518 = arith.addf %516, %517 : vector<8x32xf32>
    %519 = math.tanh %518 : vector<8x32xf32>
    %520 = arith.mulf %515, %519 : vector<8x32xf32>
    %cst_151 = arith.constant dense<0.000000e+00> : vector<8x128xf32>
    %521 = tpu.matmul %477, %1, %cst_151 {dimension_numbers = #tpu.dot_dimension_numbers<[1], [0], [0], [1], [0, 0, 1, 1], [], []>} : vector<8x32xf32>, vector<32x128xf32>, vector<8x128xf32> -> vector<8x128xf32>
    %cst_152 = arith.constant dense<0.000000e+00> : vector<8x128xf32>
    %522 = tpu.matmul %499, %3, %cst_152 {dimension_numbers = #tpu.dot_dimension_numbers<[1], [0], [0], [1], [0, 0, 1, 1], [], []>} : vector<8x32xf32>, vector<32x128xf32>, vector<8x128xf32> -> vector<8x128xf32>
    %523 = arith.addf %521, %522 : vector<8x128xf32>
    %524 = vector.broadcast %5 : vector<1x128xf32> to vector<8x128xf32>
    %525 = arith.addf %523, %524 : vector<8x128xf32>
    %cst_153 = arith.constant 5.000000e-01 : f32
    %526 = vector.broadcast %cst_153 : f32 to vector<8x128xf32>
    %527 = arith.mulf %526, %525 : vector<8x128xf32>
    %528 = math.tanh %527 : vector<8x128xf32>
    %cst_154 = arith.constant 5.000000e-01 : f32
    %529 = vector.broadcast %cst_154 : f32 to vector<8x128xf32>
    %530 = arith.mulf %529, %528 : vector<8x128xf32>
    %cst_155 = arith.constant 5.000000e-01 : f32
    %531 = vector.broadcast %cst_155 : f32 to vector<8x128xf32>
    %532 = arith.addf %530, %531 : vector<8x128xf32>
    %533 = math.tanh %525 : vector<8x128xf32>
    %534 = vector.extract_strided_slice %532 {offsets = [0, 0], sizes = [8, 32], strides = [1, 1]} : vector<8x128xf32> to vector<8x32xf32>
    %535 = vector.extract_strided_slice %532 {offsets = [0, 32], sizes = [8, 32], strides = [1, 1]} : vector<8x128xf32> to vector<8x32xf32>
    %536 = vector.extract_strided_slice %533 {offsets = [0, 64], sizes = [8, 32], strides = [1, 1]} : vector<8x128xf32> to vector<8x32xf32>
    %537 = vector.extract_strided_slice %532 {offsets = [0, 96], sizes = [8, 32], strides = [1, 1]} : vector<8x128xf32> to vector<8x32xf32>
    %538 = arith.mulf %535, %497 : vector<8x32xf32>
    %539 = arith.mulf %534, %536 : vector<8x32xf32>
    %540 = arith.addf %538, %539 : vector<8x32xf32>
    %541 = math.tanh %540 : vector<8x32xf32>
    %542 = arith.mulf %537, %541 : vector<8x32xf32>
    %c56_156 = arith.constant 56 : index
    %c0_157 = arith.constant 0 : index
    %543 = vector.load %arg13[%c56_156, %c0_157] : memref<160x32xf32, #tpu.memory_space<vmem>>, vector<8x32xf32>
    tpu.vector_store %arg13[%c56_156, %c0_157], %542 {strides = array<i32>} : memref<160x32xf32, #tpu.memory_space<vmem>>, vector<8x32xf32>,
    %c104 = arith.constant 104 : index
    %c0_158 = arith.constant 0 : index
    %544 = vector.load %arg12[%c104, %c0_158] : memref<192x128xf32, #tpu.memory_space<vmem>>, vector<8x128xf32>
    %cst_159 = arith.constant dense<0.000000e+00> : vector<8x128xf32>
    %545 = tpu.matmul %520, %2, %cst_159 {dimension_numbers = #tpu.dot_dimension_numbers<[1], [0], [0], [1], [0, 0, 1, 1], [], []>} : vector<8x32xf32>, vector<32x128xf32>, vector<8x128xf32> -> vector<8x128xf32>
    %546 = arith.addf %544, %545 : vector<8x128xf32>
    %cst_160 = arith.constant 5.000000e-01 : f32
    %547 = vector.broadcast %cst_160 : f32 to vector<8x128xf32>
    %548 = arith.mulf %547, %546 : vector<8x128xf32>
    %549 = math.tanh %548 : vector<8x128xf32>
    %cst_161 = arith.constant 5.000000e-01 : f32
    %550 = vector.broadcast %cst_161 : f32 to vector<8x128xf32>
    %551 = arith.mulf %550, %549 : vector<8x128xf32>
    %cst_162 = arith.constant 5.000000e-01 : f32
    %552 = vector.broadcast %cst_162 : f32 to vector<8x128xf32>
    %553 = arith.addf %551, %552 : vector<8x128xf32>
    %554 = math.tanh %546 : vector<8x128xf32>
    %555 = vector.extract_strided_slice %553 {offsets = [0, 0], sizes = [8, 32], strides = [1, 1]} : vector<8x128xf32> to vector<8x32xf32>
    %556 = vector.extract_strided_slice %553 {offsets = [0, 32], sizes = [8, 32], strides = [1, 1]} : vector<8x128xf32> to vector<8x32xf32>
    %557 = vector.extract_strided_slice %554 {offsets = [0, 64], sizes = [8, 32], strides = [1, 1]} : vector<8x128xf32> to vector<8x32xf32>
    %558 = vector.extract_strided_slice %553 {offsets = [0, 96], sizes = [8, 32], strides = [1, 1]} : vector<8x128xf32> to vector<8x32xf32>
    %559 = arith.mulf %556, %518 : vector<8x32xf32>
    %560 = arith.mulf %555, %557 : vector<8x32xf32>
    %561 = arith.addf %559, %560 : vector<8x32xf32>
    %562 = math.tanh %561 : vector<8x32xf32>
    %563 = arith.mulf %558, %562 : vector<8x32xf32>
    %cst_163 = arith.constant dense<0.000000e+00> : vector<8x128xf32>
    %564 = tpu.matmul %520, %1, %cst_163 {dimension_numbers = #tpu.dot_dimension_numbers<[1], [0], [0], [1], [0, 0, 1, 1], [], []>} : vector<8x32xf32>, vector<32x128xf32>, vector<8x128xf32> -> vector<8x128xf32>
    %cst_164 = arith.constant dense<0.000000e+00> : vector<8x128xf32>
    %565 = tpu.matmul %542, %3, %cst_164 {dimension_numbers = #tpu.dot_dimension_numbers<[1], [0], [0], [1], [0, 0, 1, 1], [], []>} : vector<8x32xf32>, vector<32x128xf32>, vector<8x128xf32> -> vector<8x128xf32>
    %566 = arith.addf %564, %565 : vector<8x128xf32>
    %567 = vector.broadcast %5 : vector<1x128xf32> to vector<8x128xf32>
    %568 = arith.addf %566, %567 : vector<8x128xf32>
    %cst_165 = arith.constant 5.000000e-01 : f32
    %569 = vector.broadcast %cst_165 : f32 to vector<8x128xf32>
    %570 = arith.mulf %569, %568 : vector<8x128xf32>
    %571 = math.tanh %570 : vector<8x128xf32>
    %cst_166 = arith.constant 5.000000e-01 : f32
    %572 = vector.broadcast %cst_166 : f32 to vector<8x128xf32>
    %573 = arith.mulf %572, %571 : vector<8x128xf32>
    %cst_167 = arith.constant 5.000000e-01 : f32
    %574 = vector.broadcast %cst_167 : f32 to vector<8x128xf32>
    %575 = arith.addf %573, %574 : vector<8x128xf32>
    %576 = math.tanh %568 : vector<8x128xf32>
    %577 = vector.extract_strided_slice %575 {offsets = [0, 0], sizes = [8, 32], strides = [1, 1]} : vector<8x128xf32> to vector<8x32xf32>
    %578 = vector.extract_strided_slice %575 {offsets = [0, 32], sizes = [8, 32], strides = [1, 1]} : vector<8x128xf32> to vector<8x32xf32>
    %579 = vector.extract_strided_slice %576 {offsets = [0, 64], sizes = [8, 32], strides = [1, 1]} : vector<8x128xf32> to vector<8x32xf32>
    %580 = vector.extract_strided_slice %575 {offsets = [0, 96], sizes = [8, 32], strides = [1, 1]} : vector<8x128xf32> to vector<8x32xf32>
    %581 = arith.mulf %578, %540 : vector<8x32xf32>
    %582 = arith.mulf %577, %579 : vector<8x32xf32>
    %583 = arith.addf %581, %582 : vector<8x32xf32>
    %584 = math.tanh %583 : vector<8x32xf32>
    %585 = arith.mulf %580, %584 : vector<8x32xf32>
    %c64_168 = arith.constant 64 : index
    %c0_169 = arith.constant 0 : index
    %586 = vector.load %arg13[%c64_168, %c0_169] : memref<160x32xf32, #tpu.memory_space<vmem>>, vector<8x32xf32>
    tpu.vector_store %arg13[%c64_168, %c0_169], %585 {strides = array<i32>} : memref<160x32xf32, #tpu.memory_space<vmem>>, vector<8x32xf32>,
    %c112 = arith.constant 112 : index
    %c0_170 = arith.constant 0 : index
    %587 = vector.load %arg12[%c112, %c0_170] : memref<192x128xf32, #tpu.memory_space<vmem>>, vector<8x128xf32>
    %cst_171 = arith.constant dense<0.000000e+00> : vector<8x128xf32>
    %588 = tpu.matmul %563, %2, %cst_171 {dimension_numbers = #tpu.dot_dimension_numbers<[1], [0], [0], [1], [0, 0, 1, 1], [], []>} : vector<8x32xf32>, vector<32x128xf32>, vector<8x128xf32> -> vector<8x128xf32>
    %589 = arith.addf %587, %588 : vector<8x128xf32>
    %cst_172 = arith.constant 5.000000e-01 : f32
    %590 = vector.broadcast %cst_172 : f32 to vector<8x128xf32>
    %591 = arith.mulf %590, %589 : vector<8x128xf32>
    %592 = math.tanh %591 : vector<8x128xf32>
    %cst_173 = arith.constant 5.000000e-01 : f32
    %593 = vector.broadcast %cst_173 : f32 to vector<8x128xf32>
    %594 = arith.mulf %593, %592 : vector<8x128xf32>
    %cst_174 = arith.constant 5.000000e-01 : f32
    %595 = vector.broadcast %cst_174 : f32 to vector<8x128xf32>
    %596 = arith.addf %594, %595 : vector<8x128xf32>
    %597 = math.tanh %589 : vector<8x128xf32>
    %598 = vector.extract_strided_slice %596 {offsets = [0, 0], sizes = [8, 32], strides = [1, 1]} : vector<8x128xf32> to vector<8x32xf32>
    %599 = vector.extract_strided_slice %596 {offsets = [0, 32], sizes = [8, 32], strides = [1, 1]} : vector<8x128xf32> to vector<8x32xf32>
    %600 = vector.extract_strided_slice %597 {offsets = [0, 64], sizes = [8, 32], strides = [1, 1]} : vector<8x128xf32> to vector<8x32xf32>
    %601 = vector.extract_strided_slice %596 {offsets = [0, 96], sizes = [8, 32], strides = [1, 1]} : vector<8x128xf32> to vector<8x32xf32>
    %602 = arith.mulf %599, %561 : vector<8x32xf32>
    %603 = arith.mulf %598, %600 : vector<8x32xf32>
    %604 = arith.addf %602, %603 : vector<8x32xf32>
    %605 = math.tanh %604 : vector<8x32xf32>
    %606 = arith.mulf %601, %605 : vector<8x32xf32>
    %cst_175 = arith.constant dense<0.000000e+00> : vector<8x128xf32>
    %607 = tpu.matmul %563, %1, %cst_175 {dimension_numbers = #tpu.dot_dimension_numbers<[1], [0], [0], [1], [0, 0, 1, 1], [], []>} : vector<8x32xf32>, vector<32x128xf32>, vector<8x128xf32> -> vector<8x128xf32>
    %cst_176 = arith.constant dense<0.000000e+00> : vector<8x128xf32>
    %608 = tpu.matmul %585, %3, %cst_176 {dimension_numbers = #tpu.dot_dimension_numbers<[1], [0], [0], [1], [0, 0, 1, 1], [], []>} : vector<8x32xf32>, vector<32x128xf32>, vector<8x128xf32> -> vector<8x128xf32>
    %609 = arith.addf %607, %608 : vector<8x128xf32>
    %610 = vector.broadcast %5 : vector<1x128xf32> to vector<8x128xf32>
    %611 = arith.addf %609, %610 : vector<8x128xf32>
    %cst_177 = arith.constant 5.000000e-01 : f32
    %612 = vector.broadcast %cst_177 : f32 to vector<8x128xf32>
    %613 = arith.mulf %612, %611 : vector<8x128xf32>
    %614 = math.tanh %613 : vector<8x128xf32>
    %cst_178 = arith.constant 5.000000e-01 : f32
    %615 = vector.broadcast %cst_178 : f32 to vector<8x128xf32>
    %616 = arith.mulf %615, %614 : vector<8x128xf32>
    %cst_179 = arith.constant 5.000000e-01 : f32
    %617 = vector.broadcast %cst_179 : f32 to vector<8x128xf32>
    %618 = arith.addf %616, %617 : vector<8x128xf32>
    %619 = math.tanh %611 : vector<8x128xf32>
    %620 = vector.extract_strided_slice %618 {offsets = [0, 0], sizes = [8, 32], strides = [1, 1]} : vector<8x128xf32> to vector<8x32xf32>
    %621 = vector.extract_strided_slice %618 {offsets = [0, 32], sizes = [8, 32], strides = [1, 1]} : vector<8x128xf32> to vector<8x32xf32>
    %622 = vector.extract_strided_slice %619 {offsets = [0, 64], sizes = [8, 32], strides = [1, 1]} : vector<8x128xf32> to vector<8x32xf32>
    %623 = vector.extract_strided_slice %618 {offsets = [0, 96], sizes = [8, 32], strides = [1, 1]} : vector<8x128xf32> to vector<8x32xf32>
    %624 = arith.mulf %621, %583 : vector<8x32xf32>
    %625 = arith.mulf %620, %622 : vector<8x32xf32>
    %626 = arith.addf %624, %625 : vector<8x32xf32>
    %627 = math.tanh %626 : vector<8x32xf32>
    %628 = arith.mulf %623, %627 : vector<8x32xf32>
    %c72_180 = arith.constant 72 : index
    %c0_181 = arith.constant 0 : index
    %629 = vector.load %arg13[%c72_180, %c0_181] : memref<160x32xf32, #tpu.memory_space<vmem>>, vector<8x32xf32>
    tpu.vector_store %arg13[%c72_180, %c0_181], %628 {strides = array<i32>} : memref<160x32xf32, #tpu.memory_space<vmem>>, vector<8x32xf32>,
    %c120 = arith.constant 120 : index
    %c0_182 = arith.constant 0 : index
    %630 = vector.load %arg12[%c120, %c0_182] : memref<192x128xf32, #tpu.memory_space<vmem>>, vector<8x128xf32>
    %cst_183 = arith.constant dense<0.000000e+00> : vector<8x128xf32>
    %631 = tpu.matmul %606, %2, %cst_183 {dimension_numbers = #tpu.dot_dimension_numbers<[1], [0], [0], [1], [0, 0, 1, 1], [], []>} : vector<8x32xf32>, vector<32x128xf32>, vector<8x128xf32> -> vector<8x128xf32>
    %632 = arith.addf %630, %631 : vector<8x128xf32>
    %cst_184 = arith.constant 5.000000e-01 : f32
    %633 = vector.broadcast %cst_184 : f32 to vector<8x128xf32>
    %634 = arith.mulf %633, %632 : vector<8x128xf32>
    %635 = math.tanh %634 : vector<8x128xf32>
    %cst_185 = arith.constant 5.000000e-01 : f32
    %636 = vector.broadcast %cst_185 : f32 to vector<8x128xf32>
    %637 = arith.mulf %636, %635 : vector<8x128xf32>
    %cst_186 = arith.constant 5.000000e-01 : f32
    %638 = vector.broadcast %cst_186 : f32 to vector<8x128xf32>
    %639 = arith.addf %637, %638 : vector<8x128xf32>
    %640 = math.tanh %632 : vector<8x128xf32>
    %641 = vector.extract_strided_slice %639 {offsets = [0, 0], sizes = [8, 32], strides = [1, 1]} : vector<8x128xf32> to vector<8x32xf32>
    %642 = vector.extract_strided_slice %639 {offsets = [0, 32], sizes = [8, 32], strides = [1, 1]} : vector<8x128xf32> to vector<8x32xf32>
    %643 = vector.extract_strided_slice %640 {offsets = [0, 64], sizes = [8, 32], strides = [1, 1]} : vector<8x128xf32> to vector<8x32xf32>
    %644 = vector.extract_strided_slice %639 {offsets = [0, 96], sizes = [8, 32], strides = [1, 1]} : vector<8x128xf32> to vector<8x32xf32>
    %645 = arith.mulf %642, %604 : vector<8x32xf32>
    %646 = arith.mulf %641, %643 : vector<8x32xf32>
    %647 = arith.addf %645, %646 : vector<8x32xf32>
    %648 = math.tanh %647 : vector<8x32xf32>
    %649 = arith.mulf %644, %648 : vector<8x32xf32>
    %cst_187 = arith.constant dense<0.000000e+00> : vector<8x128xf32>
    %650 = tpu.matmul %606, %1, %cst_187 {dimension_numbers = #tpu.dot_dimension_numbers<[1], [0], [0], [1], [0, 0, 1, 1], [], []>} : vector<8x32xf32>, vector<32x128xf32>, vector<8x128xf32> -> vector<8x128xf32>
    %cst_188 = arith.constant dense<0.000000e+00> : vector<8x128xf32>
    %651 = tpu.matmul %628, %3, %cst_188 {dimension_numbers = #tpu.dot_dimension_numbers<[1], [0], [0], [1], [0, 0, 1, 1], [], []>} : vector<8x32xf32>, vector<32x128xf32>, vector<8x128xf32> -> vector<8x128xf32>
    %652 = arith.addf %650, %651 : vector<8x128xf32>
    %653 = vector.broadcast %5 : vector<1x128xf32> to vector<8x128xf32>
    %654 = arith.addf %652, %653 : vector<8x128xf32>
    %cst_189 = arith.constant 5.000000e-01 : f32
    %655 = vector.broadcast %cst_189 : f32 to vector<8x128xf32>
    %656 = arith.mulf %655, %654 : vector<8x128xf32>
    %657 = math.tanh %656 : vector<8x128xf32>
    %cst_190 = arith.constant 5.000000e-01 : f32
    %658 = vector.broadcast %cst_190 : f32 to vector<8x128xf32>
    %659 = arith.mulf %658, %657 : vector<8x128xf32>
    %cst_191 = arith.constant 5.000000e-01 : f32
    %660 = vector.broadcast %cst_191 : f32 to vector<8x128xf32>
    %661 = arith.addf %659, %660 : vector<8x128xf32>
    %662 = math.tanh %654 : vector<8x128xf32>
    %663 = vector.extract_strided_slice %661 {offsets = [0, 0], sizes = [8, 32], strides = [1, 1]} : vector<8x128xf32> to vector<8x32xf32>
    %664 = vector.extract_strided_slice %661 {offsets = [0, 32], sizes = [8, 32], strides = [1, 1]} : vector<8x128xf32> to vector<8x32xf32>
    %665 = vector.extract_strided_slice %662 {offsets = [0, 64], sizes = [8, 32], strides = [1, 1]} : vector<8x128xf32> to vector<8x32xf32>
    %666 = vector.extract_strided_slice %661 {offsets = [0, 96], sizes = [8, 32], strides = [1, 1]} : vector<8x128xf32> to vector<8x32xf32>
    %667 = arith.mulf %664, %626 : vector<8x32xf32>
    %668 = arith.mulf %663, %665 : vector<8x32xf32>
    %669 = arith.addf %667, %668 : vector<8x32xf32>
    %670 = math.tanh %669 : vector<8x32xf32>
    %671 = arith.mulf %666, %670 : vector<8x32xf32>
    %c80_192 = arith.constant 80 : index
    %c0_193 = arith.constant 0 : index
    %672 = vector.load %arg13[%c80_192, %c0_193] : memref<160x32xf32, #tpu.memory_space<vmem>>, vector<8x32xf32>
    tpu.vector_store %arg13[%c80_192, %c0_193], %671 {strides = array<i32>} : memref<160x32xf32, #tpu.memory_space<vmem>>, vector<8x32xf32>,
    %c128 = arith.constant 128 : index
    %c0_194 = arith.constant 0 : index
    %673 = vector.load %arg12[%c128, %c0_194] : memref<192x128xf32, #tpu.memory_space<vmem>>, vector<8x128xf32>
    %cst_195 = arith.constant dense<0.000000e+00> : vector<8x128xf32>
    %674 = tpu.matmul %649, %2, %cst_195 {dimension_numbers = #tpu.dot_dimension_numbers<[1], [0], [0], [1], [0, 0, 1, 1], [], []>} : vector<8x32xf32>, vector<32x128xf32>, vector<8x128xf32> -> vector<8x128xf32>
    %675 = arith.addf %673, %674 : vector<8x128xf32>
    %cst_196 = arith.constant 5.000000e-01 : f32
    %676 = vector.broadcast %cst_196 : f32 to vector<8x128xf32>
    %677 = arith.mulf %676, %675 : vector<8x128xf32>
    %678 = math.tanh %677 : vector<8x128xf32>
    %cst_197 = arith.constant 5.000000e-01 : f32
    %679 = vector.broadcast %cst_197 : f32 to vector<8x128xf32>
    %680 = arith.mulf %679, %678 : vector<8x128xf32>
    %cst_198 = arith.constant 5.000000e-01 : f32
    %681 = vector.broadcast %cst_198 : f32 to vector<8x128xf32>
    %682 = arith.addf %680, %681 : vector<8x128xf32>
    %683 = math.tanh %675 : vector<8x128xf32>
    %684 = vector.extract_strided_slice %682 {offsets = [0, 0], sizes = [8, 32], strides = [1, 1]} : vector<8x128xf32> to vector<8x32xf32>
    %685 = vector.extract_strided_slice %682 {offsets = [0, 32], sizes = [8, 32], strides = [1, 1]} : vector<8x128xf32> to vector<8x32xf32>
    %686 = vector.extract_strided_slice %683 {offsets = [0, 64], sizes = [8, 32], strides = [1, 1]} : vector<8x128xf32> to vector<8x32xf32>
    %687 = vector.extract_strided_slice %682 {offsets = [0, 96], sizes = [8, 32], strides = [1, 1]} : vector<8x128xf32> to vector<8x32xf32>
    %688 = arith.mulf %685, %647 : vector<8x32xf32>
    %689 = arith.mulf %684, %686 : vector<8x32xf32>
    %690 = arith.addf %688, %689 : vector<8x32xf32>
    %691 = math.tanh %690 : vector<8x32xf32>
    %692 = arith.mulf %687, %691 : vector<8x32xf32>
    %cst_199 = arith.constant dense<0.000000e+00> : vector<8x128xf32>
    %693 = tpu.matmul %649, %1, %cst_199 {dimension_numbers = #tpu.dot_dimension_numbers<[1], [0], [0], [1], [0, 0, 1, 1], [], []>} : vector<8x32xf32>, vector<32x128xf32>, vector<8x128xf32> -> vector<8x128xf32>
    %cst_200 = arith.constant dense<0.000000e+00> : vector<8x128xf32>
    %694 = tpu.matmul %671, %3, %cst_200 {dimension_numbers = #tpu.dot_dimension_numbers<[1], [0], [0], [1], [0, 0, 1, 1], [], []>} : vector<8x32xf32>, vector<32x128xf32>, vector<8x128xf32> -> vector<8x128xf32>
    %695 = arith.addf %693, %694 : vector<8x128xf32>
    %696 = vector.broadcast %5 : vector<1x128xf32> to vector<8x128xf32>
    %697 = arith.addf %695, %696 : vector<8x128xf32>
    %cst_201 = arith.constant 5.000000e-01 : f32
    %698 = vector.broadcast %cst_201 : f32 to vector<8x128xf32>
    %699 = arith.mulf %698, %697 : vector<8x128xf32>
    %700 = math.tanh %699 : vector<8x128xf32>
    %cst_202 = arith.constant 5.000000e-01 : f32
    %701 = vector.broadcast %cst_202 : f32 to vector<8x128xf32>
    %702 = arith.mulf %701, %700 : vector<8x128xf32>
    %cst_203 = arith.constant 5.000000e-01 : f32
    %703 = vector.broadcast %cst_203 : f32 to vector<8x128xf32>
    %704 = arith.addf %702, %703 : vector<8x128xf32>
    %705 = math.tanh %697 : vector<8x128xf32>
    %706 = vector.extract_strided_slice %704 {offsets = [0, 0], sizes = [8, 32], strides = [1, 1]} : vector<8x128xf32> to vector<8x32xf32>
    %707 = vector.extract_strided_slice %704 {offsets = [0, 32], sizes = [8, 32], strides = [1, 1]} : vector<8x128xf32> to vector<8x32xf32>
    %708 = vector.extract_strided_slice %705 {offsets = [0, 64], sizes = [8, 32], strides = [1, 1]} : vector<8x128xf32> to vector<8x32xf32>
    %709 = vector.extract_strided_slice %704 {offsets = [0, 96], sizes = [8, 32], strides = [1, 1]} : vector<8x128xf32> to vector<8x32xf32>
    %710 = arith.mulf %707, %669 : vector<8x32xf32>
    %711 = arith.mulf %706, %708 : vector<8x32xf32>
    %712 = arith.addf %710, %711 : vector<8x32xf32>
    %713 = math.tanh %712 : vector<8x32xf32>
    %714 = arith.mulf %709, %713 : vector<8x32xf32>
    %c88_204 = arith.constant 88 : index
    %c0_205 = arith.constant 0 : index
    %715 = vector.load %arg13[%c88_204, %c0_205] : memref<160x32xf32, #tpu.memory_space<vmem>>, vector<8x32xf32>
    tpu.vector_store %arg13[%c88_204, %c0_205], %714 {strides = array<i32>} : memref<160x32xf32, #tpu.memory_space<vmem>>, vector<8x32xf32>,
    %c136 = arith.constant 136 : index
    %c0_206 = arith.constant 0 : index
    %716 = vector.load %arg12[%c136, %c0_206] : memref<192x128xf32, #tpu.memory_space<vmem>>, vector<8x128xf32>
    %cst_207 = arith.constant dense<0.000000e+00> : vector<8x128xf32>
    %717 = tpu.matmul %692, %2, %cst_207 {dimension_numbers = #tpu.dot_dimension_numbers<[1], [0], [0], [1], [0, 0, 1, 1], [], []>} : vector<8x32xf32>, vector<32x128xf32>, vector<8x128xf32> -> vector<8x128xf32>
    %718 = arith.addf %716, %717 : vector<8x128xf32>
    %cst_208 = arith.constant 5.000000e-01 : f32
    %719 = vector.broadcast %cst_208 : f32 to vector<8x128xf32>
    %720 = arith.mulf %719, %718 : vector<8x128xf32>
    %721 = math.tanh %720 : vector<8x128xf32>
    %cst_209 = arith.constant 5.000000e-01 : f32
    %722 = vector.broadcast %cst_209 : f32 to vector<8x128xf32>
    %723 = arith.mulf %722, %721 : vector<8x128xf32>
    %cst_210 = arith.constant 5.000000e-01 : f32
    %724 = vector.broadcast %cst_210 : f32 to vector<8x128xf32>
    %725 = arith.addf %723, %724 : vector<8x128xf32>
    %726 = math.tanh %718 : vector<8x128xf32>
    %727 = vector.extract_strided_slice %725 {offsets = [0, 0], sizes = [8, 32], strides = [1, 1]} : vector<8x128xf32> to vector<8x32xf32>
    %728 = vector.extract_strided_slice %725 {offsets = [0, 32], sizes = [8, 32], strides = [1, 1]} : vector<8x128xf32> to vector<8x32xf32>
    %729 = vector.extract_strided_slice %726 {offsets = [0, 64], sizes = [8, 32], strides = [1, 1]} : vector<8x128xf32> to vector<8x32xf32>
    %730 = vector.extract_strided_slice %725 {offsets = [0, 96], sizes = [8, 32], strides = [1, 1]} : vector<8x128xf32> to vector<8x32xf32>
    %731 = arith.mulf %728, %690 : vector<8x32xf32>
    %732 = arith.mulf %727, %729 : vector<8x32xf32>
    %733 = arith.addf %731, %732 : vector<8x32xf32>
    %734 = math.tanh %733 : vector<8x32xf32>
    %735 = arith.mulf %730, %734 : vector<8x32xf32>
    %cst_211 = arith.constant dense<0.000000e+00> : vector<8x128xf32>
    %736 = tpu.matmul %692, %1, %cst_211 {dimension_numbers = #tpu.dot_dimension_numbers<[1], [0], [0], [1], [0, 0, 1, 1], [], []>} : vector<8x32xf32>, vector<32x128xf32>, vector<8x128xf32> -> vector<8x128xf32>
    %cst_212 = arith.constant dense<0.000000e+00> : vector<8x128xf32>
    %737 = tpu.matmul %714, %3, %cst_212 {dimension_numbers = #tpu.dot_dimension_numbers<[1], [0], [0], [1], [0, 0, 1, 1], [], []>} : vector<8x32xf32>, vector<32x128xf32>, vector<8x128xf32> -> vector<8x128xf32>
    %738 = arith.addf %736, %737 : vector<8x128xf32>
    %739 = vector.broadcast %5 : vector<1x128xf32> to vector<8x128xf32>
    %740 = arith.addf %738, %739 : vector<8x128xf32>
    %cst_213 = arith.constant 5.000000e-01 : f32
    %741 = vector.broadcast %cst_213 : f32 to vector<8x128xf32>
    %742 = arith.mulf %741, %740 : vector<8x128xf32>
    %743 = math.tanh %742 : vector<8x128xf32>
    %cst_214 = arith.constant 5.000000e-01 : f32
    %744 = vector.broadcast %cst_214 : f32 to vector<8x128xf32>
    %745 = arith.mulf %744, %743 : vector<8x128xf32>
    %cst_215 = arith.constant 5.000000e-01 : f32
    %746 = vector.broadcast %cst_215 : f32 to vector<8x128xf32>
    %747 = arith.addf %745, %746 : vector<8x128xf32>
    %748 = math.tanh %740 : vector<8x128xf32>
    %749 = vector.extract_strided_slice %747 {offsets = [0, 0], sizes = [8, 32], strides = [1, 1]} : vector<8x128xf32> to vector<8x32xf32>
    %750 = vector.extract_strided_slice %747 {offsets = [0, 32], sizes = [8, 32], strides = [1, 1]} : vector<8x128xf32> to vector<8x32xf32>
    %751 = vector.extract_strided_slice %748 {offsets = [0, 64], sizes = [8, 32], strides = [1, 1]} : vector<8x128xf32> to vector<8x32xf32>
    %752 = vector.extract_strided_slice %747 {offsets = [0, 96], sizes = [8, 32], strides = [1, 1]} : vector<8x128xf32> to vector<8x32xf32>
    %753 = arith.mulf %750, %712 : vector<8x32xf32>
    %754 = arith.mulf %749, %751 : vector<8x32xf32>
    %755 = arith.addf %753, %754 : vector<8x32xf32>
    %756 = math.tanh %755 : vector<8x32xf32>
    %757 = arith.mulf %752, %756 : vector<8x32xf32>
    %c96_216 = arith.constant 96 : index
    %c0_217 = arith.constant 0 : index
    %758 = vector.load %arg13[%c96_216, %c0_217] : memref<160x32xf32, #tpu.memory_space<vmem>>, vector<8x32xf32>
    tpu.vector_store %arg13[%c96_216, %c0_217], %757 {strides = array<i32>} : memref<160x32xf32, #tpu.memory_space<vmem>>, vector<8x32xf32>,
    %c144 = arith.constant 144 : index
    %c0_218 = arith.constant 0 : index
    %759 = vector.load %arg12[%c144, %c0_218] : memref<192x128xf32, #tpu.memory_space<vmem>>, vector<8x128xf32>
    %cst_219 = arith.constant dense<0.000000e+00> : vector<8x128xf32>
    %760 = tpu.matmul %735, %2, %cst_219 {dimension_numbers = #tpu.dot_dimension_numbers<[1], [0], [0], [1], [0, 0, 1, 1], [], []>} : vector<8x32xf32>, vector<32x128xf32>, vector<8x128xf32> -> vector<8x128xf32>
    %761 = arith.addf %759, %760 : vector<8x128xf32>
    %cst_220 = arith.constant 5.000000e-01 : f32
    %762 = vector.broadcast %cst_220 : f32 to vector<8x128xf32>
    %763 = arith.mulf %762, %761 : vector<8x128xf32>
    %764 = math.tanh %763 : vector<8x128xf32>
    %cst_221 = arith.constant 5.000000e-01 : f32
    %765 = vector.broadcast %cst_221 : f32 to vector<8x128xf32>
    %766 = arith.mulf %765, %764 : vector<8x128xf32>
    %cst_222 = arith.constant 5.000000e-01 : f32
    %767 = vector.broadcast %cst_222 : f32 to vector<8x128xf32>
    %768 = arith.addf %766, %767 : vector<8x128xf32>
    %769 = math.tanh %761 : vector<8x128xf32>
    %770 = vector.extract_strided_slice %768 {offsets = [0, 0], sizes = [8, 32], strides = [1, 1]} : vector<8x128xf32> to vector<8x32xf32>
    %771 = vector.extract_strided_slice %768 {offsets = [0, 32], sizes = [8, 32], strides = [1, 1]} : vector<8x128xf32> to vector<8x32xf32>
    %772 = vector.extract_strided_slice %769 {offsets = [0, 64], sizes = [8, 32], strides = [1, 1]} : vector<8x128xf32> to vector<8x32xf32>
    %773 = vector.extract_strided_slice %768 {offsets = [0, 96], sizes = [8, 32], strides = [1, 1]} : vector<8x128xf32> to vector<8x32xf32>
    %774 = arith.mulf %771, %733 : vector<8x32xf32>
    %775 = arith.mulf %770, %772 : vector<8x32xf32>
    %776 = arith.addf %774, %775 : vector<8x32xf32>
    %777 = math.tanh %776 : vector<8x32xf32>
    %778 = arith.mulf %773, %777 : vector<8x32xf32>
    %cst_223 = arith.constant dense<0.000000e+00> : vector<8x128xf32>
    %779 = tpu.matmul %735, %1, %cst_223 {dimension_numbers = #tpu.dot_dimension_numbers<[1], [0], [0], [1], [0, 0, 1, 1], [], []>} : vector<8x32xf32>, vector<32x128xf32>, vector<8x128xf32> -> vector<8x128xf32>
    %cst_224 = arith.constant dense<0.000000e+00> : vector<8x128xf32>
    %780 = tpu.matmul %757, %3, %cst_224 {dimension_numbers = #tpu.dot_dimension_numbers<[1], [0], [0], [1], [0, 0, 1, 1], [], []>} : vector<8x32xf32>, vector<32x128xf32>, vector<8x128xf32> -> vector<8x128xf32>
    %781 = arith.addf %779, %780 : vector<8x128xf32>
    %782 = vector.broadcast %5 : vector<1x128xf32> to vector<8x128xf32>
    %783 = arith.addf %781, %782 : vector<8x128xf32>
    %cst_225 = arith.constant 5.000000e-01 : f32
    %784 = vector.broadcast %cst_225 : f32 to vector<8x128xf32>
    %785 = arith.mulf %784, %783 : vector<8x128xf32>
    %786 = math.tanh %785 : vector<8x128xf32>
    %cst_226 = arith.constant 5.000000e-01 : f32
    %787 = vector.broadcast %cst_226 : f32 to vector<8x128xf32>
    %788 = arith.mulf %787, %786 : vector<8x128xf32>
    %cst_227 = arith.constant 5.000000e-01 : f32
    %789 = vector.broadcast %cst_227 : f32 to vector<8x128xf32>
    %790 = arith.addf %788, %789 : vector<8x128xf32>
    %791 = math.tanh %783 : vector<8x128xf32>
    %792 = vector.extract_strided_slice %790 {offsets = [0, 0], sizes = [8, 32], strides = [1, 1]} : vector<8x128xf32> to vector<8x32xf32>
    %793 = vector.extract_strided_slice %790 {offsets = [0, 32], sizes = [8, 32], strides = [1, 1]} : vector<8x128xf32> to vector<8x32xf32>
    %794 = vector.extract_strided_slice %791 {offsets = [0, 64], sizes = [8, 32], strides = [1, 1]} : vector<8x128xf32> to vector<8x32xf32>
    %795 = vector.extract_strided_slice %790 {offsets = [0, 96], sizes = [8, 32], strides = [1, 1]} : vector<8x128xf32> to vector<8x32xf32>
    %796 = arith.mulf %793, %755 : vector<8x32xf32>
    %797 = arith.mulf %792, %794 : vector<8x32xf32>
    %798 = arith.addf %796, %797 : vector<8x32xf32>
    %799 = math.tanh %798 : vector<8x32xf32>
    %800 = arith.mulf %795, %799 : vector<8x32xf32>
    %c104_228 = arith.constant 104 : index
    %c0_229 = arith.constant 0 : index
    %801 = vector.load %arg13[%c104_228, %c0_229] : memref<160x32xf32, #tpu.memory_space<vmem>>, vector<8x32xf32>
    tpu.vector_store %arg13[%c104_228, %c0_229], %800 {strides = array<i32>} : memref<160x32xf32, #tpu.memory_space<vmem>>, vector<8x32xf32>,
    %c152 = arith.constant 152 : index
    %c0_230 = arith.constant 0 : index
    %802 = vector.load %arg12[%c152, %c0_230] : memref<192x128xf32, #tpu.memory_space<vmem>>, vector<8x128xf32>
    %cst_231 = arith.constant dense<0.000000e+00> : vector<8x128xf32>
    %803 = tpu.matmul %778, %2, %cst_231 {dimension_numbers = #tpu.dot_dimension_numbers<[1], [0], [0], [1], [0, 0, 1, 1], [], []>} : vector<8x32xf32>, vector<32x128xf32>, vector<8x128xf32> -> vector<8x128xf32>
    %804 = arith.addf %802, %803 : vector<8x128xf32>
    %cst_232 = arith.constant 5.000000e-01 : f32
    %805 = vector.broadcast %cst_232 : f32 to vector<8x128xf32>
    %806 = arith.mulf %805, %804 : vector<8x128xf32>
    %807 = math.tanh %806 : vector<8x128xf32>
    %cst_233 = arith.constant 5.000000e-01 : f32
    %808 = vector.broadcast %cst_233 : f32 to vector<8x128xf32>
    %809 = arith.mulf %808, %807 : vector<8x128xf32>
    %cst_234 = arith.constant 5.000000e-01 : f32
    %810 = vector.broadcast %cst_234 : f32 to vector<8x128xf32>
    %811 = arith.addf %809, %810 : vector<8x128xf32>
    %812 = math.tanh %804 : vector<8x128xf32>
    %813 = vector.extract_strided_slice %811 {offsets = [0, 0], sizes = [8, 32], strides = [1, 1]} : vector<8x128xf32> to vector<8x32xf32>
    %814 = vector.extract_strided_slice %811 {offsets = [0, 32], sizes = [8, 32], strides = [1, 1]} : vector<8x128xf32> to vector<8x32xf32>
    %815 = vector.extract_strided_slice %812 {offsets = [0, 64], sizes = [8, 32], strides = [1, 1]} : vector<8x128xf32> to vector<8x32xf32>
    %816 = vector.extract_strided_slice %811 {offsets = [0, 96], sizes = [8, 32], strides = [1, 1]} : vector<8x128xf32> to vector<8x32xf32>
    %817 = arith.mulf %814, %776 : vector<8x32xf32>
    %818 = arith.mulf %813, %815 : vector<8x32xf32>
    %819 = arith.addf %817, %818 : vector<8x32xf32>
    %820 = math.tanh %819 : vector<8x32xf32>
    %821 = arith.mulf %816, %820 : vector<8x32xf32>
    %cst_235 = arith.constant dense<0.000000e+00> : vector<8x128xf32>
    %822 = tpu.matmul %778, %1, %cst_235 {dimension_numbers = #tpu.dot_dimension_numbers<[1], [0], [0], [1], [0, 0, 1, 1], [], []>} : vector<8x32xf32>, vector<32x128xf32>, vector<8x128xf32> -> vector<8x128xf32>
    %cst_236 = arith.constant dense<0.000000e+00> : vector<8x128xf32>
    %823 = tpu.matmul %800, %3, %cst_236 {dimension_numbers = #tpu.dot_dimension_numbers<[1], [0], [0], [1], [0, 0, 1, 1], [], []>} : vector<8x32xf32>, vector<32x128xf32>, vector<8x128xf32> -> vector<8x128xf32>
    %824 = arith.addf %822, %823 : vector<8x128xf32>
    %825 = vector.broadcast %5 : vector<1x128xf32> to vector<8x128xf32>
    %826 = arith.addf %824, %825 : vector<8x128xf32>
    %cst_237 = arith.constant 5.000000e-01 : f32
    %827 = vector.broadcast %cst_237 : f32 to vector<8x128xf32>
    %828 = arith.mulf %827, %826 : vector<8x128xf32>
    %829 = math.tanh %828 : vector<8x128xf32>
    %cst_238 = arith.constant 5.000000e-01 : f32
    %830 = vector.broadcast %cst_238 : f32 to vector<8x128xf32>
    %831 = arith.mulf %830, %829 : vector<8x128xf32>
    %cst_239 = arith.constant 5.000000e-01 : f32
    %832 = vector.broadcast %cst_239 : f32 to vector<8x128xf32>
    %833 = arith.addf %831, %832 : vector<8x128xf32>
    %834 = math.tanh %826 : vector<8x128xf32>
    %835 = vector.extract_strided_slice %833 {offsets = [0, 0], sizes = [8, 32], strides = [1, 1]} : vector<8x128xf32> to vector<8x32xf32>
    %836 = vector.extract_strided_slice %833 {offsets = [0, 32], sizes = [8, 32], strides = [1, 1]} : vector<8x128xf32> to vector<8x32xf32>
    %837 = vector.extract_strided_slice %834 {offsets = [0, 64], sizes = [8, 32], strides = [1, 1]} : vector<8x128xf32> to vector<8x32xf32>
    %838 = vector.extract_strided_slice %833 {offsets = [0, 96], sizes = [8, 32], strides = [1, 1]} : vector<8x128xf32> to vector<8x32xf32>
    %839 = arith.mulf %836, %798 : vector<8x32xf32>
    %840 = arith.mulf %835, %837 : vector<8x32xf32>
    %841 = arith.addf %839, %840 : vector<8x32xf32>
    %842 = math.tanh %841 : vector<8x32xf32>
    %843 = arith.mulf %838, %842 : vector<8x32xf32>
    %c112_240 = arith.constant 112 : index
    %c0_241 = arith.constant 0 : index
    %844 = vector.load %arg13[%c112_240, %c0_241] : memref<160x32xf32, #tpu.memory_space<vmem>>, vector<8x32xf32>
    tpu.vector_store %arg13[%c112_240, %c0_241], %843 {strides = array<i32>} : memref<160x32xf32, #tpu.memory_space<vmem>>, vector<8x32xf32>,
    %c160 = arith.constant 160 : index
    %c0_242 = arith.constant 0 : index
    %845 = vector.load %arg12[%c160, %c0_242] : memref<192x128xf32, #tpu.memory_space<vmem>>, vector<8x128xf32>
    %cst_243 = arith.constant dense<0.000000e+00> : vector<8x128xf32>
    %846 = tpu.matmul %821, %2, %cst_243 {dimension_numbers = #tpu.dot_dimension_numbers<[1], [0], [0], [1], [0, 0, 1, 1], [], []>} : vector<8x32xf32>, vector<32x128xf32>, vector<8x128xf32> -> vector<8x128xf32>
    %847 = arith.addf %845, %846 : vector<8x128xf32>
    %cst_244 = arith.constant 5.000000e-01 : f32
    %848 = vector.broadcast %cst_244 : f32 to vector<8x128xf32>
    %849 = arith.mulf %848, %847 : vector<8x128xf32>
    %850 = math.tanh %849 : vector<8x128xf32>
    %cst_245 = arith.constant 5.000000e-01 : f32
    %851 = vector.broadcast %cst_245 : f32 to vector<8x128xf32>
    %852 = arith.mulf %851, %850 : vector<8x128xf32>
    %cst_246 = arith.constant 5.000000e-01 : f32
    %853 = vector.broadcast %cst_246 : f32 to vector<8x128xf32>
    %854 = arith.addf %852, %853 : vector<8x128xf32>
    %855 = math.tanh %847 : vector<8x128xf32>
    %856 = vector.extract_strided_slice %854 {offsets = [0, 0], sizes = [8, 32], strides = [1, 1]} : vector<8x128xf32> to vector<8x32xf32>
    %857 = vector.extract_strided_slice %854 {offsets = [0, 32], sizes = [8, 32], strides = [1, 1]} : vector<8x128xf32> to vector<8x32xf32>
    %858 = vector.extract_strided_slice %855 {offsets = [0, 64], sizes = [8, 32], strides = [1, 1]} : vector<8x128xf32> to vector<8x32xf32>
    %859 = vector.extract_strided_slice %854 {offsets = [0, 96], sizes = [8, 32], strides = [1, 1]} : vector<8x128xf32> to vector<8x32xf32>
    %860 = arith.mulf %857, %819 : vector<8x32xf32>
    %861 = arith.mulf %856, %858 : vector<8x32xf32>
    %862 = arith.addf %860, %861 : vector<8x32xf32>
    %863 = math.tanh %862 : vector<8x32xf32>
    %864 = arith.mulf %859, %863 : vector<8x32xf32>
    %cst_247 = arith.constant dense<0.000000e+00> : vector<8x128xf32>
    %865 = tpu.matmul %821, %1, %cst_247 {dimension_numbers = #tpu.dot_dimension_numbers<[1], [0], [0], [1], [0, 0, 1, 1], [], []>} : vector<8x32xf32>, vector<32x128xf32>, vector<8x128xf32> -> vector<8x128xf32>
    %cst_248 = arith.constant dense<0.000000e+00> : vector<8x128xf32>
    %866 = tpu.matmul %843, %3, %cst_248 {dimension_numbers = #tpu.dot_dimension_numbers<[1], [0], [0], [1], [0, 0, 1, 1], [], []>} : vector<8x32xf32>, vector<32x128xf32>, vector<8x128xf32> -> vector<8x128xf32>
    %867 = arith.addf %865, %866 : vector<8x128xf32>
    %868 = vector.broadcast %5 : vector<1x128xf32> to vector<8x128xf32>
    %869 = arith.addf %867, %868 : vector<8x128xf32>
    %cst_249 = arith.constant 5.000000e-01 : f32
    %870 = vector.broadcast %cst_249 : f32 to vector<8x128xf32>
    %871 = arith.mulf %870, %869 : vector<8x128xf32>
    %872 = math.tanh %871 : vector<8x128xf32>
    %cst_250 = arith.constant 5.000000e-01 : f32
    %873 = vector.broadcast %cst_250 : f32 to vector<8x128xf32>
    %874 = arith.mulf %873, %872 : vector<8x128xf32>
    %cst_251 = arith.constant 5.000000e-01 : f32
    %875 = vector.broadcast %cst_251 : f32 to vector<8x128xf32>
    %876 = arith.addf %874, %875 : vector<8x128xf32>
    %877 = math.tanh %869 : vector<8x128xf32>
    %878 = vector.extract_strided_slice %876 {offsets = [0, 0], sizes = [8, 32], strides = [1, 1]} : vector<8x128xf32> to vector<8x32xf32>
    %879 = vector.extract_strided_slice %876 {offsets = [0, 32], sizes = [8, 32], strides = [1, 1]} : vector<8x128xf32> to vector<8x32xf32>
    %880 = vector.extract_strided_slice %877 {offsets = [0, 64], sizes = [8, 32], strides = [1, 1]} : vector<8x128xf32> to vector<8x32xf32>
    %881 = vector.extract_strided_slice %876 {offsets = [0, 96], sizes = [8, 32], strides = [1, 1]} : vector<8x128xf32> to vector<8x32xf32>
    %882 = arith.mulf %879, %841 : vector<8x32xf32>
    %883 = arith.mulf %878, %880 : vector<8x32xf32>
    %884 = arith.addf %882, %883 : vector<8x32xf32>
    %885 = math.tanh %884 : vector<8x32xf32>
    %886 = arith.mulf %881, %885 : vector<8x32xf32>
    %c120_252 = arith.constant 120 : index
    %c0_253 = arith.constant 0 : index
    %887 = vector.load %arg13[%c120_252, %c0_253] : memref<160x32xf32, #tpu.memory_space<vmem>>, vector<8x32xf32>
    tpu.vector_store %arg13[%c120_252, %c0_253], %886 {strides = array<i32>} : memref<160x32xf32, #tpu.memory_space<vmem>>, vector<8x32xf32>,
    %c168 = arith.constant 168 : index
    %c0_254 = arith.constant 0 : index
    %888 = vector.load %arg12[%c168, %c0_254] : memref<192x128xf32, #tpu.memory_space<vmem>>, vector<8x128xf32>
    %cst_255 = arith.constant dense<0.000000e+00> : vector<8x128xf32>
    %889 = tpu.matmul %864, %2, %cst_255 {dimension_numbers = #tpu.dot_dimension_numbers<[1], [0], [0], [1], [0, 0, 1, 1], [], []>} : vector<8x32xf32>, vector<32x128xf32>, vector<8x128xf32> -> vector<8x128xf32>
    %890 = arith.addf %888, %889 : vector<8x128xf32>
    %cst_256 = arith.constant 5.000000e-01 : f32
    %891 = vector.broadcast %cst_256 : f32 to vector<8x128xf32>
    %892 = arith.mulf %891, %890 : vector<8x128xf32>
    %893 = math.tanh %892 : vector<8x128xf32>
    %cst_257 = arith.constant 5.000000e-01 : f32
    %894 = vector.broadcast %cst_257 : f32 to vector<8x128xf32>
    %895 = arith.mulf %894, %893 : vector<8x128xf32>
    %cst_258 = arith.constant 5.000000e-01 : f32
    %896 = vector.broadcast %cst_258 : f32 to vector<8x128xf32>
    %897 = arith.addf %895, %896 : vector<8x128xf32>
    %898 = math.tanh %890 : vector<8x128xf32>
    %899 = vector.extract_strided_slice %897 {offsets = [0, 0], sizes = [8, 32], strides = [1, 1]} : vector<8x128xf32> to vector<8x32xf32>
    %900 = vector.extract_strided_slice %897 {offsets = [0, 32], sizes = [8, 32], strides = [1, 1]} : vector<8x128xf32> to vector<8x32xf32>
    %901 = vector.extract_strided_slice %898 {offsets = [0, 64], sizes = [8, 32], strides = [1, 1]} : vector<8x128xf32> to vector<8x32xf32>
    %902 = vector.extract_strided_slice %897 {offsets = [0, 96], sizes = [8, 32], strides = [1, 1]} : vector<8x128xf32> to vector<8x32xf32>
    %903 = arith.mulf %900, %862 : vector<8x32xf32>
    %904 = arith.mulf %899, %901 : vector<8x32xf32>
    %905 = arith.addf %903, %904 : vector<8x32xf32>
    %906 = math.tanh %905 : vector<8x32xf32>
    %907 = arith.mulf %902, %906 : vector<8x32xf32>
    %cst_259 = arith.constant dense<0.000000e+00> : vector<8x128xf32>
    %908 = tpu.matmul %864, %1, %cst_259 {dimension_numbers = #tpu.dot_dimension_numbers<[1], [0], [0], [1], [0, 0, 1, 1], [], []>} : vector<8x32xf32>, vector<32x128xf32>, vector<8x128xf32> -> vector<8x128xf32>
    %cst_260 = arith.constant dense<0.000000e+00> : vector<8x128xf32>
    %909 = tpu.matmul %886, %3, %cst_260 {dimension_numbers = #tpu.dot_dimension_numbers<[1], [0], [0], [1], [0, 0, 1, 1], [], []>} : vector<8x32xf32>, vector<32x128xf32>, vector<8x128xf32> -> vector<8x128xf32>
    %910 = arith.addf %908, %909 : vector<8x128xf32>
    %911 = vector.broadcast %5 : vector<1x128xf32> to vector<8x128xf32>
    %912 = arith.addf %910, %911 : vector<8x128xf32>
    %cst_261 = arith.constant 5.000000e-01 : f32
    %913 = vector.broadcast %cst_261 : f32 to vector<8x128xf32>
    %914 = arith.mulf %913, %912 : vector<8x128xf32>
    %915 = math.tanh %914 : vector<8x128xf32>
    %cst_262 = arith.constant 5.000000e-01 : f32
    %916 = vector.broadcast %cst_262 : f32 to vector<8x128xf32>
    %917 = arith.mulf %916, %915 : vector<8x128xf32>
    %cst_263 = arith.constant 5.000000e-01 : f32
    %918 = vector.broadcast %cst_263 : f32 to vector<8x128xf32>
    %919 = arith.addf %917, %918 : vector<8x128xf32>
    %920 = math.tanh %912 : vector<8x128xf32>
    %921 = vector.extract_strided_slice %919 {offsets = [0, 0], sizes = [8, 32], strides = [1, 1]} : vector<8x128xf32> to vector<8x32xf32>
    %922 = vector.extract_strided_slice %919 {offsets = [0, 32], sizes = [8, 32], strides = [1, 1]} : vector<8x128xf32> to vector<8x32xf32>
    %923 = vector.extract_strided_slice %920 {offsets = [0, 64], sizes = [8, 32], strides = [1, 1]} : vector<8x128xf32> to vector<8x32xf32>
    %924 = vector.extract_strided_slice %919 {offsets = [0, 96], sizes = [8, 32], strides = [1, 1]} : vector<8x128xf32> to vector<8x32xf32>
    %925 = arith.mulf %922, %884 : vector<8x32xf32>
    %926 = arith.mulf %921, %923 : vector<8x32xf32>
    %927 = arith.addf %925, %926 : vector<8x32xf32>
    %928 = math.tanh %927 : vector<8x32xf32>
    %929 = arith.mulf %924, %928 : vector<8x32xf32>
    %c128_264 = arith.constant 128 : index
    %c0_265 = arith.constant 0 : index
    %930 = vector.load %arg13[%c128_264, %c0_265] : memref<160x32xf32, #tpu.memory_space<vmem>>, vector<8x32xf32>
    tpu.vector_store %arg13[%c128_264, %c0_265], %929 {strides = array<i32>} : memref<160x32xf32, #tpu.memory_space<vmem>>, vector<8x32xf32>,
    %c176 = arith.constant 176 : index
    %c0_266 = arith.constant 0 : index
    %931 = vector.load %arg12[%c176, %c0_266] : memref<192x128xf32, #tpu.memory_space<vmem>>, vector<8x128xf32>
    %cst_267 = arith.constant dense<0.000000e+00> : vector<8x128xf32>
    %932 = tpu.matmul %907, %2, %cst_267 {dimension_numbers = #tpu.dot_dimension_numbers<[1], [0], [0], [1], [0, 0, 1, 1], [], []>} : vector<8x32xf32>, vector<32x128xf32>, vector<8x128xf32> -> vector<8x128xf32>
    %933 = arith.addf %931, %932 : vector<8x128xf32>
    %cst_268 = arith.constant 5.000000e-01 : f32
    %934 = vector.broadcast %cst_268 : f32 to vector<8x128xf32>
    %935 = arith.mulf %934, %933 : vector<8x128xf32>
    %936 = math.tanh %935 : vector<8x128xf32>
    %cst_269 = arith.constant 5.000000e-01 : f32
    %937 = vector.broadcast %cst_269 : f32 to vector<8x128xf32>
    %938 = arith.mulf %937, %936 : vector<8x128xf32>
    %cst_270 = arith.constant 5.000000e-01 : f32
    %939 = vector.broadcast %cst_270 : f32 to vector<8x128xf32>
    %940 = arith.addf %938, %939 : vector<8x128xf32>
    %941 = math.tanh %933 : vector<8x128xf32>
    %942 = vector.extract_strided_slice %940 {offsets = [0, 0], sizes = [8, 32], strides = [1, 1]} : vector<8x128xf32> to vector<8x32xf32>
    %943 = vector.extract_strided_slice %940 {offsets = [0, 32], sizes = [8, 32], strides = [1, 1]} : vector<8x128xf32> to vector<8x32xf32>
    %944 = vector.extract_strided_slice %941 {offsets = [0, 64], sizes = [8, 32], strides = [1, 1]} : vector<8x128xf32> to vector<8x32xf32>
    %945 = vector.extract_strided_slice %940 {offsets = [0, 96], sizes = [8, 32], strides = [1, 1]} : vector<8x128xf32> to vector<8x32xf32>
    %946 = arith.mulf %943, %905 : vector<8x32xf32>
    %947 = arith.mulf %942, %944 : vector<8x32xf32>
    %948 = arith.addf %946, %947 : vector<8x32xf32>
    %949 = math.tanh %948 : vector<8x32xf32>
    %950 = arith.mulf %945, %949 : vector<8x32xf32>
    %cst_271 = arith.constant dense<0.000000e+00> : vector<8x128xf32>
    %951 = tpu.matmul %907, %1, %cst_271 {dimension_numbers = #tpu.dot_dimension_numbers<[1], [0], [0], [1], [0, 0, 1, 1], [], []>} : vector<8x32xf32>, vector<32x128xf32>, vector<8x128xf32> -> vector<8x128xf32>
    %cst_272 = arith.constant dense<0.000000e+00> : vector<8x128xf32>
    %952 = tpu.matmul %929, %3, %cst_272 {dimension_numbers = #tpu.dot_dimension_numbers<[1], [0], [0], [1], [0, 0, 1, 1], [], []>} : vector<8x32xf32>, vector<32x128xf32>, vector<8x128xf32> -> vector<8x128xf32>
    %953 = arith.addf %951, %952 : vector<8x128xf32>
    %954 = vector.broadcast %5 : vector<1x128xf32> to vector<8x128xf32>
    %955 = arith.addf %953, %954 : vector<8x128xf32>
    %cst_273 = arith.constant 5.000000e-01 : f32
    %956 = vector.broadcast %cst_273 : f32 to vector<8x128xf32>
    %957 = arith.mulf %956, %955 : vector<8x128xf32>
    %958 = math.tanh %957 : vector<8x128xf32>
    %cst_274 = arith.constant 5.000000e-01 : f32
    %959 = vector.broadcast %cst_274 : f32 to vector<8x128xf32>
    %960 = arith.mulf %959, %958 : vector<8x128xf32>
    %cst_275 = arith.constant 5.000000e-01 : f32
    %961 = vector.broadcast %cst_275 : f32 to vector<8x128xf32>
    %962 = arith.addf %960, %961 : vector<8x128xf32>
    %963 = math.tanh %955 : vector<8x128xf32>
    %964 = vector.extract_strided_slice %962 {offsets = [0, 0], sizes = [8, 32], strides = [1, 1]} : vector<8x128xf32> to vector<8x32xf32>
    %965 = vector.extract_strided_slice %962 {offsets = [0, 32], sizes = [8, 32], strides = [1, 1]} : vector<8x128xf32> to vector<8x32xf32>
    %966 = vector.extract_strided_slice %963 {offsets = [0, 64], sizes = [8, 32], strides = [1, 1]} : vector<8x128xf32> to vector<8x32xf32>
    %967 = vector.extract_strided_slice %962 {offsets = [0, 96], sizes = [8, 32], strides = [1, 1]} : vector<8x128xf32> to vector<8x32xf32>
    %968 = arith.mulf %965, %927 : vector<8x32xf32>
    %969 = arith.mulf %964, %966 : vector<8x32xf32>
    %970 = arith.addf %968, %969 : vector<8x32xf32>
    %971 = math.tanh %970 : vector<8x32xf32>
    %972 = arith.mulf %967, %971 : vector<8x32xf32>
    %c136_276 = arith.constant 136 : index
    %c0_277 = arith.constant 0 : index
    %973 = vector.load %arg13[%c136_276, %c0_277] : memref<160x32xf32, #tpu.memory_space<vmem>>, vector<8x32xf32>
    tpu.vector_store %arg13[%c136_276, %c0_277], %972 {strides = array<i32>} : memref<160x32xf32, #tpu.memory_space<vmem>>, vector<8x32xf32>,
    %c184 = arith.constant 184 : index
    %c0_278 = arith.constant 0 : index
    %974 = vector.load %arg12[%c184, %c0_278] : memref<192x128xf32, #tpu.memory_space<vmem>>, vector<8x128xf32>
    %cst_279 = arith.constant dense<0.000000e+00> : vector<8x128xf32>
    %975 = tpu.matmul %950, %2, %cst_279 {dimension_numbers = #tpu.dot_dimension_numbers<[1], [0], [0], [1], [0, 0, 1, 1], [], []>} : vector<8x32xf32>, vector<32x128xf32>, vector<8x128xf32> -> vector<8x128xf32>
    %976 = arith.addf %974, %975 : vector<8x128xf32>
    %cst_280 = arith.constant 5.000000e-01 : f32
    %977 = vector.broadcast %cst_280 : f32 to vector<8x128xf32>
    %978 = arith.mulf %977, %976 : vector<8x128xf32>
    %979 = math.tanh %978 : vector<8x128xf32>
    %cst_281 = arith.constant 5.000000e-01 : f32
    %980 = vector.broadcast %cst_281 : f32 to vector<8x128xf32>
    %981 = arith.mulf %980, %979 : vector<8x128xf32>
    %cst_282 = arith.constant 5.000000e-01 : f32
    %982 = vector.broadcast %cst_282 : f32 to vector<8x128xf32>
    %983 = arith.addf %981, %982 : vector<8x128xf32>
    %984 = math.tanh %976 : vector<8x128xf32>
    %985 = vector.extract_strided_slice %983 {offsets = [0, 0], sizes = [8, 32], strides = [1, 1]} : vector<8x128xf32> to vector<8x32xf32>
    %986 = vector.extract_strided_slice %983 {offsets = [0, 32], sizes = [8, 32], strides = [1, 1]} : vector<8x128xf32> to vector<8x32xf32>
    %987 = vector.extract_strided_slice %984 {offsets = [0, 64], sizes = [8, 32], strides = [1, 1]} : vector<8x128xf32> to vector<8x32xf32>
    %988 = vector.extract_strided_slice %983 {offsets = [0, 96], sizes = [8, 32], strides = [1, 1]} : vector<8x128xf32> to vector<8x32xf32>
    %989 = arith.mulf %986, %948 : vector<8x32xf32>
    %990 = arith.mulf %985, %987 : vector<8x32xf32>
    %991 = arith.addf %989, %990 : vector<8x32xf32>
    %992 = math.tanh %991 : vector<8x32xf32>
    %993 = arith.mulf %988, %992 : vector<8x32xf32>
    %cst_283 = arith.constant dense<0.000000e+00> : vector<8x128xf32>
    %994 = tpu.matmul %950, %1, %cst_283 {dimension_numbers = #tpu.dot_dimension_numbers<[1], [0], [0], [1], [0, 0, 1, 1], [], []>} : vector<8x32xf32>, vector<32x128xf32>, vector<8x128xf32> -> vector<8x128xf32>
    %cst_284 = arith.constant dense<0.000000e+00> : vector<8x128xf32>
    %995 = tpu.matmul %972, %3, %cst_284 {dimension_numbers = #tpu.dot_dimension_numbers<[1], [0], [0], [1], [0, 0, 1, 1], [], []>} : vector<8x32xf32>, vector<32x128xf32>, vector<8x128xf32> -> vector<8x128xf32>
    %996 = arith.addf %994, %995 : vector<8x128xf32>
    %997 = vector.broadcast %5 : vector<1x128xf32> to vector<8x128xf32>
    %998 = arith.addf %996, %997 : vector<8x128xf32>
    %cst_285 = arith.constant 5.000000e-01 : f32
    %999 = vector.broadcast %cst_285 : f32 to vector<8x128xf32>
    %1000 = arith.mulf %999, %998 : vector<8x128xf32>
    %1001 = math.tanh %1000 : vector<8x128xf32>
    %cst_286 = arith.constant 5.000000e-01 : f32
    %1002 = vector.broadcast %cst_286 : f32 to vector<8x128xf32>
    %1003 = arith.mulf %1002, %1001 : vector<8x128xf32>
    %cst_287 = arith.constant 5.000000e-01 : f32
    %1004 = vector.broadcast %cst_287 : f32 to vector<8x128xf32>
    %1005 = arith.addf %1003, %1004 : vector<8x128xf32>
    %1006 = math.tanh %998 : vector<8x128xf32>
    %1007 = vector.extract_strided_slice %1005 {offsets = [0, 0], sizes = [8, 32], strides = [1, 1]} : vector<8x128xf32> to vector<8x32xf32>
    %1008 = vector.extract_strided_slice %1005 {offsets = [0, 32], sizes = [8, 32], strides = [1, 1]} : vector<8x128xf32> to vector<8x32xf32>
    %1009 = vector.extract_strided_slice %1006 {offsets = [0, 64], sizes = [8, 32], strides = [1, 1]} : vector<8x128xf32> to vector<8x32xf32>
    %1010 = vector.extract_strided_slice %1005 {offsets = [0, 96], sizes = [8, 32], strides = [1, 1]} : vector<8x128xf32> to vector<8x32xf32>
    %1011 = arith.mulf %1008, %970 : vector<8x32xf32>
    %1012 = arith.mulf %1007, %1009 : vector<8x32xf32>
    %1013 = arith.addf %1011, %1012 : vector<8x32xf32>
    %1014 = math.tanh %1013 : vector<8x32xf32>
    %1015 = arith.mulf %1010, %1014 : vector<8x32xf32>
    %c144_288 = arith.constant 144 : index
    %c0_289 = arith.constant 0 : index
    %1016 = vector.load %arg13[%c144_288, %c0_289] : memref<160x32xf32, #tpu.memory_space<vmem>>, vector<8x32xf32>
    tpu.vector_store %arg13[%c144_288, %c0_289], %1015 {strides = array<i32>} : memref<160x32xf32, #tpu.memory_space<vmem>>, vector<8x32xf32>,
    %cst_290 = arith.constant dense<0.000000e+00> : vector<8x128xf32>
    %1017 = tpu.matmul %993, %1, %cst_290 {dimension_numbers = #tpu.dot_dimension_numbers<[1], [0], [0], [1], [0, 0, 1, 1], [], []>} : vector<8x32xf32>, vector<32x128xf32>, vector<8x128xf32> -> vector<8x128xf32>
    %cst_291 = arith.constant dense<0.000000e+00> : vector<8x128xf32>
    %1018 = tpu.matmul %1015, %3, %cst_291 {dimension_numbers = #tpu.dot_dimension_numbers<[1], [0], [0], [1], [0, 0, 1, 1], [], []>} : vector<8x32xf32>, vector<32x128xf32>, vector<8x128xf32> -> vector<8x128xf32>
    %1019 = arith.addf %1017, %1018 : vector<8x128xf32>
    %1020 = vector.broadcast %5 : vector<1x128xf32> to vector<8x128xf32>
    %1021 = arith.addf %1019, %1020 : vector<8x128xf32>
    %cst_292 = arith.constant 5.000000e-01 : f32
    %1022 = vector.broadcast %cst_292 : f32 to vector<8x128xf32>
    %1023 = arith.mulf %1022, %1021 : vector<8x128xf32>
    %1024 = math.tanh %1023 : vector<8x128xf32>
    %cst_293 = arith.constant 5.000000e-01 : f32
    %1025 = vector.broadcast %cst_293 : f32 to vector<8x128xf32>
    %1026 = arith.mulf %1025, %1024 : vector<8x128xf32>
    %cst_294 = arith.constant 5.000000e-01 : f32
    %1027 = vector.broadcast %cst_294 : f32 to vector<8x128xf32>
    %1028 = arith.addf %1026, %1027 : vector<8x128xf32>
    %1029 = math.tanh %1021 : vector<8x128xf32>
    %1030 = vector.extract_strided_slice %1028 {offsets = [0, 0], sizes = [8, 32], strides = [1, 1]} : vector<8x128xf32> to vector<8x32xf32>
    %1031 = vector.extract_strided_slice %1028 {offsets = [0, 32], sizes = [8, 32], strides = [1, 1]} : vector<8x128xf32> to vector<8x32xf32>
    %1032 = vector.extract_strided_slice %1029 {offsets = [0, 64], sizes = [8, 32], strides = [1, 1]} : vector<8x128xf32> to vector<8x32xf32>
    %1033 = vector.extract_strided_slice %1028 {offsets = [0, 96], sizes = [8, 32], strides = [1, 1]} : vector<8x128xf32> to vector<8x32xf32>
    %1034 = arith.mulf %1031, %1013 : vector<8x32xf32>
    %1035 = arith.mulf %1030, %1032 : vector<8x32xf32>
    %1036 = arith.addf %1034, %1035 : vector<8x32xf32>
    %1037 = math.tanh %1036 : vector<8x32xf32>
    %1038 = arith.mulf %1033, %1037 : vector<8x32xf32>
    %c152_295 = arith.constant 152 : index
    %c0_296 = arith.constant 0 : index
    %1039 = vector.load %arg13[%c152_295, %c0_296] : memref<160x32xf32, #tpu.memory_space<vmem>>, vector<8x32xf32>
    tpu.vector_store %arg13[%c152_295, %c0_296], %1038 {strides = array<i32>} : memref<160x32xf32, #tpu.memory_space<vmem>>, vector<8x32xf32>,
    %c0_297 = arith.constant 0 : index
    %c0_298 = arith.constant 0 : index
    %1040 = vector.load %arg11[%c0_297, %c0_298] : memref<8x32xf32, #tpu.memory_space<vmem>>, vector<8x32xf32>
    tpu.vector_store %arg11[%c0_297, %c0_298], %1038 {strides = array<i32>} : memref<8x32xf32, #tpu.memory_space<vmem>>, vector<8x32xf32>,
    %c0_299 = arith.constant 0 : index
    %c0_300 = arith.constant 0 : index
    %1041 = vector.load %arg13[%c0_299, %c0_300] : memref<160x32xf32, #tpu.memory_space<vmem>>, vector<160x32xf32>
    %c0_301 = arith.constant 0 : index
    %c0_302 = arith.constant 0 : index
    %1042 = vector.load %arg8[%c0_301, %c0_302] : memref<32x128xf32, #tpu.memory_space<vmem>>, vector<32x128xf32>
    %cst_303 = arith.constant dense<0.000000e+00> : vector<160x128xf32>
    %1043 = tpu.matmul %1041, %1042, %cst_303 {dimension_numbers = #tpu.dot_dimension_numbers<[1], [0], [0], [1], [0, 0, 1, 1], [], []>} : vector<160x32xf32>, vector<32x128xf32>, vector<160x128xf32> -> vector<160x128xf32>
    %c0_304 = arith.constant 0 : index
    %c0_305 = arith.constant 0 : index
    %1044 = vector.load %arg9[%c0_304, %c0_305] : memref<1x128xf32, #tpu.memory_space<vmem>>, vector<1x128xf32>
    %1045 = vector.broadcast %1044 : vector<1x128xf32> to vector<160x128xf32>
    %1046 = arith.addf %1043, %1045 : vector<160x128xf32>
    %1047 = math.tanh %1046 : vector<160x128xf32>
    %c0_306 = arith.constant 0 : index
    %c0_307 = arith.constant 0 : index
    %1048 = vector.load %arg10[%c0_306, %c0_307] : memref<160x128xf32, #tpu.memory_space<vmem>>, vector<160x128xf32>
    tpu.vector_store %arg10[%c0_306, %c0_307], %1047 {strides = array<i32>} : memref<160x128xf32, #tpu.memory_space<vmem>>, vector<160x128xf32>,
    return
  }
  func.func @transform_0(%arg0: i32) -> (i32, i32) {
    %c0_i32 = arith.constant 0 : i32
    %c0_i32_0 = arith.constant 0 : i32
    %c0_i32_1 = arith.constant 0 : i32
    return %c0_i32, %c0_i32_0 : i32, i32
  }
  func.func @transform_1(%arg0: i32) -> (i32, i32) {
    %c0_i32 = arith.constant 0 : i32
    %c0_i32_0 = arith.constant 0 : i32
    %c0_i32_1 = arith.constant 0 : i32
    return %c0_i32, %c0_i32_0 : i32, i32
  }
  func.func @transform_2(%arg0: i32) -> (i32, i32) {
    %c0_i32 = arith.constant 0 : i32
    %c0_i32_0 = arith.constant 0 : i32
    %c0_i32_1 = arith.constant 0 : i32
    return %c0_i32, %c0_i32_0 : i32, i32
  }
  func.func @transform_3(%arg0: i32) -> (i32, i32) {
    %c0_i32 = arith.constant 0 : i32
    %c0_i32_0 = arith.constant 0 : i32
    %c0_i32_1 = arith.constant 0 : i32
    return %c0_i32, %c0_i32_0 : i32, i32
  }
  func.func @transform_4(%arg0: i32) -> (i32, i32) {
    %c0_i32 = arith.constant 0 : i32
    %c0_i32_0 = arith.constant 0 : i32
    %c0_i32_1 = arith.constant 0 : i32
    return %c0_i32, %c0_i32_0 : i32, i32
  }
  func.func @transform_5(%arg0: i32) -> (i32, i32) {
    %c0_i32 = arith.constant 0 : i32
    %c0_i32_0 = arith.constant 0 : i32
    %c0_i32_1 = arith.constant 0 : i32
    return %c0_i32, %c0_i32_0 : i32, i32
  }
  func.func @transform_6(%arg0: i32) -> (i32, i32) {
    %c0_i32 = arith.constant 0 : i32
    %c0_i32_0 = arith.constant 0 : i32
    %c0_i32_1 = arith.constant 0 : i32
    return %c0_i32, %c0_i32_0 : i32, i32
  }
  func.func @transform_7(%arg0: i32) -> (i32, i32) {
    %c0_i32 = arith.constant 0 : i32
    %c0_i32_0 = arith.constant 0 : i32
    %c0_i32_1 = arith.constant 0 : i32
    return %c0_i32, %c0_i32_0 : i32, i32
  }
  func.func @transform_8(%arg0: i32) -> (i32, i32) {
    %c0_i32 = arith.constant 0 : i32
    %c0_i32_0 = arith.constant 0 : i32
    %c0_i32_1 = arith.constant 0 : i32
    return %c0_i32, %c0_i32_0 : i32, i32
  }
  func.func @transform_9(%arg0: i32) -> (i32, i32) {
    %c0_i32 = arith.constant 0 : i32
    %c0_i32_0 = arith.constant 0 : i32
    %c0_i32_1 = arith.constant 0 : i32
    return %c0_i32, %c0_i32_0 : i32, i32
  }
  func.func @transform_10(%arg0: i32) -> (i32, i32) {
    %c0_i32 = arith.constant 0 : i32
    %c0_i32_0 = arith.constant 0 : i32
    %c0_i32_1 = arith.constant 0 : i32
    return %c0_i32, %c0_i32_0 : i32, i32
  }
}

</mosaic_0001>

<bundles_post_ra>
// kernel: task_lstm_forward.1
= control target key start
LH: loop header
LB: loop body
LE: loop exit
PB: predicated region body
PF: predicated region fallthrough
CT: control target
= control target key end

     0   :  { %vm79_vm0 = vcmask 64512   ;;  %v9297_v7 = vmov 0.0|0.0   ;;  %vm9298_vm1 = vmmov 0   ;;  %v9299_v20 = vmov 0.0   ;;  %s9300_s26 = smov 64   ;;  %s9301_s27 = smov 32   ;;  %s10677_s1 = inlined_call_operand.vmem [shape: f32[8,128], index: 1, kind: input, shape index: {}]   ;;  %s10678_s0 = inlined_call_operand.vmem [shape: f32[192,8], index: 0, kind: input, shape index: {}]   ;;  %s10679_s2 = inlined_call_operand.vmem [shape: f32[32,128], index: 2, kind: input, shape index: {}]   ;;  %s10680_s3 = inlined_call_operand.vmem [shape: f32[1,128], index: 3, kind: input, shape index: {}]   ;;  %s10681_s4 = inlined_call_operand.vmem [shape: f32[32,128], index: 4, kind: input, shape index: {}]   ;;  %s10682_s5 = inlined_call_operand.vmem [shape: f32[32,128], index: 5, kind: input, shape index: {}]   ;;  %s10683_s6 = inlined_call_operand.vmem [shape: f32[1,128], index: 6, kind: input, shape index: {}]   ;;  %s10684_s7 = inlined_call_operand.vmem [shape: f32[32,128], index: 7, kind: input, shape index: {}]   ;;  %s10685_s8 = inlined_call_operand.vmem [shape: f32[1,128], index: 8, kind: input, shape index: {}]   ;;  %s10686_s9 = inlined_call_operand.vmem [shape: f32[160,128], index: 9, kind: output, shape index: {0}]   ;;  %s10687_s10 = inlined_call_operand.vmem [shape: f32[8,32], index: 10, kind: output, shape index: {1}]  }
   0x1   :  { %v34_v0 = vld [vmem:[%s10677_s1] sm:$0xff]  ;;  %v63_v1 = vld [vmem:[%s10678_s0 + $0x70] sm:$0xff]  ;;  %v64_v2 = vld [vmem:[%s10678_s0 + $0x78] sm:$0xff]  ;;  %vm362_vm2 = vcmask 261120  }
   0x2   :  { %8956 = vmatprep.subr.mxu1 %v34_v0  ;;  %7671 = vmatprep.mubr.msk.f32.mxu1 %vm79_vm0, %v63_v1  ;;  %v39_v3 = vld [vmem:[%s10679_s2] sm:$0xff]  ;;  %v40_v4 = vld [vmem:[%s10679_s2 + $0x8] sm:$0xff]  ;;  %v41_v8 = vld [vmem:[%s10679_s2 + $0x10] sm:$0xff] }
   0x3   :  { %v65_v5 = vld [vmem:[%s10678_s0 + $0x80] sm:$0xff]  ;;  %8957 = vmatpush3.msra.mxu1 %v34_v0  ;;  %v9376_v6 = vpack.c.bf16 %v40_v4, %v39_v3  ;;  %7648 = vmatprep.subr.mxu0 %v34_v0  ;;  %v42_v9 = vld [vmem:[%s10679_s2 + $0x18] sm:$0xff]  ;;  %v66_v10 = vld [vmem:[%s10678_s0 + $0x88] sm:$0xff] }
   0x4   :  { %7672 = vmatmul.mubr.msk.f32.vlgmr.msra.gmra.mrb[0].mxu1 %vm79_vm0, %v64_v2  ;;  %8516 = vmatprep.subr.bf16.mxu1 %v9297_v7  ;;  %v9391_v11 = vpack.c.bf16 %v42_v9, %v41_v8  ;;  %v49_v12 = vld [vmem:[%s10678_s0] sm:$0xff]  ;;  %v67_v13 = vld [vmem:[%s10678_s0 + $0x90] sm:$0xff]  ;;  %v50_v14 = vld [vmem:[%s10678_s0 + $0x8] sm:$0xff] }
   0x5   :  { %8518 = vmatpush3.bf16.msra.mxu1 %v9376_v6  ;;  %7674 = vmatprep.mubr.msk.f32.mxu1 %vm79_vm0, %v65_v5  ;;  %v68_v15 = vld [vmem:[%s10678_s0 + $0x98] sm:$0xff]  ;;  %v69_v16 = vld [vmem:[%s10678_s0 + $0xa0] sm:$0xff]  ;;  %v70_v17 = vld [vmem:[%s10678_s0 + $0xa8] sm:$0xff] }
   0x6   :  { %8519 = vmatprep.subr.bf16.mxu1 %v9297_v7  ;;  %7649 = vmatpush3.msra.mxu0 %v34_v0  ;;  %v71_v18 = vld [vmem:[%s10678_s0 + $0xb0] sm:$0xff]  ;;  %v72_v19 = vld [vmem:[%s10678_s0 + $0xb8] sm:$0xff]  ;;  %v9460_v31 = vld [vmem:[%s10680_s3] ss:$0 sm:$0xff] }
   0x7   :  { %7650 = vmatprep.mubr.msk.f32.mxu0 %vm79_vm0, %v49_v12  ;;  %8552 = vmatprep.subr.bf16.mxu0 %v9297_v7  ;;  %v35_v49 = vld [vmem:[%s10681_s4] sm:$0xff]  ;;  %v36_v50 = vld [vmem:[%s10681_s4 + $0x8] sm:$0xff]  ;;  %v37_v53 = vld [vmem:[%s10681_s4 + $0x10] sm:$0xff] }
   0x8   :  { %7675 = vmatmul.mubr.msk.f32.gmra.mrb[2].mxu1 %vm79_vm0, %v66_v10  ;;  %7651 = vmatmul.mubr.msk.f32.vlgmr.msra.gmra.mrb[0].mxu0 %vm79_vm0, %v50_v14  ;;  %v9479_v51 = vpack.c.bf16 %v36_v50, %v35_v49  ;;  %v38_v54 = vld [vmem:[%s10681_s4 + $0x18] sm:$0xff]  ;;  %v43_v57 = vld [vmem:[%s10682_s5] sm:$0xff]  ;;  %v44_v58 = vld [vmem:[%s10682_s5 + $0x8] sm:$0xff] }
   0x9   :  { %7677 = vmatprep.mubr.msk.f32.mxu1 %vm79_vm0, %v67_v13  ;;  %8521 = vmatpush3.bf16.msra.mxu1 %v9391_v11  ;;  %v9489_v56 = vpack.c.bf16 %v38_v54, %v37_v53  ;;  %v9500_v59 = vpack.c.bf16 %v44_v58, %v43_v57  ;;  %v45_v60 = vld [vmem:[%s10682_s5 + $0x10] sm:$0xff]  ;;  %v46_v61 = vld [vmem:[%s10682_s5 + $0x18] sm:$0xff]  ;;  %v9537_v9 = vld [vmem:[%s10683_s6] ss:$0 sm:$0xff] }
   0xa   :  { %8522 = vmatprep.subr.bf16.mxu1 %v9297_v7  ;;  %8554 = vmatpush3.bf16.msra.mxu0 %v9479_v51  ;;  %v9510_v63 = vpack.c.bf16 %v46_v61, %v45_v60  ;;  %v53_v49 = vld [vmem:[%s10678_s0 + $0x20] sm:$0xff]  ;;  %v54_v50 = vld [vmem:[%s10678_s0 + $0x28] sm:$0xff]  ;;  %v56_v53 = vld [vmem:[%s10678_s0 + $0x38] sm:$0xff] }
   0xb   :  { %8555 = vmatprep.subr.bf16.mxu0 %v9297_v7  ;;  %v57_v54 = vld [vmem:[%s10678_s0 + $0x40] sm:$0xff]  ;;  %v58_v57 = vld [vmem:[%s10678_s0 + $0x48] sm:$0xff]  ;;  %v59_v58 = vld [vmem:[%s10678_s0 + $0x50] sm:$0xff] }
   0xc   :  { %7678 = vmatmul.mubr.msk.f32.gmra.mrb[4].mxu1 %vm79_vm0, %v68_v15  ;;  %v60_v60 = vld [vmem:[%s10678_s0 + $0x58] sm:$0xff]  ;;  %v61_v61 = vld [vmem:[%s10678_s0 + $0x60] sm:$0xff] }
   0xd   :  { %7680 = vmatprep.mubr.msk.f32.mxu1 %vm79_vm0, %v69_v16 }
   0xe   :  { %8557 = vmatpush3.bf16.msra.mxu0 %v9489_v56 }
   0xf   :  { %8564 = vmatprep.subr.bf16.mxu0 %v9297_v7 }
  0x10   :  { %7681 = vmatmul.mubr.msk.f32.gmra.mrb[6].mxu1 %vm79_vm0, %v70_v17 }
  0x11   :  { %7683 = vmatprep.mubr.msk.f32.mxu1 %vm79_vm0, %v71_v18 }
  0x14   :  { %7684 = vmatmul.mubr.msk.f32.gmra.mrb[8].mxu1 %vm79_vm0, %v72_v19 }
  0x15   :  { %7694 = vmatprep.mubr.msk.f32.mxu1 %vm9298_vm1, %v9299_v20 }
  0x18   :  { %7695 = vmatmul.mubr.f32.vlgmr.msra.gmra.mrb[10].mxu1 %v9299_v20 }
  0x19   :  { %8524 = vmatpush3.bf16.msra.mxu1 %v9376_v6  ;;  %7705 = vmatprep.mubr.msk.f32.mxu1 %vm9298_vm1, %v9299_v20 }
  0x1a   :  { %8525 = vmatprep.subr.bf16.mxu1 %v9297_v7 }
  0x1d   :  { %8527 = vmatpush3.bf16.msra.mxu1 %v9391_v11 }
  0x1e   :  { %8528 = vmatprep.subr.bf16.mxu1 %v9297_v7 }
  0xd7   :  { %v9439_v21 = vpop.f32.mrb[0].mxu1 }
  0xd8   :  { %v9441_v22 = vpop.f32.mrb[1].mxu1 }
  0xdb   :  { %v9443_v23 = vpop.f32.mrb[2].mxu1  ;;  %v9445_v24 = vpop.f32.mrb[0].mxu0 }
  0xdc   :  { %v9447_v25 = vpop.f32.mrb[3].mxu1  ;;  %v218_v26 = vpop.f32.mrb[1].mxu0  ;;  %v224_v0 = vadd.f32 %v9445_v24, %v9460_v31 }
  0xdd   :  { %v219_v34 = vadd.f32 %v9460_v31, %v218_v26 }
  0xdf   :  { %v9449_v27 = vpop.f32.mrb[4].mxu1 }
  0xe0   :  { %v9451_v28 = vpop.f32.mrb[5].mxu1 }
  0xe3   :  { %v9453_v29 = vpop.f32.mrb[6].mxu1 }
  0xe4   :  { %v9455_v30 = vpop.f32.mrb[7].mxu1 }
  0xe7   :  { %v9462_v32 = vpop.f32.mrb[8].mxu1 }
  0xe8   :  { %v9464_v33 = vpop.f32.mrb[9].mxu1 }
  0xeb   :  { %v432_v35 = vpop.f32.mrb[10].mxu1 }
  0xec   :  { %v436_v36 = vadd.f32 %v432_v35, %v219_v34  ;;  %v7696_v37 = vpop.f32.mrb[11].mxu1 }
  0xee   :  { %8963 = vtanh.f32 %v436_v36  ;;  %v437_v39 = vmul.f32 0.5, %v436_v36 }
  0xf0   :  { %8965 = vtanh.f32 %v437_v39 }
  0xf8   :  { %v8964_v38 = vpop.eup %8963 }
  0xf9   :  { %444 = vrot.lane.b32.xlu0 %v8964_v38, %s9300_s26 }
  0xfa   :  { %v8966_v40 = vpop.eup %8965 }
  0xfb   :  { %v439_v41 = vmul.f32 0.5, %v8966_v40 }
  0xfd   :  { %v440_v42 = vadd.f32 0.5, %v439_v41 }
  0xff   :  { %v442_v45 = vmul.f32 0.0, %v440_v42 }
 0x16b   :  { %v445_v43 = vpop.permute.xlu0 %444 }
 0x16c   :  { %v447_v44 = vmul.f32 %v445_v43, %v440_v42 }
 0x16e   :  { %449 = vrot.lane.b32.xlu0 %v447_v44, %s9301_s27 }
 0x1e0   :  { %v450_v46 = vpop.permute.xlu0 %449 }
 0x1e1   :  { %v9469_v47 = vadd.f32 %v450_v46, %v442_v45 }
 0x1e3   :  { %8967 = vtanh.f32 %v9469_v47 }
 0x1ed   :  { %v8968_v48 = vpop.eup %8967 }
 0x1ee   :  { %455 = vrot.lane.b32.xlu1 %v8968_v48, %s9300_s26  ;;  %v51_v48 = vld [vmem:[%s10678_s0 + $0x10] sm:$0xff] }
 0x1ef   :  { %7653 = vmatprep.mubr.msk.f32.mxu0 %vm79_vm0, %v51_v48 }
 0x260   :  { %v456_v52 = vpop.permute.xlu1 %455 }
 0x261   :  { %v458_v55 = vmul.f32 %v456_v52, %v440_v42  ;;  %v55_v52 = vld [vmem:[%s10678_s0 + $0x30] sm:$0xff] }
 0x263   :  { %461 = vrot.lane.b32.xlu1 %v458_v55, %s9301_s27 }
 0x2d5   :  { %v462_v62 = vpop.permute.xlu1 %461 }
 0x2d6   :  { %7706 = vmatmul.mubr.msk.f32.vlgmr.msra.gmra.mrb[12].mxu1 %vm362_vm2, %v462_v62 }
 0x2d7   :  { %8530 = vmatpush3.bf16.msra.mxu1 %v9500_v59  ;;  %7716 = vmatprep.mubr.msk.f32.mxu1 %vm9298_vm1, %v9299_v20 }
 0x2d8   :  { %8531 = vmatprep.subr.bf16.mxu1 %v9297_v7 }
 0x2db   :  { %8533 = vmatpush3.bf16.msra.mxu1 %v9510_v63 }
 0x2dc   :  { %8534 = vmatprep.subr.bf16.mxu1 %v9297_v7 }
 0x2de   :  { %7717 = vmatmul.mubr.f32.vlgmr.msra.gmra.mrb[14].mxu1 %v9299_v20 }
 0x2df   :  { %8536 = vmatpush3.bf16.msra.mxu1 %v9479_v51  ;;  %7727 = vmatprep.mubr.msk.f32.mxu1 %vm9298_vm1, %v9299_v20 }
 0x2e0   :  { %8537 = vmatprep.subr.bf16.mxu1 %v9297_v7 }
 0x2e3   :  { %8539 = vmatpush3.bf16.msra.mxu1 %v9489_v56 }
 0x2e4   :  { %8540 = vmatprep.subr.bf16.mxu1 %v9297_v7 }
 0x2e6   :  { %7728 = vmatmul.mubr.msk.f32.vlgmr.msra.gmra.mrb[16].mxu1 %vm362_vm2, %v462_v62  ;;  %v62_v62 = vld [vmem:[%s10678_s0 + $0x68] sm:$0xff] }
 0x2e7   :  { %8542 = vmatpush3.bf16.msra.mxu1 %v9376_v6  ;;  %7738 = vmatprep.mubr.msk.f32.mxu1 %vm9298_vm1, %v9299_v20 }
 0x2e8   :  { %8543 = vmatprep.subr.bf16.mxu1 %v9297_v7 }
 0x2eb   :  { %8545 = vmatpush3.bf16.msra.mxu1 %v9391_v11 }
 0x2ec   :  { %8546 = vmatprep.subr.bf16.mxu1 %v9297_v7 }
 0x3a9   :  { %v531_v1 = vpop.f32.mrb[12].mxu1 }
 0x3aa   :  { %v535_v2 = vadd.f32 %v531_v1, %v224_v0  ;;  %v7707_v3 = vpop.f32.mrb[13].mxu1 }
 0x3ac   :  { %8969 = vtanh.f32 %v535_v2  ;;  %v536_v16 = vmul.f32 0.5, %v535_v2 }
 0x3b1   :  { %v624_v4 = vpop.f32.mrb[14].mxu1 }
 0x3b2   :  { %v7718_v5 = vpop.f32.mrb[15].mxu1 }
 0x3b6   :  { %v8970_v8 = vpop.eup %8969 }
 0x3b7   :  { %543 = vrot.lane.b32.xlu0 %v8970_v8, %s9300_s26 }
 0x3b9   :  { %v694_v10 = vpop.f32.mrb[16].mxu1 }
 0x3ba   :  { %v695_v12 = vadd.f32 %v694_v10, %v624_v4  ;;  %v7729_v13 = vpop.f32.mrb[17].mxu1 }
 0x3bc   :  { %v704_v14 = vadd.f32 %v9537_v9, %v695_v12 }
 0x3be   :  { %8971 = vtanh.f32 %v704_v14  ;;  %v705_v19 = vmul.f32 0.5, %v704_v14 }
 0x3bf   :  { %8973 = vtanh.f32 %v536_v16 }
 0x3c0   :  { %8975 = vtanh.f32 %v705_v19 }
 0x3c8   :  { %v8972_v15 = vpop.eup %8971 }
 0x3c9   :  { %712 = vrot.lane.b32.xlu1 %v8972_v15, %s9300_s26  ;;  %v8974_v17 = vpop.eup %8973 }
 0x3ca   :  { %v538_v18 = vmul.f32 0.5, %v8974_v17  ;;  %v8976_v35 = vpop.eup %8975 }
 0x3cb   :  { %v707_v36 = vmul.f32 0.5, %v8976_v35 }
 0x3cc   :  { %v539_v24 = vadd.f32 0.5, %v538_v18 }
 0x3cd   :  { %v708_v37 = vadd.f32 0.5, %v707_v36 }
 0x3ce   :  { %v541_v40 = vmul.f32 %v539_v24, %v9469_v47  ;;  %v52_v47 = vld [vmem:[%s10678_s0 + $0x18] sm:$0xff] }
 0x3cf   :  { %v710_v44 = vmul.f32 0.0, %v708_v37  ;;  %7654 = vmatmul.mubr.msk.f32.gmra.mrb[2].mxu0 %vm79_vm0, %v52_v47 }
 0x3d0   :  { %7656 = vmatprep.mubr.msk.f32.mxu0 %vm79_vm0, %v53_v49 }
 0x3d3   :  { %7657 = vmatmul.mubr.msk.f32.gmra.mrb[4].mxu0 %vm79_vm0, %v54_v50 }
 0x3d4   :  { %7659 = vmatprep.mubr.msk.f32.mxu0 %vm79_vm0, %v55_v52 }
 0x3d7   :  { %7660 = vmatmul.mubr.msk.f32.gmra.mrb[6].mxu0 %vm79_vm0, %v56_v53 }
 0x3d8   :  { %7662 = vmatprep.mubr.msk.f32.mxu0 %vm79_vm0, %v57_v54 }
 0x3db   :  { %7663 = vmatmul.mubr.msk.f32.gmra.mrb[8].mxu0 %vm79_vm0, %v58_v57 }
 0x3dc   :  { %7665 = vmatprep.mubr.msk.f32.mxu0 %vm79_vm0, %v59_v58 }
 0x3df   :  { %7666 = vmatmul.mubr.msk.f32.gmra.mrb[10].mxu0 %vm79_vm0, %v60_v60 }
 0x3e0   :  { %7668 = vmatprep.mubr.msk.f32.mxu0 %vm79_vm0, %v61_v61 }
 0x3e3   :  { %7669 = vmatmul.mubr.msk.f32.gmra.mrb[12].mxu0 %vm79_vm0, %v62_v62 }
 0x3e4   :  { %7760 = vmatprep.mubr.msk.f32.mxu0 %vm9298_vm1, %v9299_v20 }
 0x429   :  { %v544_v26 = vpop.permute.xlu0 %543 }
 0x42a   :  { %v546_v34 = vmul.f32 %v544_v26, %v539_v24 }
 0x42c   :  { %548 = vrot.lane.b32.xlu0 %v546_v34, %s9301_s27 }
 0x43b   :  { %v713_v38 = vpop.permute.xlu1 %712 }
 0x43c   :  { %v715_v39 = vmul.f32 %v713_v38, %v708_v37 }
 0x43e   :  { %717 = vrot.lane.b32.xlu1 %v715_v39, %s9301_s27 }
 0x49e   :  { %v549_v41 = vpop.permute.xlu0 %548 }
 0x49f   :  { %v9544_v42 = vadd.f32 %v549_v41, %v541_v40 }
 0x4a1   :  { %8977 = vtanh.f32 %v9544_v42 }
 0x4a2   :  { %v9604_v4 = vpop.f32.mrb[2].mxu0 }
 0x4a3   :  { %v228_v5 = vpop.f32.mrb[3].mxu0 }
 0x4a4   :  { %v229_v34 = vadd.f32 %v9460_v31, %v228_v5 }
 0x4a6   :  { %v9606_v8 = vpop.f32.mrb[4].mxu0 }
 0x4a7   :  { %v9608_v10 = vpop.f32.mrb[5].mxu0 }
 0x4aa   :  { %v9610_v12 = vpop.f32.mrb[6].mxu0 }
 0x4ab   :  { %v8978_v43 = vpop.eup %8977  ;;  %v9612_v13 = vpop.f32.mrb[7].mxu0 }
 0x4ac   :  { %554 = vrot.lane.b32.xlu0 %v8978_v43, %s9300_s26 }
 0x4ae   :  { %v9616_v15 = vpop.f32.mrb[8].mxu0 }
 0x4af   :  { %v9621_v16 = vpop.f32.mrb[9].mxu0 }
 0x4b0   :  { %v718_v45 = vpop.permute.xlu1 %717 }
 0x4b1   :  { %v9548_v46 = vadd.f32 %v718_v45, %v710_v44 }
 0x4b2   :  { %v9628_v17 = vpop.f32.mrb[10].mxu0 }
 0x4b3   :  { %8979 = vtanh.f32 %v9548_v46  ;;  %v9631_v18 = vpop.f32.mrb[11].mxu0 }
 0x4b6   :  { %v9636_v19 = vpop.f32.mrb[12].mxu0 }
 0x4bd   :  { %v8980_v55 = vpop.eup %8979 }
 0x4be   :  { %723 = vrot.lane.b32.xlu1 %v8980_v55, %s9300_s26 }
 0x51e   :  { %v555_v0 = vpop.permute.xlu0 %554 }
 0x51f   :  { %v557_v1 = vmul.f32 %v555_v0, %v539_v24  ;;  %v9638_v24 = vpop.f32.mrb[13].mxu0 }
 0x521   :  { %729 = vrot.lane.b32.xlu0 %v557_v1, %s9301_s27 }
 0x530   :  { %v724_v2 = vpop.permute.xlu1 %723 }
 0x531   :  { %v726_v3 = vmul.f32 %v724_v2, %v708_v37 }
 0x533   :  { %827 = vrot.lane.b32.xlu1 %v726_v3, %s9301_s27 }
 0x593   :  { %v730_v14 = vpop.permute.xlu0 %729 }
 0x594   :  { %7739 = vmatmul.mubr.msk.f32.vlgmr.msra.gmra.mrb[18].mxu1 %vm362_vm2, %v730_v14  ;;  %7761 = vmatmul.mubr.msk.f32.vlgmr.msra.gmra.mrb[14].mxu0 %vm362_vm2, %v730_v14 }
 0x595   :  { %8548 = vmatpush3.bf16.msra.mxu1 %v9500_v59  ;;  %7749 = vmatprep.mubr.msk.f32.mxu1 %vm9298_vm1, %v9299_v20 }
 0x596   :  { %8549 = vmatprep.subr.bf16.mxu1 %v9297_v7  ;;  %8566 = vmatpush3.bf16.msra.mxu0 %v9500_v59 }
 0x597   :  { %8567 = vmatprep.subr.bf16.mxu0 %v9297_v7  ;;  %7782 = vmatprep.mubr.msk.f32.mxu0 %vm9298_vm1, %v9299_v20 }
 0x599   :  { %8551 = vmatpush3.bf16.msra.mxu1 %v9510_v63 }
 0x59a   :  { %8558 = vmatprep.subr.bf16.mxu1 %v9297_v7  ;;  %8569 = vmatpush3.bf16.msra.mxu0 %v9510_v63 }
 0x59b   :  { %8576 = vmatprep.subr.bf16.mxu0 %v9297_v7 }
 0x5a5   :  { %v828_v26 = vpop.permute.xlu1 %827 }
 0x5a6   :  { %7750 = vmatmul.mubr.msk.f32.vlgmr.msra.gmra.mrb[20].mxu1 %vm362_vm2, %v828_v26 }
 0x5a7   :  { %8560 = vmatpush3.bf16.msra.mxu1 %v9376_v6  ;;  %7771 = vmatprep.mubr.msk.f32.mxu1 %vm9298_vm1, %v9299_v20 }
 0x5a8   :  { %8561 = vmatprep.subr.bf16.mxu1 %v9297_v7 }
 0x5ab   :  { %8563 = vmatpush3.bf16.msra.mxu1 %v9391_v11 }
 0x5ac   :  { %8570 = vmatprep.subr.bf16.mxu1 %v9297_v7 }
 0x667   :  { %v799_v35 = vpop.f32.mrb[18].mxu1  ;;  %v967_v36 = vpop.f32.mrb[14].mxu0 }
 0x668   :  { %v803_v37 = vadd.f32 %v799_v35, %v229_v34  ;;  %v7740_v38 = vpop.f32.mrb[19].mxu1  ;;  %v7762_v39 = vpop.f32.mrb[15].mxu0 }
 0x669   :  { %v234_v39 = vadd.f32 %v9604_v4, %v9460_v31 }
 0x66a   :  { %8981 = vtanh.f32 %v803_v37  ;;  %v804_v47 = vmul.f32 0.5, %v803_v37 }
 0x674   :  { %v8982_v40 = vpop.eup %8981 }
 0x675   :  { %811 = vrot.lane.b32.xlu0 %v8982_v40, %s9300_s26 }
 0x679   :  { %v897_v41 = vpop.f32.mrb[20].mxu1 }
 0x67a   :  { %v968_v43 = vadd.f32 %v967_v36, %v897_v41  ;;  %v7751_v44 = vpop.f32.mrb[21].mxu1 }
 0x67c   :  { %v971_v45 = vadd.f32 %v9537_v9, %v968_v43 }
 0x67e   :  { %8983 = vtanh.f32 %v971_v45  ;;  %v972_v52 = vmul.f32 0.5, %v971_v45 }
 0x67f   :  { %8985 = vtanh.f32 %v804_v47 }
 0x680   :  { %8987 = vtanh.f32 %v972_v52 }
 0x688   :  { %v8984_v48 = vpop.eup %8983 }
 0x689   :  { %979 = vrot.lane.b32.xlu1 %v8984_v48, %s9300_s26  ;;  %v8986_v49 = vpop.eup %8985 }
 0x68a   :  { %v806_v50 = vmul.f32 0.5, %v8986_v49  ;;  %v8988_v57 = vpop.eup %8987 }
 0x68b   :  { %v974_v58 = vmul.f32 0.5, %v8988_v57 }
 0x68c   :  { %v807_v53 = vadd.f32 0.5, %v806_v50 }
 0x68d   :  { %v975_v60 = vadd.f32 0.5, %v974_v58 }
 0x68e   :  { %v809_v0 = vmul.f32 %v807_v53, %v9544_v42 }
 0x68f   :  { %v977_v5 = vmul.f32 %v975_v60, %v9548_v46 }
 0x6e7   :  { %v812_v54 = vpop.permute.xlu0 %811 }
 0x6e8   :  { %v814_v55 = vmul.f32 %v812_v54, %v807_v53 }
 0x6ea   :  { %816 = vrot.lane.b32.xlu0 %v814_v55, %s9301_s27 }
 0x6fb   :  { %v980_v61 = vpop.permute.xlu1 %979 }
 0x6fc   :  { %v982_v62 = vmul.f32 %v980_v61, %v975_v60 }
 0x6fe   :  { %984 = vrot.lane.b32.xlu1 %v982_v62, %s9301_s27 }
 0x75c   :  { %v817_v1 = vpop.permute.xlu0 %816 }
 0x75d   :  { %v9654_v2 = vadd.f32 %v817_v1, %v809_v0 }
 0x75f   :  { %8989 = vtanh.f32 %v9654_v2 }
 0x769   :  { %v8990_v3 = vpop.eup %8989 }
 0x76a   :  { %822 = vrot.lane.b32.xlu0 %v8990_v3, %s9300_s26 }
 0x770   :  { %v985_v14 = vpop.permute.xlu1 %984 }
 0x771   :  { %v9659_v26 = vadd.f32 %v985_v14, %v977_v5 }
 0x773   :  { %8991 = vtanh.f32 %v9659_v26 }
 0x77d   :  { %v8992_v34 = vpop.eup %8991 }
 0x77e   :  { %990 = vrot.lane.b32.xlu1 %v8992_v34, %s9300_s26 }
 0x7dc   :  { %v823_v35 = vpop.permute.xlu0 %822 }
 0x7dd   :  { %v825_v42 = vmul.f32 %v823_v35, %v807_v53 }
 0x7df   :  { %996 = vrot.lane.b32.xlu0 %v825_v42, %s9301_s27 }
 0x7f0   :  { %v991_v36 = vpop.permute.xlu1 %990 }
 0x7f1   :  { %v993_v37 = vmul.f32 %v991_v36, %v975_v60 }
 0x7f3   :  { %1094 = vrot.lane.b32.xlu1 %v993_v37, %s9301_s27 }
 0x851   :  { %v997_v38 = vpop.permute.xlu0 %996 }
 0x852   :  { %7772 = vmatmul.mubr.msk.f32.vlgmr.msra.gmra.mrb[22].mxu1 %vm362_vm2, %v997_v38 }
 0x853   :  { %8572 = vmatpush3.bf16.msra.mxu1 %v9479_v51  ;;  %7793 = vmatprep.mubr.msk.f32.mxu1 %vm9298_vm1, %v9299_v20 }
 0x854   :  { %8573 = vmatprep.subr.bf16.mxu1 %v9297_v7 }
 0x857   :  { %8575 = vmatpush3.bf16.msra.mxu1 %v9489_v56 }
 0x858   :  { %8582 = vmatprep.subr.bf16.mxu1 %v9297_v7 }
 0x85a   :  { %7794 = vmatmul.mubr.msk.f32.vlgmr.msra.gmra.mrb[24].mxu1 %vm362_vm2, %v997_v38 }
 0x85b   :  { %8584 = vmatpush3.bf16.msra.mxu1 %v9500_v59  ;;  %7815 = vmatprep.mubr.msk.f32.mxu1 %vm9298_vm1, %v9299_v20 }
 0x85c   :  { %8585 = vmatprep.subr.bf16.mxu1 %v9297_v7 }
 0x85f   :  { %8587 = vmatpush3.bf16.msra.mxu1 %v9510_v63 }
 0x860   :  { %8594 = vmatprep.subr.bf16.mxu1 %v9297_v7 }
 0x865   :  { %v1095_v46 = vpop.permute.xlu1 %1094 }
 0x866   :  { %7783 = vmatmul.mubr.msk.f32.vlgmr.msra.gmra.mrb[16].mxu0 %vm362_vm2, %v1095_v46 }
 0x867   :  { %8578 = vmatpush3.bf16.msra.mxu0 %v9376_v6  ;;  %7804 = vmatprep.mubr.msk.f32.mxu0 %vm9298_vm1, %v9299_v20 }
 0x868   :  { %8579 = vmatprep.subr.bf16.mxu0 %v9297_v7 }
 0x86b   :  { %8581 = vmatpush3.bf16.msra.mxu0 %v9391_v11 }
 0x86c   :  { %8588 = vmatprep.subr.bf16.mxu0 %v9297_v7 }
 0x925   :  { %v1066_v40 = vpop.f32.mrb[22].mxu1 }
 0x926   :  { %v1070_v41 = vadd.f32 %v1066_v40, %v234_v39  ;;  %v7773_v43 = vpop.f32.mrb[23].mxu1 }
 0x928   :  { %8993 = vtanh.f32 %v1070_v41  ;;  %v1071_v54 = vmul.f32 0.5, %v1070_v41 }
 0x92d   :  { %v1234_v44 = vpop.f32.mrb[24].mxu1 }
 0x92e   :  { %v7795_v45 = vpop.f32.mrb[25].mxu1 }
 0x932   :  { %v8994_v48 = vpop.eup %8993 }
 0x933   :  { %1078 = vrot.lane.b32.xlu0 %v8994_v48, %s9300_s26 }
 0x939   :  { %v1164_v47 = vpop.f32.mrb[16].mxu0 }
 0x93a   :  { %v1235_v49 = vadd.f32 %v1234_v44, %v1164_v47  ;;  %v7784_v50 = vpop.f32.mrb[17].mxu0  ;;  %v239_v44 = vadd.f32 %v9460_v31, %v9608_v10 }
 0x93c   :  { %v1238_v52 = vadd.f32 %v9537_v9, %v1235_v49 }
 0x93e   :  { %8995 = vtanh.f32 %v1238_v52  ;;  %v1239_v58 = vmul.f32 0.5, %v1238_v52 }
 0x93f   :  { %8997 = vtanh.f32 %v1071_v54 }
 0x940   :  { %8999 = vtanh.f32 %v1239_v58 }
 0x948   :  { %v8996_v53 = vpop.eup %8995 }
 0x949   :  { %1246 = vrot.lane.b32.xlu1 %v8996_v53, %s9300_s26  ;;  %v8998_v4 = vpop.eup %8997 }
 0x94a   :  { %v1073_v55 = vmul.f32 0.5, %v8998_v4  ;;  %v9000_v62 = vpop.eup %8999 }
 0x94b   :  { %v1241_v0 = vmul.f32 0.5, %v9000_v62 }
 0x94c   :  { %v1074_v57 = vadd.f32 0.5, %v1073_v55 }
 0x94d   :  { %v1242_v1 = vadd.f32 0.5, %v1241_v0 }
 0x94e   :  { %v1076_v14 = vmul.f32 %v1074_v57, %v9654_v2 }
 0x94f   :  { %v1244_v36 = vmul.f32 %v1242_v1, %v9659_v26 }
 0x9a5   :  { %v1079_v60 = vpop.permute.xlu0 %1078 }
 0x9a6   :  { %v1081_v61 = vmul.f32 %v1079_v60, %v1074_v57 }
 0x9a8   :  { %1083 = vrot.lane.b32.xlu0 %v1081_v61, %s9301_s27 }
 0x9bb   :  { %v1247_v3 = vpop.permute.xlu1 %1246 }
 0x9bc   :  { %v1249_v5 = vmul.f32 %v1247_v3, %v1242_v1 }
 0x9be   :  { %1251 = vrot.lane.b32.xlu1 %v1249_v5, %s9301_s27 }
 0xa1a   :  { %v1084_v34 = vpop.permute.xlu0 %1083 }
 0xa1b   :  { %v9694_v35 = vadd.f32 %v1084_v34, %v1076_v14 }
 0xa1d   :  { %9001 = vtanh.f32 %v9694_v35 }
 0xa27   :  { %v9002_v42 = vpop.eup %9001 }
 0xa28   :  { %1089 = vrot.lane.b32.xlu0 %v9002_v42, %s9300_s26 }
 0xa30   :  { %v1252_v37 = vpop.permute.xlu1 %1251 }
 0xa31   :  { %v9699_v38 = vadd.f32 %v1252_v37, %v1244_v36 }
 0xa33   :  { %9003 = vtanh.f32 %v9699_v38 }
 0xa3d   :  { %v9004_v46 = vpop.eup %9003 }
 0xa3e   :  { %1257 = vrot.lane.b32.xlu1 %v9004_v46, %s9300_s26 }
 0xa9a   :  { %v1090_v39 = vpop.permute.xlu0 %1089 }
 0xa9b   :  { %v1092_v2 = vmul.f32 %v1090_v39, %v1074_v57 }
 0xa9d   :  { %1263 = vrot.lane.b32.xlu0 %v1092_v2, %s9301_s27 }
 0xab0   :  { %v1258_v40 = vpop.permute.xlu1 %1257 }
 0xab1   :  { %v1260_v41 = vmul.f32 %v1258_v40, %v1242_v1 }
 0xab3   :  { %1361 = vrot.lane.b32.xlu1 %v1260_v41, %s9301_s27 }
 0xb0f   :  { %v1264_v43 = vpop.permute.xlu0 %1263 }
 0xb10   :  { %7805 = vmatmul.mubr.msk.f32.vlgmr.msra.gmra.mrb[18].mxu0 %vm362_vm2, %v1264_v43 }
 0xb11   :  { %8590 = vmatpush3.bf16.msra.mxu0 %v9479_v51  ;;  %7826 = vmatprep.mubr.msk.f32.mxu0 %vm9298_vm1, %v9299_v20 }
 0xb12   :  { %8591 = vmatprep.subr.bf16.mxu0 %v9297_v7 }
 0xb15   :  { %8593 = vmatpush3.bf16.msra.mxu0 %v9489_v56 }
 0xb16   :  { %8600 = vmatprep.subr.bf16.mxu0 %v9297_v7 }
 0xb18   :  { %7827 = vmatmul.mubr.msk.f32.vlgmr.msra.gmra.mrb[20].mxu0 %vm362_vm2, %v1264_v43 }
 0xb19   :  { %8602 = vmatpush3.bf16.msra.mxu0 %v9500_v59  ;;  %7848 = vmatprep.mubr.msk.f32.mxu0 %vm9298_vm1, %v9299_v20 }
 0xb1a   :  { %8603 = vmatprep.subr.bf16.mxu0 %v9297_v7 }
 0xb1d   :  { %8605 = vmatpush3.bf16.msra.mxu0 %v9510_v63 }
 0xb1e   :  { %8612 = vmatprep.subr.bf16.mxu0 %v9297_v7 }
 0xb25   :  { %v1362_v26 = vpop.permute.xlu1 %1361 }
 0xb26   :  { %7816 = vmatmul.mubr.msk.f32.vlgmr.msra.gmra.mrb[26].mxu1 %vm362_vm2, %v1362_v26 }
 0xb27   :  { %8596 = vmatpush3.bf16.msra.mxu1 %v9376_v6  ;;  %7837 = vmatprep.mubr.msk.f32.mxu1 %vm9298_vm1, %v9299_v20 }
 0xb28   :  { %8597 = vmatprep.subr.bf16.mxu1 %v9297_v7 }
 0xb2b   :  { %8599 = vmatpush3.bf16.msra.mxu1 %v9391_v11 }
 0xb2c   :  { %8606 = vmatprep.subr.bf16.mxu1 %v9297_v7 }
 0xbe3   :  { %v1333_v45 = vpop.f32.mrb[18].mxu0 }
 0xbe4   :  { %v1337_v48 = vadd.f32 %v1333_v45, %v239_v44  ;;  %v7806_v47 = vpop.f32.mrb[19].mxu0 }
 0xbe5   :  { %v244_v47 = vadd.f32 %v9606_v8, %v9460_v31 }
 0xbe6   :  { %9005 = vtanh.f32 %v1337_v48  ;;  %v1338_v58 = vmul.f32 0.5, %v1337_v48 }
 0xbeb   :  { %v1501_v49 = vpop.f32.mrb[20].mxu0 }
 0xbec   :  { %v7828_v50 = vpop.f32.mrb[21].mxu0 }
 0xbf0   :  { %v9006_v52 = vpop.eup %9005 }
 0xbf1   :  { %1345 = vrot.lane.b32.xlu0 %v9006_v52, %s9300_s26 }
 0xbf9   :  { %v1431_v53 = vpop.f32.mrb[26].mxu1 }
 0xbfa   :  { %v1502_v54 = vadd.f32 %v1501_v49, %v1431_v53  ;;  %v7817_v4 = vpop.f32.mrb[27].mxu1 }
 0xbfc   :  { %v1505_v55 = vadd.f32 %v9537_v9, %v1502_v54 }
 0xbfe   :  { %9007 = vtanh.f32 %v1505_v55  ;;  %v1506_v1 = vmul.f32 0.5, %v1505_v55 }
 0xbff   :  { %9009 = vtanh.f32 %v1338_v58 }
 0xc00   :  { %9011 = vtanh.f32 %v1506_v1 }
 0xc08   :  { %v9008_v57 = vpop.eup %9007 }
 0xc09   :  { %1513 = vrot.lane.b32.xlu1 %v9008_v57, %s9300_s26  ;;  %v9010_v10 = vpop.eup %9009 }
 0xc0a   :  { %v1340_v60 = vmul.f32 0.5, %v9010_v10  ;;  %v9012_v3 = vpop.eup %9011 }
 0xc0b   :  { %v1508_v5 = vmul.f32 0.5, %v9012_v3 }
 0xc0c   :  { %v1341_v61 = vadd.f32 0.5, %v1340_v60 }
 0xc0d   :  { %v1509_v14 = vadd.f32 0.5, %v1508_v5 }
 0xc0e   :  { %v1343_v36 = vmul.f32 %v1341_v61, %v9694_v35 }
 0xc0f   :  { %v1511_v2 = vmul.f32 %v1509_v14, %v9699_v38 }
 0xc63   :  { %v1346_v62 = vpop.permute.xlu0 %1345 }
 0xc64   :  { %v1348_v0 = vmul.f32 %v1346_v62, %v1341_v61 }
 0xc66   :  { %1350 = vrot.lane.b32.xlu0 %v1348_v0, %s9301_s27 }
 0xc7b   :  { %v1514_v34 = vpop.permute.xlu1 %1513 }
 0xc7c   :  { %v1516_v42 = vmul.f32 %v1514_v34, %v1509_v14 }
 0xc7e   :  { %1518 = vrot.lane.b32.xlu1 %v1516_v42, %s9301_s27 }
 0xcd8   :  { %v1351_v37 = vpop.permute.xlu0 %1350 }
 0xcd9   :  { %v9734_v46 = vadd.f32 %v1351_v37, %v1343_v36 }
 0xcdb   :  { %9013 = vtanh.f32 %v9734_v46 }
 0xce5   :  { %v9014_v39 = vpop.eup %9013 }
 0xce6   :  { %1356 = vrot.lane.b32.xlu0 %v9014_v39, %s9300_s26 }
 0xcf0   :  { %v1519_v40 = vpop.permute.xlu1 %1518 }
 0xcf1   :  { %v9739_v41 = vadd.f32 %v1519_v40, %v1511_v2 }
 0xcf3   :  { %9015 = vtanh.f32 %v9739_v41 }
 0xcfd   :  { %v9016_v43 = vpop.eup %9015 }
 0xcfe   :  { %1524 = vrot.lane.b32.xlu1 %v9016_v43, %s9300_s26 }
 0xd58   :  { %v1357_v26 = vpop.permute.xlu0 %1356 }
 0xd59   :  { %v1359_v35 = vmul.f32 %v1357_v26, %v1341_v61 }
 0xd5b   :  { %1530 = vrot.lane.b32.xlu0 %v1359_v35, %s9301_s27 }
 0xd70   :  { %v1525_v44 = vpop.permute.xlu1 %1524 }
 0xd71   :  { %v1527_v45 = vmul.f32 %v1525_v44, %v1509_v14 }
 0xd73   :  { %1628 = vrot.lane.b32.xlu1 %v1527_v45, %s9301_s27 }
 0xdcd   :  { %v1531_v48 = vpop.permute.xlu0 %1530 }
 0xdce   :  { %7838 = vmatmul.mubr.msk.f32.vlgmr.msra.gmra.mrb[28].mxu1 %vm362_vm2, %v1531_v48 }
 0xdcf   :  { %8608 = vmatpush3.bf16.msra.mxu1 %v9479_v51  ;;  %7859 = vmatprep.mubr.msk.f32.mxu1 %vm9298_vm1, %v9299_v20 }
 0xdd0   :  { %8609 = vmatprep.subr.bf16.mxu1 %v9297_v7 }
 0xdd3   :  { %8611 = vmatpush3.bf16.msra.mxu1 %v9489_v56 }
 0xdd4   :  { %8618 = vmatprep.subr.bf16.mxu1 %v9297_v7 }
 0xdd6   :  { %7860 = vmatmul.mubr.msk.f32.vlgmr.msra.gmra.mrb[30].mxu1 %vm362_vm2, %v1531_v48 }
 0xdd7   :  { %8620 = vmatpush3.bf16.msra.mxu1 %v9500_v59  ;;  %7881 = vmatprep.mubr.msk.f32.mxu1 %vm9298_vm1, %v9299_v20 }
 0xdd8   :  { %8621 = vmatprep.subr.bf16.mxu1 %v9297_v7 }
 0xddb   :  { %8623 = vmatpush3.bf16.msra.mxu1 %v9510_v63 }
 0xddc   :  { %8630 = vmatprep.subr.bf16.mxu1 %v9297_v7 }
 0xde5   :  { %v1629_v38 = vpop.permute.xlu1 %1628 }
 0xde6   :  { %7849 = vmatmul.mubr.msk.f32.vlgmr.msra.gmra.mrb[22].mxu0 %vm362_vm2, %v1629_v38 }
 0xde7   :  { %8614 = vmatpush3.bf16.msra.mxu0 %v9376_v6  ;;  %7870 = vmatprep.mubr.msk.f32.mxu0 %vm9298_vm1, %v9299_v20 }
 0xde8   :  { %8615 = vmatprep.subr.bf16.mxu0 %v9297_v7 }
 0xdeb   :  { %8617 = vmatpush3.bf16.msra.mxu0 %v9391_v11 }
 0xdec   :  { %8624 = vmatprep.subr.bf16.mxu0 %v9297_v7 }
 0xea1   :  { %v1600_v49 = vpop.f32.mrb[28].mxu1 }
 0xea2   :  { %v1604_v50 = vadd.f32 %v1600_v49, %v244_v47  ;;  %v7839_v52 = vpop.f32.mrb[29].mxu1 }
 0xea4   :  { %9017 = vtanh.f32 %v1604_v50  ;;  %v1605_v61 = vmul.f32 0.5, %v1604_v50  ;;  %v249_v50 = vadd.f32 %v9460_v31, %v9612_v13 }
 0xea9   :  { %v1768_v53 = vpop.f32.mrb[30].mxu1 }
 0xeaa   :  { %v7861_v54 = vpop.f32.mrb[31].mxu1 }
 0xeae   :  { %v9018_v4 = vpop.eup %9017 }
 0xeaf   :  { %1612 = vrot.lane.b32.xlu0 %v9018_v4, %s9300_s26 }
 0xeb9   :  { %v1698_v55 = vpop.f32.mrb[22].mxu0 }
 0xeba   :  { %v1769_v57 = vadd.f32 %v1768_v53, %v1698_v55  ;;  %v7850_v58 = vpop.f32.mrb[23].mxu0 }
 0xebc   :  { %v1772_v10 = vadd.f32 %v9537_v9, %v1769_v57 }
 0xebe   :  { %9019 = vtanh.f32 %v1772_v10  ;;  %v1773_v5 = vmul.f32 0.5, %v1772_v10 }
 0xebf   :  { %9021 = vtanh.f32 %v1605_v61 }
 0xec0   :  { %9023 = vtanh.f32 %v1773_v5 }
 0xec8   :  { %v9020_v60 = vpop.eup %9019 }
 0xec9   :  { %1780 = vrot.lane.b32.xlu1 %v9020_v60, %s9300_s26  ;;  %v9022_v8 = vpop.eup %9021 }
 0xeca   :  { %v1607_v62 = vmul.f32 0.5, %v9022_v8  ;;  %v9024_v14 = vpop.eup %9023 }
 0xecb   :  { %v1775_v34 = vmul.f32 0.5, %v9024_v14 }
 0xecc   :  { %v1608_v0 = vadd.f32 0.5, %v1607_v62 }
 0xecd   :  { %v1776_v42 = vadd.f32 0.5, %v1775_v34 }
 0xece   :  { %v1610_v39 = vmul.f32 %v1608_v0, %v9734_v46 }
 0xecf   :  { %v1778_v26 = vmul.f32 %v1776_v42, %v9739_v41 }
 0xf21   :  { %v1613_v1 = vpop.permute.xlu0 %1612 }
 0xf22   :  { %v1615_v3 = vmul.f32 %v1613_v1, %v1608_v0 }
 0xf24   :  { %1617 = vrot.lane.b32.xlu0 %v1615_v3, %s9301_s27 }
 0xf3b   :  { %v1781_v36 = vpop.permute.xlu1 %1780 }
 0xf3c   :  { %v1783_v37 = vmul.f32 %v1781_v36, %v1776_v42 }
 0xf3e   :  { %1785 = vrot.lane.b32.xlu1 %v1783_v37, %s9301_s27 }
 0xf96   :  { %v1618_v2 = vpop.permute.xlu0 %1617 }
 0xf97   :  { %v9774_v40 = vadd.f32 %v1618_v2, %v1610_v39 }
 0xf99   :  { %9025 = vtanh.f32 %v9774_v40 }
 0xfa3   :  { %v9026_v43 = vpop.eup %9025 }
 0xfa4   :  { %1623 = vrot.lane.b32.xlu0 %v9026_v43, %s9300_s26 }
 0xfb0   :  { %v1786_v35 = vpop.permute.xlu1 %1785 }
 0xfb1   :  { %v9779_v44 = vadd.f32 %v1786_v35, %v1778_v26 }
 0xfb3   :  { %9027 = vtanh.f32 %v9779_v44 }
 0xfbd   :  { %v9028_v45 = vpop.eup %9027 }
 0xfbe   :  { %1791 = vrot.lane.b32.xlu1 %v9028_v45, %s9300_s26 }
0x1016   :  { %v1624_v48 = vpop.permute.xlu0 %1623 }
0x1017   :  { %v1626_v46 = vmul.f32 %v1624_v48, %v1608_v0 }
0x1019   :  { %1802 = vrot.lane.b32.xlu0 %v1626_v46, %s9301_s27 }
0x1030   :  { %v1792_v38 = vpop.permute.xlu1 %1791 }
0x1031   :  { %v1794_v47 = vmul.f32 %v1792_v38, %v1776_v42 }
0x1033   :  { %1796 = vrot.lane.b32.xlu1 %v1794_v47, %s9301_s27 }
0x108b   :  { %v1803_v49 = vpop.permute.xlu0 %1802 }
0x108c   :  { %7871 = vmatmul.mubr.msk.f32.vlgmr.msra.gmra.mrb[24].mxu0 %vm362_vm2, %v1803_v49 }
0x108d   :  { %8626 = vmatpush3.bf16.msra.mxu0 %v9479_v51  ;;  %7892 = vmatprep.mubr.msk.f32.mxu0 %vm9298_vm1, %v9299_v20 }
0x108e   :  { %8627 = vmatprep.subr.bf16.mxu0 %v9297_v7 }
0x1091   :  { %8629 = vmatpush3.bf16.msra.mxu0 %v9489_v56 }
0x1092   :  { %8636 = vmatprep.subr.bf16.mxu0 %v9297_v7 }
0x1094   :  { %7893 = vmatmul.mubr.msk.f32.vlgmr.msra.gmra.mrb[26].mxu0 %vm362_vm2, %v1803_v49 }
0x1095   :  { %8638 = vmatpush3.bf16.msra.mxu0 %v9500_v59  ;;  %7914 = vmatprep.mubr.msk.f32.mxu0 %vm9298_vm1, %v9299_v20 }
0x1096   :  { %8639 = vmatprep.subr.bf16.mxu0 %v9297_v7 }
0x1099   :  { %8641 = vmatpush3.bf16.msra.mxu0 %v9510_v63 }
0x109a   :  { %8648 = vmatprep.subr.bf16.mxu0 %v9297_v7 }
0x10a5   :  { %v1797_v41 = vpop.permute.xlu1 %1796 }
0x10a6   :  { %1799 = vst.msk [vmem:[#allocation3] sm:$0xff] %vm362_vm2, %v1797_v41  ;;  %7882 = vmatmul.mubr.msk.f32.vlgmr.msra.gmra.mrb[32].mxu1 %vm362_vm2, %v1797_v41 }
0x10a7   :  { %8632 = vmatpush3.bf16.msra.mxu1 %v9376_v6  ;;  %7903 = vmatprep.mubr.msk.f32.mxu1 %vm9298_vm1, %v9299_v20 }
0x10a8   :  { %8633 = vmatprep.subr.bf16.mxu1 %v9297_v7 }
0x10ab   :  { %8635 = vmatpush3.bf16.msra.mxu1 %v9391_v11 }
0x10ac   :  { %8642 = vmatprep.subr.bf16.mxu1 %v9297_v7 }
0x115f   :  { %v1872_v52 = vpop.f32.mrb[24].mxu0 }
0x1160   :  { %v1876_v53 = vadd.f32 %v1872_v52, %v249_v50  ;;  %v7872_v54 = vpop.f32.mrb[25].mxu0  ;;  %v9851_v50 = vld [vmem:[%s10680_s3] ss:$0 sm:$0xff] }
0x1161   :  { %v254_v52 = vadd.f32 %v9851_v50, %v9610_v12 }
0x1162   :  { %9029 = vtanh.f32 %v1876_v53  ;;  %v1877_v62 = vmul.f32 0.5, %v1876_v53 }
0x1167   :  { %v2037_v4 = vpop.f32.mrb[26].mxu0 }
0x1168   :  { %v7894_v55 = vpop.f32.mrb[27].mxu0 }
0x116c   :  { %v9030_v57 = vpop.eup %9029 }
0x116d   :  { %1884 = vrot.lane.b32.xlu0 %v9030_v57, %s9300_s26 }
0x1179   :  { %v1967_v58 = vpop.f32.mrb[32].mxu1 }
0x117a   :  { %v2038_v10 = vadd.f32 %v2037_v4, %v1967_v58  ;;  %v7883_v60 = vpop.f32.mrb[33].mxu1 }
0x117c   :  { %v2041_v61 = vadd.f32 %v9537_v9, %v2038_v10 }
0x117e   :  { %9031 = vtanh.f32 %v2041_v61  ;;  %v2042_v5 = vmul.f32 0.5, %v2041_v61 }
0x117f   :  { %9033 = vtanh.f32 %v1877_v62 }
0x1180   :  { %9035 = vtanh.f32 %v2042_v5 }
0x1188   :  { %v9032_v8 = vpop.eup %9031 }
0x1189   :  { %2049 = vrot.lane.b32.xlu1 %v9032_v8, %s9300_s26  ;;  %v9034_v31 = vpop.eup %9033 }
0x118a   :  { %v1879_v13 = vmul.f32 0.5, %v9034_v31  ;;  %v9036_v14 = vpop.eup %9035 }
0x118b   :  { %v2044_v34 = vmul.f32 0.5, %v9036_v14 }
0x118c   :  { %v1880_v0 = vadd.f32 0.5, %v1879_v13 }
0x118d   :  { %v2045_v42 = vadd.f32 0.5, %v2044_v34 }
0x118e   :  { %v1882_v39 = vmul.f32 %v1880_v0, %v9774_v40 }
0x118f   :  { %v2047_v35 = vmul.f32 %v2045_v42, %v9779_v44 }
0x11df   :  { %v1885_v1 = vpop.permute.xlu0 %1884 }
0x11e0   :  { %v1887_v3 = vmul.f32 %v1885_v1, %v1880_v0 }
0x11e2   :  { %1889 = vrot.lane.b32.xlu0 %v1887_v3, %s9301_s27 }
0x11fb   :  { %v2050_v36 = vpop.permute.xlu1 %2049 }
0x11fc   :  { %v2052_v37 = vmul.f32 %v2050_v36, %v2045_v42 }
0x11fe   :  { %2054 = vrot.lane.b32.xlu1 %v2052_v37, %s9301_s27 }
0x1254   :  { %v1890_v2 = vpop.permute.xlu0 %1889 }
0x1255   :  { %v9815_v43 = vadd.f32 %v1890_v2, %v1882_v39 }
0x1257   :  { %9037 = vtanh.f32 %v9815_v43 }
0x1261   :  { %v9038_v26 = vpop.eup %9037 }
0x1262   :  { %1895 = vrot.lane.b32.xlu0 %v9038_v26, %s9300_s26 }
0x1270   :  { %v2055_v45 = vpop.permute.xlu1 %2054 }
0x1271   :  { %v9820_v48 = vadd.f32 %v2055_v45, %v2047_v35 }
0x1273   :  { %9039 = vtanh.f32 %v9820_v48 }
0x127d   :  { %v9040_v46 = vpop.eup %9039 }
0x127e   :  { %2060 = vrot.lane.b32.xlu1 %v9040_v46, %s9300_s26 }
0x12d4   :  { %v1896_v38 = vpop.permute.xlu0 %1895 }
0x12d5   :  { %v1898_v40 = vmul.f32 %v1896_v38, %v1880_v0 }
0x12d7   :  { %2071 = vrot.lane.b32.xlu0 %v1898_v40, %s9301_s27 }
0x12f0   :  { %v2061_v47 = vpop.permute.xlu1 %2060 }
0x12f1   :  { %v2063_v49 = vmul.f32 %v2061_v47, %v2045_v42 }
0x12f3   :  { %2065 = vrot.lane.b32.xlu1 %v2063_v49, %s9301_s27 }
0x1349   :  { %v2072_v41 = vpop.permute.xlu0 %2071 }
0x134a   :  { %7904 = vmatmul.mubr.msk.f32.vlgmr.msra.gmra.mrb[34].mxu1 %vm362_vm2, %v2072_v41 }
0x134b   :  { %8644 = vmatpush3.bf16.msra.mxu1 %v9479_v51  ;;  %7925 = vmatprep.mubr.msk.f32.mxu1 %vm9298_vm1, %v9299_v20 }
0x134c   :  { %8645 = vmatprep.subr.bf16.mxu1 %v9297_v7 }
0x134f   :  { %8647 = vmatpush3.bf16.msra.mxu1 %v9489_v56 }
0x1350   :  { %8654 = vmatprep.subr.bf16.mxu1 %v9297_v7 }
0x1352   :  { %7926 = vmatmul.mubr.msk.f32.vlgmr.msra.gmra.mrb[36].mxu1 %vm362_vm2, %v2072_v41 }
0x1353   :  { %8656 = vmatpush3.bf16.msra.mxu1 %v9500_v59  ;;  %7947 = vmatprep.mubr.msk.f32.mxu1 %vm9298_vm1, %v9299_v20 }
0x1354   :  { %8657 = vmatprep.subr.bf16.mxu1 %v9297_v7 }
0x1357   :  { %8659 = vmatpush3.bf16.msra.mxu1 %v9510_v63 }
0x1358   :  { %8666 = vmatprep.subr.bf16.mxu1 %v9297_v7 }
0x1365   :  { %v2066_v44 = vpop.permute.xlu1 %2065 }
0x1366   :  { %2068 = vst.msk [vmem:[#allocation3 + $0x8] sm:$0xff] %vm362_vm2, %v2066_v44  ;;  %7915 = vmatmul.mubr.msk.f32.vlgmr.msra.gmra.mrb[28].mxu0 %vm362_vm2, %v2066_v44  ;;  %v259_v44 = vadd.f32 %v9851_v50, %v9621_v16 }
0x1367   :  { %8650 = vmatpush3.bf16.msra.mxu0 %v9376_v6  ;;  %7936 = vmatprep.mubr.msk.f32.mxu0 %vm9298_vm1, %v9299_v20 }
0x1368   :  { %8651 = vmatprep.subr.bf16.mxu0 %v9297_v7 }
0x136b   :  { %8653 = vmatpush3.bf16.msra.mxu0 %v9391_v11 }
0x136c   :  { %8660 = vmatprep.subr.bf16.mxu0 %v9297_v7 }
0x141d   :  { %v2141_v53 = vpop.f32.mrb[34].mxu1 }
0x141e   :  { %v2145_v54 = vadd.f32 %v2141_v53, %v254_v52  ;;  %v7905_v4 = vpop.f32.mrb[35].mxu1 }
0x1420   :  { %9041 = vtanh.f32 %v2145_v54  ;;  %v2146_v31 = vmul.f32 0.5, %v2145_v54 }
0x1425   :  { %v2306_v55 = vpop.f32.mrb[36].mxu1 }
0x1426   :  { %v7927_v57 = vpop.f32.mrb[37].mxu1 }
0x142a   :  { %v9042_v58 = vpop.eup %9041 }
0x142b   :  { %2153 = vrot.lane.b32.xlu0 %v9042_v58, %s9300_s26 }
0x1439   :  { %v2236_v10 = vpop.f32.mrb[28].mxu0 }
0x143a   :  { %v2307_v60 = vadd.f32 %v2306_v55, %v2236_v10  ;;  %v7916_v61 = vpop.f32.mrb[29].mxu0 }
0x143b   :  { %v9900_v61 = vld [vmem:[%s10683_s6] ss:$0 sm:$0xff] }
0x143c   :  { %v2310_v8 = vadd.f32 %v9537_v9, %v2307_v60 }
0x143e   :  { %9043 = vtanh.f32 %v2310_v8  ;;  %v2311_v5 = vmul.f32 0.5, %v2310_v8 }
0x143f   :  { %9045 = vtanh.f32 %v2146_v31 }
0x1440   :  { %9047 = vtanh.f32 %v2311_v5 }
0x1448   :  { %v9044_v62 = vpop.eup %9043 }
0x1449   :  { %2318 = vrot.lane.b32.xlu1 %v9044_v62, %s9300_s26  ;;  %v9046_v12 = vpop.eup %9045 }
0x144a   :  { %v2148_v13 = vmul.f32 0.5, %v9046_v12  ;;  %v9048_v14 = vpop.eup %9047 }
0x144b   :  { %v2313_v34 = vmul.f32 0.5, %v9048_v14 }
0x144c   :  { %v2149_v0 = vadd.f32 0.5, %v2148_v13 }
0x144d   :  { %v2314_v42 = vadd.f32 0.5, %v2313_v34 }
0x144e   :  { %v2151_v37 = vmul.f32 %v2149_v0, %v9815_v43 }
0x144f   :  { %v2316_v35 = vmul.f32 %v2314_v42, %v9820_v48 }
0x149d   :  { %v2154_v1 = vpop.permute.xlu0 %2153 }
0x149e   :  { %v2156_v3 = vmul.f32 %v2154_v1, %v2149_v0 }
0x14a0   :  { %2158 = vrot.lane.b32.xlu0 %v2156_v3, %s9301_s27 }
0x14bb   :  { %v2319_v36 = vpop.permute.xlu1 %2318 }
0x14bc   :  { %v2321_v9 = vmul.f32 %v2319_v36, %v2314_v42 }
0x14be   :  { %2323 = vrot.lane.b32.xlu1 %v2321_v9, %s9301_s27 }
0x1512   :  { %v2159_v39 = vpop.permute.xlu0 %2158 }
0x1513   :  { %v9861_v2 = vadd.f32 %v2159_v39, %v2151_v37 }
0x1515   :  { %9049 = vtanh.f32 %v9861_v2 }
0x151f   :  { %v9050_v26 = vpop.eup %9049 }
0x1520   :  { %2164 = vrot.lane.b32.xlu0 %v9050_v26, %s9300_s26 }
0x1530   :  { %v2324_v45 = vpop.permute.xlu1 %2323 }
0x1531   :  { %v9866_v46 = vadd.f32 %v2324_v45, %v2316_v35 }
0x1533   :  { %9051 = vtanh.f32 %v9866_v46 }
0x153d   :  { %v9052_v38 = vpop.eup %9051 }
0x153e   :  { %2329 = vrot.lane.b32.xlu1 %v9052_v38, %s9300_s26 }
0x1592   :  { %v2165_v40 = vpop.permute.xlu0 %2164 }
0x1593   :  { %v2167_v43 = vmul.f32 %v2165_v40, %v2149_v0 }
0x1595   :  { %2340 = vrot.lane.b32.xlu0 %v2167_v43, %s9301_s27 }
0x15b0   :  { %v2330_v47 = vpop.permute.xlu1 %2329 }
0x15b1   :  { %v2332_v49 = vmul.f32 %v2330_v47, %v2314_v42 }
0x15b3   :  { %2334 = vrot.lane.b32.xlu1 %v2332_v49, %s9301_s27 }
0x1607   :  { %v2341_v41 = vpop.permute.xlu0 %2340 }
0x1608   :  { %7937 = vmatmul.mubr.msk.f32.vlgmr.msra.gmra.mrb[30].mxu0 %vm362_vm2, %v2341_v41 }
0x1609   :  { %8662 = vmatpush3.bf16.msra.mxu0 %v9479_v51  ;;  %7958 = vmatprep.mubr.msk.f32.mxu0 %vm9298_vm1, %v9299_v20 }
0x160a   :  { %8663 = vmatprep.subr.bf16.mxu0 %v9297_v7 }
0x160d   :  { %8665 = vmatpush3.bf16.msra.mxu0 %v9489_v56 }
0x160e   :  { %8672 = vmatprep.subr.bf16.mxu0 %v9297_v7 }
0x1610   :  { %7959 = vmatmul.mubr.msk.f32.vlgmr.msra.gmra.mrb[32].mxu0 %vm362_vm2, %v2341_v41 }
0x1611   :  { %8674 = vmatpush3.bf16.msra.mxu0 %v9500_v59  ;;  %7980 = vmatprep.mubr.msk.f32.mxu0 %vm9298_vm1, %v9299_v20 }
0x1612   :  { %8675 = vmatprep.subr.bf16.mxu0 %v9297_v7 }
0x1615   :  { %8677 = vmatpush3.bf16.msra.mxu0 %v9510_v63 }
0x1616   :  { %8684 = vmatprep.subr.bf16.mxu0 %v9297_v7 }
0x1625   :  { %v2335_v48 = vpop.permute.xlu1 %2334 }
0x1626   :  { %2337 = vst.msk [vmem:[#allocation3 + $0x10] sm:$0xff] %vm362_vm2, %v2335_v48  ;;  %7948 = vmatmul.mubr.msk.f32.vlgmr.msra.gmra.mrb[38].mxu1 %vm362_vm2, %v2335_v48  ;;  %v264_v48 = vadd.f32 %v9851_v50, %v9616_v15 }
0x1627   :  { %8668 = vmatpush3.bf16.msra.mxu1 %v9376_v6  ;;  %7969 = vmatprep.mubr.msk.f32.mxu1 %vm9298_vm1, %v9299_v20 }
0x1628   :  { %8669 = vmatprep.subr.bf16.mxu1 %v9297_v7 }
0x162b   :  { %8671 = vmatpush3.bf16.msra.mxu1 %v9391_v11 }
0x162c   :  { %8678 = vmatprep.subr.bf16.mxu1 %v9297_v7 }
0x16db   :  { %v2410_v52 = vpop.f32.mrb[30].mxu0 }
0x16dc   :  { %v2414_v53 = vadd.f32 %v2410_v52, %v259_v44  ;;  %v7938_v54 = vpop.f32.mrb[31].mxu0 }
0x16de   :  { %9053 = vtanh.f32 %v2414_v53  ;;  %v2415_v62 = vmul.f32 0.5, %v2414_v53 }
0x16e3   :  { %v2575_v4 = vpop.f32.mrb[32].mxu0 }
0x16e4   :  { %v7960_v55 = vpop.f32.mrb[33].mxu0 }
0x16e8   :  { %v9054_v57 = vpop.eup %9053 }
0x16e9   :  { %2422 = vrot.lane.b32.xlu0 %v9054_v57, %s9300_s26 }
0x16f9   :  { %v2505_v58 = vpop.f32.mrb[38].mxu1 }
0x16fa   :  { %v2576_v10 = vadd.f32 %v2575_v4, %v2505_v58  ;;  %v7949_v60 = vpop.f32.mrb[39].mxu1 }
0x16fc   :  { %v2579_v8 = vadd.f32 %v9900_v61, %v2576_v10 }
0x16fe   :  { %9055 = vtanh.f32 %v2579_v8  ;;  %v2580_v3 = vmul.f32 0.5, %v2579_v8 }
0x16ff   :  { %9057 = vtanh.f32 %v2415_v62 }
0x1700   :  { %9059 = vtanh.f32 %v2580_v3 }
0x1708   :  { %v9056_v16 = vpop.eup %9055 }
0x1709   :  { %2587 = vrot.lane.b32.xlu1 %v9056_v16, %s9300_s26  ;;  %v9058_v31 = vpop.eup %9057 }
0x170a   :  { %v2417_v12 = vmul.f32 0.5, %v9058_v31  ;;  %v9060_v5 = vpop.eup %9059 }
0x170b   :  { %v2582_v14 = vmul.f32 0.5, %v9060_v5 }
0x170c   :  { %v2418_v13 = vadd.f32 0.5, %v2417_v12 }
0x170d   :  { %v2583_v34 = vadd.f32 0.5, %v2582_v14 }
0x170e   :  { %v2420_v9 = vmul.f32 %v2418_v13, %v9861_v2 }
0x170f   :  { %v2585_v35 = vmul.f32 %v2583_v34, %v9866_v46 }
0x175b   :  { %v2423_v0 = vpop.permute.xlu0 %2422 }
0x175c   :  { %v2425_v1 = vmul.f32 %v2423_v0, %v2418_v13 }
0x175e   :  { %2427 = vrot.lane.b32.xlu0 %v2425_v1, %s9301_s27 }
0x177b   :  { %v2588_v42 = vpop.permute.xlu1 %2587 }
0x177c   :  { %v2590_v36 = vmul.f32 %v2588_v42, %v2583_v34 }
0x177e   :  { %2592 = vrot.lane.b32.xlu1 %v2590_v36, %s9301_s27 }
0x17d0   :  { %v2428_v37 = vpop.permute.xlu0 %2427 }
0x17d1   :  { %v9907_v39 = vadd.f32 %v2428_v37, %v2420_v9 }
0x17d3   :  { %9061 = vtanh.f32 %v9907_v39 }
0x17dd   :  { %v9062_v26 = vpop.eup %9061 }
0x17de   :  { %2433 = vrot.lane.b32.xlu0 %v9062_v26, %s9300_s26 }
0x17f0   :  { %v2593_v45 = vpop.permute.xlu1 %2592 }
0x17f1   :  { %v9912_v38 = vadd.f32 %v2593_v45, %v2585_v35 }
0x17f3   :  { %9063 = vtanh.f32 %v9912_v38 }
0x17fd   :  { %v9064_v40 = vpop.eup %9063 }
0x17fe   :  { %2598 = vrot.lane.b32.xlu1 %v9064_v40, %s9300_s26 }
0x1850   :  { %v2434_v43 = vpop.permute.xlu0 %2433 }
0x1851   :  { %v2436_v2 = vmul.f32 %v2434_v43, %v2418_v13 }
0x1853   :  { %2609 = vrot.lane.b32.xlu0 %v2436_v2, %s9301_s27 }
0x1870   :  { %v2599_v47 = vpop.permute.xlu1 %2598 }
0x1871   :  { %v2601_v49 = vmul.f32 %v2599_v47, %v2583_v34 }
0x1873   :  { %2603 = vrot.lane.b32.xlu1 %v2601_v49, %s9301_s27 }
0x18c5   :  { %v2610_v41 = vpop.permute.xlu0 %2609 }
0x18c6   :  { %7970 = vmatmul.mubr.msk.f32.vlgmr.msra.gmra.mrb[40].mxu1 %vm362_vm2, %v2610_v41 }
0x18c7   :  { %8680 = vmatpush3.bf16.msra.mxu1 %v9479_v51  ;;  %7991 = vmatprep.mubr.msk.f32.mxu1 %vm9298_vm1, %v9299_v20 }
0x18c8   :  { %8681 = vmatprep.subr.bf16.mxu1 %v9297_v7 }
0x18cb   :  { %8683 = vmatpush3.bf16.msra.mxu1 %v9489_v56 }
0x18cc   :  { %8690 = vmatprep.subr.bf16.mxu1 %v9297_v7 }
0x18ce   :  { %7992 = vmatmul.mubr.msk.f32.vlgmr.msra.gmra.mrb[42].mxu1 %vm362_vm2, %v2610_v41  ;;  %v269_v41 = vadd.f32 %v9851_v50, %v9631_v18 }
0x18cf   :  { %8692 = vmatpush3.bf16.msra.mxu1 %v9500_v59  ;;  %8013 = vmatprep.mubr.msk.f32.mxu1 %vm9298_vm1, %v9299_v20 }
0x18d0   :  { %8693 = vmatprep.subr.bf16.mxu1 %v9297_v7 }
0x18d3   :  { %8695 = vmatpush3.bf16.msra.mxu1 %v9510_v63 }
0x18d4   :  { %8702 = vmatprep.subr.bf16.mxu1 %v9297_v7 }
0x18e5   :  { %v2604_v46 = vpop.permute.xlu1 %2603 }
0x18e6   :  { %2606 = vst.msk [vmem:[#allocation3 + $0x18] sm:$0xff] %vm362_vm2, %v2604_v46  ;;  %7981 = vmatmul.mubr.msk.f32.vlgmr.msra.gmra.mrb[34].mxu0 %vm362_vm2, %v2604_v46 }
0x18e7   :  { %8686 = vmatpush3.bf16.msra.mxu0 %v9376_v6  ;;  %8002 = vmatprep.mubr.msk.f32.mxu0 %vm9298_vm1, %v9299_v20 }
0x18e8   :  { %8687 = vmatprep.subr.bf16.mxu0 %v9297_v7 }
0x18eb   :  { %8689 = vmatpush3.bf16.msra.mxu0 %v9391_v11 }
0x18ec   :  { %8696 = vmatprep.subr.bf16.mxu0 %v9297_v7 }
0x1999   :  { %v2679_v44 = vpop.f32.mrb[40].mxu1 }
0x199a   :  { %v2683_v52 = vadd.f32 %v2679_v44, %v264_v48  ;;  %v7971_v53 = vpop.f32.mrb[41].mxu1 }
0x199c   :  { %9065 = vtanh.f32 %v2683_v52  ;;  %v2684_v16 = vmul.f32 0.5, %v2683_v52 }
0x19a1   :  { %v2844_v54 = vpop.f32.mrb[42].mxu1 }
0x19a2   :  { %v7993_v4 = vpop.f32.mrb[43].mxu1 }
0x19a6   :  { %v9066_v55 = vpop.eup %9065 }
0x19a7   :  { %2691 = vrot.lane.b32.xlu0 %v9066_v55, %s9300_s26 }
0x19b9   :  { %v2774_v57 = vpop.f32.mrb[34].mxu0 }
0x19ba   :  { %v2845_v58 = vadd.f32 %v2844_v54, %v2774_v57  ;;  %v7982_v10 = vpop.f32.mrb[35].mxu0 }
0x19bc   :  { %v2848_v60 = vadd.f32 %v9900_v61, %v2845_v58 }
0x19be   :  { %9067 = vtanh.f32 %v2848_v60  ;;  %v2849_v0 = vmul.f32 0.5, %v2848_v60 }
0x19bf   :  { %9069 = vtanh.f32 %v2684_v16 }
0x19c0   :  { %9071 = vtanh.f32 %v2849_v0 }
0x19c8   :  { %v9068_v8 = vpop.eup %9067 }
0x19c9   :  { %2856 = vrot.lane.b32.xlu1 %v9068_v8, %s9300_s26  ;;  %v9070_v15 = vpop.eup %9069 }
0x19ca   :  { %v2686_v62 = vmul.f32 0.5, %v9070_v15  ;;  %v9072_v1 = vpop.eup %9071 }
0x19cb   :  { %v2851_v3 = vmul.f32 0.5, %v9072_v1 }
0x19cc   :  { %v2687_v31 = vadd.f32 0.5, %v2686_v62 }
0x19cd   :  { %v2852_v5 = vadd.f32 0.5, %v2851_v3 }
0x19ce   :  { %v2689_v42 = vmul.f32 %v2687_v31, %v9907_v39 }
0x19cf   :  { %v2854_v26 = vmul.f32 %v2852_v5, %v9912_v38 }
0x1a19   :  { %v2692_v12 = vpop.permute.xlu0 %2691 }
0x1a1a   :  { %v2694_v13 = vmul.f32 %v2692_v12, %v2687_v31 }
0x1a1c   :  { %2696 = vrot.lane.b32.xlu0 %v2694_v13, %s9301_s27 }
0x1a3b   :  { %v2857_v14 = vpop.permute.xlu1 %2856 }
0x1a3c   :  { %v2859_v34 = vmul.f32 %v2857_v14, %v2852_v5 }
0x1a3e   :  { %2861 = vrot.lane.b32.xlu1 %v2859_v34, %s9301_s27 }
0x1a8e   :  { %v2697_v36 = vpop.permute.xlu0 %2696 }
0x1a8f   :  { %v9948_v9 = vadd.f32 %v2697_v36, %v2689_v42 }
0x1a91   :  { %9073 = vtanh.f32 %v9948_v9 }
0x1a9b   :  { %v9074_v37 = vpop.eup %9073 }
0x1a9c   :  { %2702 = vrot.lane.b32.xlu0 %v9074_v37, %s9300_s26 }
0x1ab0   :  { %v2862_v35 = vpop.permute.xlu1 %2861 }
0x1ab1   :  { %v9953_v45 = vadd.f32 %v2862_v35, %v2854_v26 }
0x1ab3   :  { %9075 = vtanh.f32 %v9953_v45 }
0x1abd   :  { %v9076_v40 = vpop.eup %9075 }
0x1abe   :  { %2867 = vrot.lane.b32.xlu1 %v9076_v40, %s9300_s26 }
0x1b0e   :  { %v2703_v43 = vpop.permute.xlu0 %2702 }
0x1b0f   :  { %v2705_v39 = vmul.f32 %v2703_v43, %v2687_v31 }
0x1b11   :  { %2878 = vrot.lane.b32.xlu0 %v2705_v39, %s9301_s27 }
0x1b30   :  { %v2868_v2 = vpop.permute.xlu1 %2867 }
0x1b31   :  { %v2870_v47 = vmul.f32 %v2868_v2, %v2852_v5 }
0x1b33   :  { %2872 = vrot.lane.b32.xlu1 %v2870_v47, %s9301_s27  ;;  %v274_v47 = vadd.f32 %v9851_v50, %v9628_v17 }
0x1b83   :  { %v2879_v49 = vpop.permute.xlu0 %2878 }
0x1b84   :  { %8003 = vmatmul.mubr.msk.f32.vlgmr.msra.gmra.mrb[36].mxu0 %vm362_vm2, %v2879_v49 }
0x1b85   :  { %8698 = vmatpush3.bf16.msra.mxu0 %v9479_v51  ;;  %8024 = vmatprep.mubr.msk.f32.mxu0 %vm9298_vm1, %v9299_v20 }
0x1b86   :  { %8699 = vmatprep.subr.bf16.mxu0 %v9297_v7 }
0x1b89   :  { %8701 = vmatpush3.bf16.msra.mxu0 %v9489_v56 }
0x1b8a   :  { %8708 = vmatprep.subr.bf16.mxu0 %v9297_v7 }
0x1b8c   :  { %8025 = vmatmul.mubr.msk.f32.vlgmr.msra.gmra.mrb[38].mxu0 %vm362_vm2, %v2879_v49 }
0x1b8d   :  { %8710 = vmatpush3.bf16.msra.mxu0 %v9500_v59  ;;  %8046 = vmatprep.mubr.msk.f32.mxu0 %vm9298_vm1, %v9299_v20 }
0x1b8e   :  { %8711 = vmatprep.subr.bf16.mxu0 %v9297_v7 }
0x1b91   :  { %8713 = vmatpush3.bf16.msra.mxu0 %v9510_v63 }
0x1b92   :  { %8720 = vmatprep.subr.bf16.mxu0 %v9297_v7 }
0x1ba5   :  { %v2873_v38 = vpop.permute.xlu1 %2872 }
0x1ba6   :  { %2875 = vst.msk [vmem:[#allocation3 + $0x20] sm:$0xff] %vm362_vm2, %v2873_v38  ;;  %8014 = vmatmul.mubr.msk.f32.vlgmr.msra.gmra.mrb[44].mxu1 %vm362_vm2, %v2873_v38 }
0x1ba7   :  { %8704 = vmatpush3.bf16.msra.mxu1 %v9376_v6  ;;  %8035 = vmatprep.mubr.msk.f32.mxu1 %vm9298_vm1, %v9299_v20 }
0x1ba8   :  { %8705 = vmatprep.subr.bf16.mxu1 %v9297_v7 }
0x1bab   :  { %8707 = vmatpush3.bf16.msra.mxu1 %v9391_v11 }
0x1bac   :  { %8714 = vmatprep.subr.bf16.mxu1 %v9297_v7 }
0x1c57   :  { %v2948_v46 = vpop.f32.mrb[36].mxu0 }
0x1c58   :  { %v2952_v48 = vadd.f32 %v2948_v46, %v269_v41  ;;  %v8004_v44 = vpop.f32.mrb[37].mxu0 }
0x1c5a   :  { %9077 = vtanh.f32 %v2952_v48  ;;  %v2953_v60 = vmul.f32 0.5, %v2952_v48 }
0x1c5f   :  { %v3113_v52 = vpop.f32.mrb[38].mxu0 }
0x1c60   :  { %v8026_v53 = vpop.f32.mrb[39].mxu0 }
0x1c64   :  { %v9078_v54 = vpop.eup %9077 }
0x1c65   :  { %2960 = vrot.lane.b32.xlu0 %v9078_v54, %s9300_s26 }
0x1c79   :  { %v3043_v4 = vpop.f32.mrb[44].mxu1 }
0x1c7a   :  { %v3114_v55 = vadd.f32 %v3113_v52, %v3043_v4  ;;  %v8015_v57 = vpop.f32.mrb[45].mxu1 }
0x1c7c   :  { %v3117_v58 = vadd.f32 %v9900_v61, %v3114_v55 }
0x1c7e   :  { %9079 = vtanh.f32 %v3117_v58  ;;  %v3118_v31 = vmul.f32 0.5, %v3117_v58 }
0x1c7f   :  { %9081 = vtanh.f32 %v2953_v60 }
0x1c80   :  { %9083 = vtanh.f32 %v3118_v31 }
0x1c88   :  { %v9080_v10 = vpop.eup %9079 }
0x1c89   :  { %3125 = vrot.lane.b32.xlu1 %v9080_v10, %s9300_s26  ;;  %v9082_v18 = vpop.eup %9081 }
0x1c8a   :  { %v2955_v8 = vmul.f32 0.5, %v9082_v18  ;;  %v9084_v12 = vpop.eup %9083 }
0x1c8b   :  { %v3120_v13 = vmul.f32 0.5, %v9084_v12 }
0x1c8c   :  { %v2956_v16 = vadd.f32 0.5, %v2955_v8 }
0x1c8d   :  { %v3121_v0 = vadd.f32 0.5, %v3120_v13 }
0x1c8e   :  { %v2958_v5 = vmul.f32 %v2956_v16, %v9948_v9 }
0x1c8f   :  { %v3123_v36 = vmul.f32 %v3121_v0, %v9953_v45 }
0x1cd7   :  { %v2961_v15 = vpop.permute.xlu0 %2960 }
0x1cd8   :  { %v2963_v62 = vmul.f32 %v2961_v15, %v2956_v16 }
0x1cda   :  { %2965 = vrot.lane.b32.xlu0 %v2963_v62, %s9301_s27 }
0x1cfb   :  { %v3126_v1 = vpop.permute.xlu1 %3125 }
0x1cfc   :  { %v3128_v3 = vmul.f32 %v3126_v1, %v3121_v0 }
0x1cfe   :  { %3130 = vrot.lane.b32.xlu1 %v3128_v3, %s9301_s27 }
0x1d4c   :  { %v2966_v14 = vpop.permute.xlu0 %2965 }
0x1d4d   :  { %v9989_v34 = vadd.f32 %v2966_v14, %v2958_v5 }
0x1d4f   :  { %9085 = vtanh.f32 %v9989_v34 }
0x1d59   :  { %v9086_v42 = vpop.eup %9085 }
0x1d5a   :  { %2971 = vrot.lane.b32.xlu0 %v9086_v42, %s9300_s26 }
0x1d70   :  { %v3131_v37 = vpop.permute.xlu1 %3130 }
0x1d71   :  { %v9994_v26 = vadd.f32 %v3131_v37, %v3123_v36 }
0x1d73   :  { %9087 = vtanh.f32 %v9994_v26 }
0x1d7d   :  { %v9088_v35 = vpop.eup %9087 }
0x1d7e   :  { %3136 = vrot.lane.b32.xlu1 %v9088_v35, %s9300_s26 }
0x1dcc   :  { %v2972_v40 = vpop.permute.xlu0 %2971 }
0x1dcd   :  { %v2974_v9 = vmul.f32 %v2972_v40, %v2956_v16 }
0x1dcf   :  { %3147 = vrot.lane.b32.xlu0 %v2974_v9, %s9301_s27 }
0x1df0   :  { %v3137_v43 = vpop.permute.xlu1 %3136 }
0x1df1   :  { %v3139_v39 = vmul.f32 %v3137_v43, %v3121_v0  ;;  %v279_v43 = vadd.f32 %v9851_v50, %v9638_v24 }
0x1df3   :  { %3141 = vrot.lane.b32.xlu1 %v3139_v39, %s9301_s27 }
0x1e41   :  { %v3148_v2 = vpop.permute.xlu0 %3147 }
0x1e42   :  { %8036 = vmatmul.mubr.msk.f32.vlgmr.msra.gmra.mrb[46].mxu1 %vm362_vm2, %v3148_v2 }
0x1e43   :  { %8716 = vmatpush3.bf16.msra.mxu1 %v9479_v51  ;;  %8057 = vmatprep.mubr.msk.f32.mxu1 %vm9298_vm1, %v9299_v20 }
0x1e44   :  { %8717 = vmatprep.subr.bf16.mxu1 %v9297_v7 }
0x1e47   :  { %8719 = vmatpush3.bf16.msra.mxu1 %v9489_v56 }
0x1e48   :  { %8726 = vmatprep.subr.bf16.mxu1 %v9297_v7 }
0x1e4a   :  { %8058 = vmatmul.mubr.msk.f32.vlgmr.msra.gmra.mrb[48].mxu1 %vm362_vm2, %v3148_v2 }
0x1e4b   :  { %8728 = vmatpush3.bf16.msra.mxu1 %v9500_v59  ;;  %8079 = vmatprep.mubr.msk.f32.mxu1 %vm9298_vm1, %v9299_v20 }
0x1e4c   :  { %8729 = vmatprep.subr.bf16.mxu1 %v9297_v7 }
0x1e4f   :  { %8731 = vmatpush3.bf16.msra.mxu1 %v9510_v63 }
0x1e50   :  { %8738 = vmatprep.subr.bf16.mxu1 %v9297_v7 }
0x1e65   :  { %v3142_v45 = vpop.permute.xlu1 %3141 }
0x1e66   :  { %3144 = vst.msk [vmem:[#allocation3 + $0x28] sm:$0xff] %vm362_vm2, %v3142_v45  ;;  %8047 = vmatmul.mubr.msk.f32.vlgmr.msra.gmra.mrb[40].mxu0 %vm362_vm2, %v3142_v45 }
0x1e67   :  { %8722 = vmatpush3.bf16.msra.mxu0 %v9376_v6  ;;  %8068 = vmatprep.mubr.msk.f32.mxu0 %vm9298_vm1, %v9299_v20 }
0x1e68   :  { %8723 = vmatprep.subr.bf16.mxu0 %v9297_v7 }
0x1e6b   :  { %8725 = vmatpush3.bf16.msra.mxu0 %v9391_v11 }
0x1e6c   :  { %8732 = vmatprep.subr.bf16.mxu0 %v9297_v7 }
0x1f15   :  { %v3217_v49 = vpop.f32.mrb[46].mxu1 }
0x1f16   :  { %v3221_v38 = vadd.f32 %v3217_v49, %v274_v47  ;;  %v8037_v41 = vpop.f32.mrb[47].mxu1 }
0x1f18   :  { %9089 = vtanh.f32 %v3221_v38  ;;  %v3222_v57 = vmul.f32 0.5, %v3221_v38 }
0x1f1d   :  { %v3382_v46 = vpop.f32.mrb[48].mxu1 }
0x1f1e   :  { %v8059_v48 = vpop.f32.mrb[49].mxu1 }
0x1f22   :  { %v9090_v44 = vpop.eup %9089 }
0x1f23   :  { %3229 = vrot.lane.b32.xlu0 %v9090_v44, %s9300_s26 }
0x1f39   :  { %v3312_v52 = vpop.f32.mrb[40].mxu0 }
0x1f3a   :  { %v3383_v53 = vadd.f32 %v3382_v46, %v3312_v52  ;;  %v8048_v54 = vpop.f32.mrb[41].mxu0 }
0x1f3c   :  { %v3386_v4 = vadd.f32 %v9900_v61, %v3383_v53 }
0x1f3e   :  { %9091 = vtanh.f32 %v3386_v4  ;;  %v3387_v8 = vmul.f32 0.5, %v3386_v4 }
0x1f3f   :  { %9093 = vtanh.f32 %v3222_v57 }
0x1f40   :  { %9095 = vtanh.f32 %v3387_v8 }
0x1f48   :  { %v9092_v55 = vpop.eup %9091 }
0x1f49   :  { %3394 = vrot.lane.b32.xlu1 %v9092_v55, %s9300_s26  ;;  %v9094_v17 = vpop.eup %9093 }
0x1f4a   :  { %v3224_v58 = vmul.f32 0.5, %v9094_v17  ;;  %v9096_v16 = vpop.eup %9095 }
0x1f4b   :  { %v3389_v15 = vmul.f32 0.5, %v9096_v16 }
0x1f4c   :  { %v3225_v10 = vadd.f32 0.5, %v3224_v58 }
0x1f4d   :  { %v3390_v62 = vadd.f32 0.5, %v3389_v15 }
0x1f4e   :  { %v3227_v13 = vmul.f32 %v3225_v10, %v9989_v34 }
0x1f4f   :  { %v3392_v5 = vmul.f32 %v3390_v62, %v9994_v26 }
0x1f95   :  { %v3230_v60 = vpop.permute.xlu0 %3229 }
0x1f96   :  { %v3232_v18 = vmul.f32 %v3230_v60, %v3225_v10 }
0x1f98   :  { %3234 = vrot.lane.b32.xlu0 %v3232_v18, %s9301_s27 }
0x1fbb   :  { %v3395_v31 = vpop.permute.xlu1 %3394 }
0x1fbc   :  { %v3397_v12 = vmul.f32 %v3395_v31, %v3390_v62 }
0x1fbe   :  { %3399 = vrot.lane.b32.xlu1 %v3397_v12, %s9301_s27 }
0x200a   :  { %v3235_v0 = vpop.permute.xlu0 %3234 }
0x200b   :  { %v10030_v1 = vadd.f32 %v3235_v0, %v3227_v13 }
0x200d   :  { %9097 = vtanh.f32 %v10030_v1 }
0x2017   :  { %v9098_v3 = vpop.eup %9097 }
0x2018   :  { %3240 = vrot.lane.b32.xlu0 %v9098_v3, %s9300_s26 }
0x2030   :  { %v3400_v14 = vpop.permute.xlu1 %3399 }
0x2031   :  { %v10035_v42 = vadd.f32 %v3400_v14, %v3392_v5 }
0x2033   :  { %9099 = vtanh.f32 %v10035_v42 }
0x203d   :  { %v9100_v36 = vpop.eup %9099 }
0x203e   :  { %3405 = vrot.lane.b32.xlu1 %v9100_v36, %s9300_s26 }
0x208a   :  { %v3241_v37 = vpop.permute.xlu0 %3240 }
0x208b   :  { %v3243_v34 = vmul.f32 %v3241_v37, %v3225_v10 }
0x208d   :  { %3416 = vrot.lane.b32.xlu0 %v3243_v34, %s9301_s27  ;;  %v284_v34 = vadd.f32 %v9851_v50, %v9636_v19 }
0x20b0   :  { %v3406_v35 = vpop.permute.xlu1 %3405 }
0x20b1   :  { %v3408_v40 = vmul.f32 %v3406_v35, %v3390_v62 }
0x20b3   :  { %3410 = vrot.lane.b32.xlu1 %v3408_v40, %s9301_s27 }
0x20ff   :  { %v3417_v9 = vpop.permute.xlu0 %3416 }
0x2100   :  { %8069 = vmatmul.mubr.msk.f32.vlgmr.msra.gmra.mrb[42].mxu0 %vm362_vm2, %v3417_v9 }
0x2101   :  { %8734 = vmatpush3.bf16.msra.mxu0 %v9479_v51  ;;  %8090 = vmatprep.mubr.msk.f32.mxu0 %vm9298_vm1, %v9299_v20 }
0x2102   :  { %8735 = vmatprep.subr.bf16.mxu0 %v9297_v7 }
0x2105   :  { %8737 = vmatpush3.bf16.msra.mxu0 %v9489_v56 }
0x2106   :  { %8744 = vmatprep.subr.bf16.mxu0 %v9297_v7 }
0x2108   :  { %8091 = vmatmul.mubr.msk.f32.vlgmr.msra.gmra.mrb[44].mxu0 %vm362_vm2, %v3417_v9 }
0x2109   :  { %8746 = vmatpush3.bf16.msra.mxu0 %v9500_v59  ;;  %8112 = vmatprep.mubr.msk.f32.mxu0 %vm9298_vm1, %v9299_v20 }
0x210a   :  { %8747 = vmatprep.subr.bf16.mxu0 %v9297_v7 }
0x210d   :  { %8749 = vmatpush3.bf16.msra.mxu0 %v9510_v63 }
0x210e   :  { %8756 = vmatprep.subr.bf16.mxu0 %v9297_v7 }
0x2125   :  { %v3411_v26 = vpop.permute.xlu1 %3410 }
0x2126   :  { %3413 = vst.msk [vmem:[#allocation3 + $0x30] sm:$0xff] %vm362_vm2, %v3411_v26  ;;  %8080 = vmatmul.mubr.msk.f32.vlgmr.msra.gmra.mrb[50].mxu1 %vm362_vm2, %v3411_v26 }
0x2127   :  { %8740 = vmatpush3.bf16.msra.mxu1 %v9376_v6  ;;  %8101 = vmatprep.mubr.msk.f32.mxu1 %vm9298_vm1, %v9299_v20 }
0x2128   :  { %8741 = vmatprep.subr.bf16.mxu1 %v9297_v7 }
0x212b   :  { %8743 = vmatpush3.bf16.msra.mxu1 %v9391_v11 }
0x212c   :  { %8750 = vmatprep.subr.bf16.mxu1 %v9297_v7 }
0x21d3   :  { %v3486_v39 = vpop.f32.mrb[42].mxu0 }
0x21d4   :  { %v3490_v2 = vadd.f32 %v3486_v39, %v279_v43  ;;  %v8070_v45 = vpop.f32.mrb[43].mxu0 }
0x21d6   :  { %9101 = vtanh.f32 %v3490_v2  ;;  %v3491_v53 = vmul.f32 0.5, %v3490_v2 }
0x21db   :  { %v3651_v47 = vpop.f32.mrb[44].mxu0 }
0x21dc   :  { %v8092_v49 = vpop.f32.mrb[45].mxu0 }
0x21e0   :  { %v9102_v38 = vpop.eup %9101 }
0x21e1   :  { %3498 = vrot.lane.b32.xlu0 %v9102_v38, %s9300_s26 }
0x21f9   :  { %v3581_v41 = vpop.f32.mrb[50].mxu1 }
0x21fa   :  { %v3652_v46 = vadd.f32 %v3651_v47, %v3581_v41  ;;  %v8081_v48 = vpop.f32.mrb[51].mxu1 }
0x21fc   :  { %v3655_v44 = vadd.f32 %v9900_v61, %v3652_v46 }
0x21fe   :  { %9103 = vtanh.f32 %v3655_v44  ;;  %v3656_v17 = vmul.f32 0.5, %v3655_v44 }
0x21ff   :  { %9105 = vtanh.f32 %v3491_v53 }
0x2200   :  { %9107 = vtanh.f32 %v3656_v17 }
0x2208   :  { %v9104_v52 = vpop.eup %9103 }
0x2209   :  { %3663 = vrot.lane.b32.xlu1 %v9104_v52, %s9300_s26  ;;  %v9106_v24 = vpop.eup %9105 }
0x220a   :  { %v3493_v54 = vmul.f32 0.5, %v9106_v24  ;;  %v9108_v58 = vpop.eup %9107 }
0x220b   :  { %v3658_v10 = vmul.f32 0.5, %v9108_v58 }
0x220c   :  { %v3494_v4 = vadd.f32 0.5, %v3493_v54 }
0x220d   :  { %v3659_v60 = vadd.f32 0.5, %v3658_v10 }
0x220e   :  { %v3496_v16 = vmul.f32 %v3494_v4, %v10030_v1 }
0x220f   :  { %v3661_v12 = vmul.f32 %v3659_v60, %v10035_v42 }
0x2253   :  { %v3499_v55 = vpop.permute.xlu0 %3498 }
0x2254   :  { %v3501_v57 = vmul.f32 %v3499_v55, %v3494_v4 }
0x2256   :  { %3503 = vrot.lane.b32.xlu0 %v3501_v57, %s9301_s27 }
0x227b   :  { %v3664_v18 = vpop.permute.xlu1 %3663 }
0x227c   :  { %v3666_v8 = vmul.f32 %v3664_v18, %v3659_v60 }
0x227e   :  { %3668 = vrot.lane.b32.xlu1 %v3666_v8, %s9301_s27 }
0x22c8   :  { %v3504_v15 = vpop.permute.xlu0 %3503 }
0x22c9   :  { %v10071_v62 = vadd.f32 %v3504_v15, %v3496_v16 }
0x22cb   :  { %9109 = vtanh.f32 %v10071_v62 }
0x22d5   :  { %v9110_v31 = vpop.eup %9109 }
0x22d6   :  { %3509 = vrot.lane.b32.xlu0 %v9110_v31, %s9300_s26 }
0x22f0   :  { %v3669_v13 = vpop.permute.xlu1 %3668 }
0x22f1   :  { %v10076_v0 = vadd.f32 %v3669_v13, %v3661_v12 }
0x22f3   :  { %9111 = vtanh.f32 %v10076_v0 }
0x22fd   :  { %v9112_v3 = vpop.eup %9111 }
0x22fe   :  { %3674 = vrot.lane.b32.xlu1 %v9112_v3, %s9300_s26 }
0x2348   :  { %v3510_v5 = vpop.permute.xlu0 %3509 }
0x2349   :  { %v3512_v1 = vmul.f32 %v3510_v5, %v3494_v4  ;;  %v289_v5 = vadd.f32 %v9851_v50, %v9441_v22 }
0x234b   :  { %3685 = vrot.lane.b32.xlu0 %v3512_v1, %s9301_s27 }
0x2370   :  { %v3675_v14 = vpop.permute.xlu1 %3674 }
0x2371   :  { %v3677_v36 = vmul.f32 %v3675_v14, %v3659_v60 }
0x2373   :  { %3679 = vrot.lane.b32.xlu1 %v3677_v36, %s9301_s27 }
0x23bd   :  { %v3686_v37 = vpop.permute.xlu0 %3685 }
0x23be   :  { %8102 = vmatmul.mubr.msk.f32.vlgmr.msra.gmra.mrb[52].mxu1 %vm362_vm2, %v3686_v37 }
0x23bf   :  { %8752 = vmatpush3.bf16.msra.mxu1 %v9479_v51  ;;  %8123 = vmatprep.mubr.msk.f32.mxu1 %vm9298_vm1, %v9299_v20 }
0x23c0   :  { %8753 = vmatprep.subr.bf16.mxu1 %v9297_v7 }
0x23c3   :  { %8755 = vmatpush3.bf16.msra.mxu1 %v9489_v56 }
0x23c4   :  { %8762 = vmatprep.subr.bf16.mxu1 %v9297_v7 }
0x23c6   :  { %8124 = vmatmul.mubr.msk.f32.vlgmr.msra.gmra.mrb[54].mxu1 %vm362_vm2, %v3686_v37 }
0x23c7   :  { %8764 = vmatpush3.bf16.msra.mxu1 %v9500_v59  ;;  %8145 = vmatprep.mubr.msk.f32.mxu1 %vm9298_vm1, %v9299_v20 }
0x23c8   :  { %8765 = vmatprep.subr.bf16.mxu1 %v9297_v7 }
0x23cb   :  { %8767 = vmatpush3.bf16.msra.mxu1 %v9510_v63 }
0x23cc   :  { %8774 = vmatprep.subr.bf16.mxu1 %v9297_v7 }
0x23e5   :  { %v3680_v42 = vpop.permute.xlu1 %3679 }
0x23e6   :  { %3682 = vst.msk [vmem:[#allocation3 + $0x38] sm:$0xff] %vm362_vm2, %v3680_v42  ;;  %8113 = vmatmul.mubr.msk.f32.vlgmr.msra.gmra.mrb[46].mxu0 %vm362_vm2, %v3680_v42 }
0x23e7   :  { %8758 = vmatpush3.bf16.msra.mxu0 %v9376_v6  ;;  %8134 = vmatprep.mubr.msk.f32.mxu0 %vm9298_vm1, %v9299_v20 }
0x23e8   :  { %8759 = vmatprep.subr.bf16.mxu0 %v9297_v7 }
0x23eb   :  { %8761 = vmatpush3.bf16.msra.mxu0 %v9391_v11 }
0x23ec   :  { %8768 = vmatprep.subr.bf16.mxu0 %v9297_v7 }
0x2491   :  { %v3755_v35 = vpop.f32.mrb[52].mxu1 }
0x2492   :  { %v3759_v40 = vadd.f32 %v3755_v35, %v284_v34  ;;  %v8103_v9 = vpop.f32.mrb[53].mxu1 }
0x2494   :  { %9113 = vtanh.f32 %v3759_v40  ;;  %v3760_v41 = vmul.f32 0.5, %v3759_v40 }
0x2499   :  { %v3920_v26 = vpop.f32.mrb[54].mxu1 }
0x249a   :  { %v8125_v43 = vpop.f32.mrb[55].mxu1 }
0x249e   :  { %v9114_v39 = vpop.eup %9113 }
0x249f   :  { %3767 = vrot.lane.b32.xlu0 %v9114_v39, %s9300_s26 }
0x24b9   :  { %v3850_v2 = vpop.f32.mrb[46].mxu0 }
0x24ba   :  { %v3921_v45 = vadd.f32 %v3920_v26, %v3850_v2  ;;  %v8114_v47 = vpop.f32.mrb[47].mxu0 }
0x24bc   :  { %v3924_v49 = vadd.f32 %v9900_v61, %v3921_v45 }
0x24be   :  { %9115 = vtanh.f32 %v3924_v49  ;;  %v3925_v53 = vmul.f32 0.5, %v3924_v49 }
0x24bf   :  { %9117 = vtanh.f32 %v3760_v41 }
0x24c0   :  { %9119 = vtanh.f32 %v3925_v53 }
0x24c8   :  { %v9116_v38 = vpop.eup %9115 }
0x24c9   :  { %3932 = vrot.lane.b32.xlu1 %v9116_v38, %s9300_s26  ;;  %v9118_v19 = vpop.eup %9117 }
0x24ca   :  { %v3762_v46 = vmul.f32 0.5, %v9118_v19  ;;  %v9120_v24 = vpop.eup %9119 }
0x24cb   :  { %v3927_v54 = vmul.f32 0.5, %v9120_v24 }
0x24cc   :  { %v3763_v48 = vadd.f32 0.5, %v3762_v46 }
0x24cd   :  { %v3928_v4 = vadd.f32 0.5, %v3927_v54 }
0x24ce   :  { %v3765_v17 = vmul.f32 %v3763_v48, %v10071_v62 }
0x24cf   :  { %v3930_v18 = vmul.f32 %v3928_v4, %v10076_v0 }
0x2511   :  { %v3768_v44 = vpop.permute.xlu0 %3767 }
0x2512   :  { %v3770_v52 = vmul.f32 %v3768_v44, %v3763_v48 }
0x2514   :  { %3772 = vrot.lane.b32.xlu0 %v3770_v52, %s9301_s27 }
0x253b   :  { %v3933_v55 = vpop.permute.xlu1 %3932 }
0x253c   :  { %v3935_v57 = vmul.f32 %v3933_v55, %v3928_v4 }
0x253e   :  { %3937 = vrot.lane.b32.xlu1 %v3935_v57, %s9301_s27 }
0x2586   :  { %v3773_v58 = vpop.permute.xlu0 %3772 }
0x2587   :  { %v10112_v10 = vadd.f32 %v3773_v58, %v3765_v17 }
0x2589   :  { %9121 = vtanh.f32 %v10112_v10 }
0x2593   :  { %v9122_v60 = vpop.eup %9121 }
0x2594   :  { %3778 = vrot.lane.b32.xlu0 %v9122_v60, %s9300_s26 }
0x25b0   :  { %v3938_v8 = vpop.permute.xlu1 %3937 }
0x25b1   :  { %v10117_v16 = vadd.f32 %v3938_v8, %v3930_v18 }
0x25b3   :  { %9123 = vtanh.f32 %v10117_v16 }
0x25bd   :  { %v9124_v15 = vpop.eup %9123 }
0x25be   :  { %3943 = vrot.lane.b32.xlu1 %v9124_v15, %s9300_s26 }
0x2606   :  { %v3779_v31 = vpop.permute.xlu0 %3778 }
0x2607   :  { %v3781_v62 = vmul.f32 %v3779_v31, %v3763_v48 }
0x2609   :  { %3954 = vrot.lane.b32.xlu0 %v3781_v62, %s9301_s27 }
0x2630   :  { %v3944_v12 = vpop.permute.xlu1 %3943 }
0x2631   :  { %v3946_v13 = vmul.f32 %v3944_v12, %v3928_v4 }
0x2633   :  { %3948 = vrot.lane.b32.xlu1 %v3946_v13, %s9301_s27 }
0x267b   :  { %v3955_v3 = vpop.permute.xlu0 %3954 }
0x267c   :  { %8135 = vmatmul.mubr.msk.f32.vlgmr.msra.gmra.mrb[48].mxu0 %vm362_vm2, %v3955_v3 }
0x267d   :  { %8770 = vmatpush3.bf16.msra.mxu0 %v9479_v51  ;;  %8156 = vmatprep.mubr.msk.f32.mxu0 %vm9298_vm1, %v9299_v20 }
0x267e   :  { %8771 = vmatprep.subr.bf16.mxu0 %v9297_v7 }
0x2681   :  { %8773 = vmatpush3.bf16.msra.mxu0 %v9489_v56 }
0x2682   :  { %8780 = vmatprep.subr.bf16.mxu0 %v9297_v7 }
0x2684   :  { %8157 = vmatmul.mubr.msk.f32.vlgmr.msra.gmra.mrb[50].mxu0 %vm362_vm2, %v3955_v3 }
0x2685   :  { %8782 = vmatpush3.bf16.msra.mxu0 %v9500_v59  ;;  %8178 = vmatprep.mubr.msk.f32.mxu0 %vm9298_vm1, %v9299_v20 }
0x2686   :  { %8783 = vmatprep.subr.bf16.mxu0 %v9297_v7 }
0x2689   :  { %8785 = vmatpush3.bf16.msra.mxu0 %v9510_v63 }
0x268a   :  { %8792 = vmatprep.subr.bf16.mxu0 %v9297_v7 }
0x26a5   :  { %v3949_v0 = vpop.permute.xlu1 %3948 }
0x26a6   :  { %3951 = vst.msk [vmem:[#allocation3 + $0x40] sm:$0xff] %vm362_vm2, %v3949_v0  ;;  %8146 = vmatmul.mubr.msk.f32.vlgmr.msra.gmra.mrb[56].mxu1 %vm362_vm2, %v3949_v0 }
0x26a7   :  { %8776 = vmatpush3.bf16.msra.mxu1 %v9376_v6  ;;  %8167 = vmatprep.mubr.msk.f32.mxu1 %vm9298_vm1, %v9299_v20 }
0x26a8   :  { %8777 = vmatprep.subr.bf16.mxu1 %v9297_v7 }
0x26ab   :  { %8779 = vmatpush3.bf16.msra.mxu1 %v9391_v11 }
0x26ac   :  { %8786 = vmatprep.subr.bf16.mxu1 %v9297_v7 }
0x274f   :  { %v4024_v1 = vpop.f32.mrb[48].mxu0 }
0x2750   :  { %v4028_v14 = vadd.f32 %v4024_v1, %v289_v5  ;;  %v8136_v36 = vpop.f32.mrb[49].mxu0 }
0x2752   :  { %9125 = vtanh.f32 %v4028_v14  ;;  %v4029_v39 = vmul.f32 0.5, %v4028_v14 }
0x2757   :  { %v4189_v37 = vpop.f32.mrb[50].mxu0 }
0x2758   :  { %v8158_v42 = vpop.f32.mrb[51].mxu0 }
0x275c   :  { %v9126_v34 = vpop.eup %9125 }
0x275d   :  { %4036 = vrot.lane.b32.xlu0 %v9126_v34, %s9300_s26 }
0x2779   :  { %v4119_v35 = vpop.f32.mrb[56].mxu1 }
0x277a   :  { %v4190_v40 = vadd.f32 %v4189_v37, %v4119_v35  ;;  %v8147_v9 = vpop.f32.mrb[57].mxu1 }
0x277c   :  { %v4193_v26 = vadd.f32 %v9900_v61, %v4190_v40 }
0x277e   :  { %9127 = vtanh.f32 %v4193_v26  ;;  %v4194_v49 = vmul.f32 0.5, %v4193_v26 }
0x277f   :  { %9129 = vtanh.f32 %v4029_v39 }
0x2780   :  { %9131 = vtanh.f32 %v4194_v49 }
0x2788   :  { %v9128_v43 = vpop.eup %9127 }
0x2789   :  { %4201 = vrot.lane.b32.xlu1 %v9128_v43, %s9300_s26  ;;  %v9130_v22 = vpop.eup %9129 }
0x278a   :  { %v4031_v50 = vmul.f32 0.5, %v9130_v22  ;;  %v9132_v38 = vpop.eup %9131 }
0x278b   :  { %v4196_v41 = vmul.f32 0.5, %v9132_v38 }
0x278c   :  { %v4032_v2 = vadd.f32 0.5, %v4031_v50 }
0x278d   :  { %v4197_v19 = vadd.f32 0.5, %v4196_v41 }
0x278e   :  { %v4034_v44 = vmul.f32 %v4032_v2, %v10112_v10 }
0x278f   :  { %v4199_v54 = vmul.f32 %v4197_v19, %v10117_v16  ;;  %v10189_v16 = vld [vmem:[%s10680_s3] ss:$0 sm:$0xff] }
0x2790   :  { %v294_v15 = vadd.f32 %v10189_v16, %v9439_v21 }
0x27cf   :  { %v4037_v45 = vpop.permute.xlu0 %4036 }
0x27d0   :  { %v4039_v47 = vmul.f32 %v4037_v45, %v4032_v2 }
0x27d2   :  { %4041 = vrot.lane.b32.xlu0 %v4039_v47, %s9301_s27 }
0x27fb   :  { %v4202_v46 = vpop.permute.xlu1 %4201 }
0x27fc   :  { %v4204_v48 = vmul.f32 %v4202_v46, %v4197_v19 }
0x27fe   :  { %4206 = vrot.lane.b32.xlu1 %v4204_v48, %s9301_s27 }
0x2844   :  { %v4042_v52 = vpop.permute.xlu0 %4041 }
0x2845   :  { %v10153_v53 = vadd.f32 %v4042_v52, %v4034_v44 }
0x2847   :  { %9133 = vtanh.f32 %v10153_v53 }
0x2851   :  { %v9134_v24 = vpop.eup %9133 }
0x2852   :  { %4047 = vrot.lane.b32.xlu0 %v9134_v24, %s9300_s26 }
0x2870   :  { %v4207_v4 = vpop.permute.xlu1 %4206 }
0x2871   :  { %v10158_v55 = vadd.f32 %v4207_v4, %v4199_v54  ;;  %v299_v4 = vadd.f32 %v10189_v16, %v9447_v25 }
0x2873   :  { %9135 = vtanh.f32 %v10158_v55 }
0x287d   :  { %v9136_v57 = vpop.eup %9135 }
0x287e   :  { %4212 = vrot.lane.b32.xlu1 %v9136_v57, %s9300_s26 }
0x28c4   :  { %v4048_v17 = vpop.permute.xlu0 %4047 }
0x28c5   :  { %v4050_v58 = vmul.f32 %v4048_v17, %v4032_v2 }
0x28c7   :  { %4223 = vrot.lane.b32.xlu0 %v4050_v58, %s9301_s27 }
0x28f0   :  { %v4213_v10 = vpop.permute.xlu1 %4212 }
0x28f1   :  { %v4215_v60 = vmul.f32 %v4213_v10, %v4197_v19 }
0x28f3   :  { %4217 = vrot.lane.b32.xlu1 %v4215_v60, %s9301_s27 }
0x2939   :  { %v4224_v18 = vpop.permute.xlu0 %4223 }
0x293a   :  { %8168 = vmatmul.mubr.msk.f32.vlgmr.msra.gmra.mrb[58].mxu1 %vm362_vm2, %v4224_v18 }
0x293b   :  { %8788 = vmatpush3.bf16.msra.mxu1 %v9479_v51  ;;  %8189 = vmatprep.mubr.msk.f32.mxu1 %vm9298_vm1, %v9299_v20 }
0x293c   :  { %8789 = vmatprep.subr.bf16.mxu1 %v9297_v7 }
0x293f   :  { %8791 = vmatpush3.bf16.msra.mxu1 %v9489_v56 }
0x2940   :  { %8798 = vmatprep.subr.bf16.mxu1 %v9297_v7 }
0x2942   :  { %8190 = vmatmul.mubr.msk.f32.vlgmr.msra.gmra.mrb[60].mxu1 %vm362_vm2, %v4224_v18 }
0x2943   :  { %8800 = vmatpush3.bf16.msra.mxu1 %v9500_v59  ;;  %8211 = vmatprep.mubr.msk.f32.mxu1 %vm9298_vm1, %v9299_v20 }
0x2944   :  { %8801 = vmatprep.subr.bf16.mxu1 %v9297_v7 }
0x2947   :  { %8803 = vmatpush3.bf16.msra.mxu1 %v9510_v63 }
0x2948   :  { %8810 = vmatprep.subr.bf16.mxu1 %v9297_v7 }
0x2965   :  { %v4218_v8 = vpop.permute.xlu1 %4217 }
0x2966   :  { %4220 = vst.msk [vmem:[#allocation3 + $0x48] sm:$0xff] %vm362_vm2, %v4218_v8  ;;  %8179 = vmatmul.mubr.msk.f32.vlgmr.msra.gmra.mrb[52].mxu0 %vm362_vm2, %v4218_v8 }
0x2967   :  { %8794 = vmatpush3.bf16.msra.mxu0 %v9376_v6  ;;  %8200 = vmatprep.mubr.msk.f32.mxu0 %vm9298_vm1, %v9299_v20 }
0x2968   :  { %8795 = vmatprep.subr.bf16.mxu0 %v9297_v7 }
0x296b   :  { %8797 = vmatpush3.bf16.msra.mxu0 %v9391_v11 }
0x296c   :  { %8804 = vmatprep.subr.bf16.mxu0 %v9297_v7 }
0x2a0d   :  { %v4293_v31 = vpop.f32.mrb[58].mxu1 }
0x2a0e   :  { %v4297_v62 = vadd.f32 %v4293_v31, %v294_v15  ;;  %v8169_v12 = vpop.f32.mrb[59].mxu1  ;;  %v10238_v31 = vld [vmem:[%s10683_s6] ss:$0 sm:$0xff] }
0x2a10   :  { %9137 = vtanh.f32 %v4297_v62  ;;  %v4298_v42 = vmul.f32 0.5, %v4297_v62 }
0x2a15   :  { %v4458_v13 = vpop.f32.mrb[60].mxu1 }
0x2a16   :  { %v8191_v3 = vpop.f32.mrb[61].mxu1 }
0x2a1a   :  { %v9138_v0 = vpop.eup %9137 }
0x2a1b   :  { %4305 = vrot.lane.b32.xlu0 %v9138_v0, %s9300_s26 }
0x2a39   :  { %v4388_v5 = vpop.f32.mrb[52].mxu0 }
0x2a3a   :  { %v4459_v1 = vadd.f32 %v4458_v13, %v4388_v5  ;;  %v8180_v14 = vpop.f32.mrb[53].mxu0 }
0x2a3c   :  { %v4462_v36 = vadd.f32 %v9900_v61, %v4459_v1 }
0x2a3e   :  { %9139 = vtanh.f32 %v4462_v36  ;;  %v4463_v26 = vmul.f32 0.5, %v4462_v36 }
0x2a3f   :  { %9141 = vtanh.f32 %v4298_v42 }
0x2a40   :  { %9143 = vtanh.f32 %v4463_v26 }
0x2a48   :  { %v9140_v37 = vpop.eup %9139 }
0x2a49   :  { %4470 = vrot.lane.b32.xlu1 %v9140_v37, %s9300_s26  ;;  %v9142_v21 = vpop.eup %9141 }
0x2a4a   :  { %v4300_v34 = vmul.f32 0.5, %v9142_v21  ;;  %v9144_v43 = vpop.eup %9143 }
0x2a4b   :  { %v4465_v39 = vmul.f32 0.5, %v9144_v43 }
0x2a4c   :  { %v4301_v35 = vadd.f32 0.5, %v4300_v34 }
0x2a4d   :  { %v4466_v22 = vadd.f32 0.5, %v4465_v39 }
0x2a4e   :  { %v4303_v2 = vmul.f32 %v4301_v35, %v10153_v53 }
0x2a4f   :  { %v4468_v38 = vmul.f32 %v4466_v22, %v10158_v55 }
0x2a8d   :  { %v4306_v40 = vpop.permute.xlu0 %4305 }
0x2a8e   :  { %v4308_v9 = vmul.f32 %v4306_v40, %v4301_v35 }
0x2a90   :  { %4310 = vrot.lane.b32.xlu0 %v4308_v9, %s9301_s27 }
0x2abb   :  { %v4471_v50 = vpop.permute.xlu1 %4470 }
0x2abc   :  { %v4473_v61 = vmul.f32 %v4471_v50, %v4466_v22 }
0x2abe   :  { %4475 = vrot.lane.b32.xlu1 %v4473_v61, %s9301_s27 }
0x2b02   :  { %v4311_v45 = vpop.permute.xlu0 %4310 }
0x2b03   :  { %v10199_v47 = vadd.f32 %v4311_v45, %v4303_v2 }
0x2b05   :  { %9145 = vtanh.f32 %v10199_v47 }
0x2b0f   :  { %v9146_v49 = vpop.eup %9145 }
0x2b10   :  { %4316 = vrot.lane.b32.xlu0 %v9146_v49, %s9300_s26 }
0x2b30   :  { %v4476_v41 = vpop.permute.xlu1 %4475 }
0x2b31   :  { %v10204_v19 = vadd.f32 %v4476_v41, %v4468_v38  ;;  %v304_v41 = vadd.f32 %v10189_v16, %v9443_v23 }
0x2b33   :  { %9147 = vtanh.f32 %v10204_v19 }
0x2b3d   :  { %v9148_v46 = vpop.eup %9147 }
0x2b3e   :  { %4481 = vrot.lane.b32.xlu1 %v9148_v46, %s9300_s26 }
0x2b82   :  { %v4317_v48 = vpop.permute.xlu0 %4316 }
0x2b83   :  { %v4319_v44 = vmul.f32 %v4317_v48, %v4301_v35 }
0x2b85   :  { %4492 = vrot.lane.b32.xlu0 %v4319_v44, %s9301_s27 }
0x2bb0   :  { %v4482_v52 = vpop.permute.xlu1 %4481 }
0x2bb1   :  { %v4484_v53 = vmul.f32 %v4482_v52, %v4466_v22 }
0x2bb3   :  { %4486 = vrot.lane.b32.xlu1 %v4484_v53, %s9301_s27 }
0x2bf7   :  { %v4493_v24 = vpop.permute.xlu0 %4492 }
0x2bf8   :  { %8201 = vmatmul.mubr.msk.f32.vlgmr.msra.gmra.mrb[54].mxu0 %vm362_vm2, %v4493_v24 }
0x2bf9   :  { %8806 = vmatpush3.bf16.msra.mxu0 %v9479_v51  ;;  %8222 = vmatprep.mubr.msk.f32.mxu0 %vm9298_vm1, %v9299_v20 }
0x2bfa   :  { %8807 = vmatprep.subr.bf16.mxu0 %v9297_v7 }
0x2bfd   :  { %8809 = vmatpush3.bf16.msra.mxu0 %v9489_v56 }
0x2bfe   :  { %8816 = vmatprep.subr.bf16.mxu0 %v9297_v7 }
0x2c00   :  { %8223 = vmatmul.mubr.msk.f32.vlgmr.msra.gmra.mrb[56].mxu0 %vm362_vm2, %v4493_v24 }
0x2c01   :  { %8818 = vmatpush3.bf16.msra.mxu0 %v9500_v59  ;;  %8244 = vmatprep.mubr.msk.f32.mxu0 %vm9298_vm1, %v9299_v20 }
0x2c02   :  { %8819 = vmatprep.subr.bf16.mxu0 %v9297_v7 }
0x2c05   :  { %8821 = vmatpush3.bf16.msra.mxu0 %v9510_v63 }
0x2c06   :  { %8828 = vmatprep.subr.bf16.mxu0 %v9297_v7 }
0x2c25   :  { %v4487_v54 = vpop.permute.xlu1 %4486 }
0x2c26   :  { %4489 = vst.msk [vmem:[#allocation3 + $0x50] sm:$0xff] %vm362_vm2, %v4487_v54  ;;  %8212 = vmatmul.mubr.msk.f32.vlgmr.msra.gmra.mrb[62].mxu1 %vm362_vm2, %v4487_v54 }
0x2c27   :  { %8812 = vmatpush3.bf16.msra.mxu1 %v9376_v6  ;;  %8233 = vmatprep.mubr.msk.f32.mxu1 %vm9298_vm1, %v9299_v20 }
0x2c28   :  { %8813 = vmatprep.subr.bf16.mxu1 %v9297_v7 }
0x2c2b   :  { %8815 = vmatpush3.bf16.msra.mxu1 %v9391_v11 }
0x2c2c   :  { %8822 = vmatprep.subr.bf16.mxu1 %v9297_v7 }
0x2ccb   :  { %v4562_v55 = vpop.f32.mrb[54].mxu0 }
0x2ccc   :  { %v4566_v57 = vadd.f32 %v4562_v55, %v299_v4  ;;  %v8202_v17 = vpop.f32.mrb[55].mxu0 }
0x2cce   :  { %9149 = vtanh.f32 %v4566_v57  ;;  %v4567_v12 = vmul.f32 0.5, %v4566_v57 }
0x2cd3   :  { %v4727_v58 = vpop.f32.mrb[56].mxu0 }
0x2cd4   :  { %v8224_v10 = vpop.f32.mrb[57].mxu0 }
0x2cd8   :  { %v9150_v60 = vpop.eup %9149 }
0x2cd9   :  { %4574 = vrot.lane.b32.xlu0 %v9150_v60, %s9300_s26 }
0x2cf9   :  { %v4657_v18 = vpop.f32.mrb[62].mxu1 }
0x2cfa   :  { %v4728_v8 = vadd.f32 %v4727_v58, %v4657_v18  ;;  %v8213_v15 = vpop.f32.mrb[63].mxu1 }
0x2cfc   :  { %v4731_v62 = vadd.f32 %v10238_v31, %v4728_v8 }
0x2cfe   :  { %9151 = vtanh.f32 %v4731_v62  ;;  %v4732_v14 = vmul.f32 0.5, %v4731_v62 }
0x2cff   :  { %9153 = vtanh.f32 %v4567_v12 }
0x2d00   :  { %9155 = vtanh.f32 %v4732_v14 }
0x2d08   :  { %v9152_v25 = vpop.eup %9151 }
0x2d09   :  { %4739 = vrot.lane.b32.xlu1 %v9152_v25, %s9300_s26  ;;  %v9154_v13 = vpop.eup %9153 }
0x2d0a   :  { %v4569_v3 = vmul.f32 0.5, %v9154_v13  ;;  %v9156_v36 = vpop.eup %9155 }
0x2d0b   :  { %v4734_v37 = vmul.f32 0.5, %v9156_v36 }
0x2d0c   :  { %v4570_v0 = vadd.f32 0.5, %v4569_v3 }
0x2d0d   :  { %v4735_v42 = vadd.f32 0.5, %v4734_v37 }
0x2d0e   :  { %v4572_v35 = vmul.f32 %v4570_v0, %v10199_v47 }
0x2d0f   :  { %v4737_v43 = vmul.f32 %v4735_v42, %v10204_v19 }
0x2d4b   :  { %v4575_v5 = vpop.permute.xlu0 %4574 }
0x2d4c   :  { %v4577_v1 = vmul.f32 %v4575_v5, %v4570_v0 }
0x2d4e   :  { %4579 = vrot.lane.b32.xlu0 %v4577_v1, %s9301_s27 }
0x2d7b   :  { %v4740_v21 = vpop.permute.xlu1 %4739 }
0x2d7c   :  { %v4742_v34 = vmul.f32 %v4740_v21, %v4735_v42 }
0x2d7e   :  { %4744 = vrot.lane.b32.xlu1 %v4742_v34, %s9301_s27 }
0x2dc0   :  { %v4580_v40 = vpop.permute.xlu0 %4579 }
0x2dc1   :  { %v10245_v9 = vadd.f32 %v4580_v40, %v4572_v35 }
0x2dc3   :  { %9157 = vtanh.f32 %v10245_v9 }
0x2dcd   :  { %v9158_v26 = vpop.eup %9157 }
0x2dce   :  { %4585 = vrot.lane.b32.xlu0 %v9158_v26, %s9300_s26 }
0x2df0   :  { %v4745_v39 = vpop.permute.xlu1 %4744 }
0x2df1   :  { %v10250_v22 = vadd.f32 %v4745_v39, %v4737_v43  ;;  %v309_v43 = vadd.f32 %v10189_v16, %v9451_v28 }
0x2df3   :  { %9159 = vtanh.f32 %v10250_v22 }
0x2dfd   :  { %v9160_v50 = vpop.eup %9159 }
0x2dfe   :  { %4750 = vrot.lane.b32.xlu1 %v9160_v50, %s9300_s26 }
0x2e40   :  { %v4586_v61 = vpop.permute.xlu0 %4585 }
0x2e41   :  { %v4588_v2 = vmul.f32 %v4586_v61, %v4570_v0 }
0x2e43   :  { %4761 = vrot.lane.b32.xlu0 %v4588_v2, %s9301_s27 }
0x2e70   :  { %v4751_v45 = vpop.permute.xlu1 %4750 }
0x2e71   :  { %v4753_v47 = vmul.f32 %v4751_v45, %v4735_v42 }
0x2e73   :  { %4755 = vrot.lane.b32.xlu1 %v4753_v47, %s9301_s27 }
0x2eb5   :  { %v4762_v49 = vpop.permute.xlu0 %4761 }
0x2eb6   :  { %8234 = vmatmul.mubr.msk.f32.vlgmr.msra.gmra.mrb[64].mxu1 %vm362_vm2, %v4762_v49 }
0x2eb7   :  { %8824 = vmatpush3.bf16.msra.mxu1 %v9479_v51  ;;  %8255 = vmatprep.mubr.msk.f32.mxu1 %vm9298_vm1, %v9299_v20 }
0x2eb8   :  { %8825 = vmatprep.subr.bf16.mxu1 %v9297_v7 }
0x2ebb   :  { %8827 = vmatpush3.bf16.msra.mxu1 %v9489_v56 }
0x2ebc   :  { %8834 = vmatprep.subr.bf16.mxu1 %v9297_v7 }
0x2ebe   :  { %8256 = vmatmul.mubr.msk.f32.vlgmr.msra.gmra.mrb[66].mxu1 %vm362_vm2, %v4762_v49 }
0x2ebf   :  { %8836 = vmatpush3.bf16.msra.mxu1 %v9500_v59  ;;  %8277 = vmatprep.mubr.msk.f32.mxu1 %vm9298_vm1, %v9299_v20 }
0x2ec0   :  { %8837 = vmatprep.subr.bf16.mxu1 %v9297_v7 }
0x2ec3   :  { %8839 = vmatpush3.bf16.msra.mxu1 %v9510_v63 }
0x2ec4   :  { %8846 = vmatprep.subr.bf16.mxu1 %v9297_v7 }
0x2ee5   :  { %v4756_v38 = vpop.permute.xlu1 %4755 }
0x2ee6   :  { %4758 = vst.msk [vmem:[#allocation3 + $0x58] sm:$0xff] %vm362_vm2, %v4756_v38  ;;  %8245 = vmatmul.mubr.msk.f32.vlgmr.msra.gmra.mrb[58].mxu0 %vm362_vm2, %v4756_v38 }
0x2ee7   :  { %8830 = vmatpush3.bf16.msra.mxu0 %v9376_v6  ;;  %8266 = vmatprep.mubr.msk.f32.mxu0 %vm9298_vm1, %v9299_v20 }
0x2ee8   :  { %8831 = vmatprep.subr.bf16.mxu0 %v9297_v7 }
0x2eeb   :  { %8833 = vmatpush3.bf16.msra.mxu0 %v9391_v11 }
0x2eec   :  { %8840 = vmatprep.subr.bf16.mxu0 %v9297_v7 }
0x2f89   :  { %v4831_v19 = vpop.f32.mrb[64].mxu1 }
0x2f8a   :  { %v4835_v46 = vadd.f32 %v4831_v19, %v304_v41  ;;  %v8235_v48 = vpop.f32.mrb[65].mxu1 }
0x2f8c   :  { %9161 = vtanh.f32 %v4835_v46  ;;  %v4836_v17 = vmul.f32 0.5, %v4835_v46 }
0x2f91   :  { %v4996_v44 = vpop.f32.mrb[66].mxu1 }
0x2f92   :  { %v8257_v52 = vpop.f32.mrb[67].mxu1 }
0x2f96   :  { %v9162_v53 = vpop.eup %9161 }
0x2f97   :  { %4843 = vrot.lane.b32.xlu0 %v9162_v53, %s9300_s26 }
0x2fb9   :  { %v4926_v24 = vpop.f32.mrb[58].mxu0 }
0x2fba   :  { %v4997_v54 = vadd.f32 %v4996_v44, %v4926_v24  ;;  %v8246_v4 = vpop.f32.mrb[59].mxu0 }
0x2fbc   :  { %v5000_v55 = vadd.f32 %v10238_v31, %v4997_v54 }
0x2fbe   :  { %9163 = vtanh.f32 %v5000_v55  ;;  %v5001_v8 = vmul.f32 0.5, %v5000_v55 }
0x2fbf   :  { %9165 = vtanh.f32 %v4836_v17 }
0x2fc0   :  { %9167 = vtanh.f32 %v5001_v8 }
0x2fc8   :  { %v9164_v57 = vpop.eup %9163 }
0x2fc9   :  { %5008 = vrot.lane.b32.xlu1 %v9164_v57, %s9300_s26  ;;  %v9166_v23 = vpop.eup %9165 }
0x2fca   :  { %v4838_v58 = vmul.f32 0.5, %v9166_v23  ;;  %v9168_v15 = vpop.eup %9167 }
0x2fcb   :  { %v5003_v62 = vmul.f32 0.5, %v9168_v15 }
0x2fcc   :  { %v4839_v10 = vadd.f32 0.5, %v4838_v58 }
0x2fcd   :  { %v5004_v25 = vadd.f32 0.5, %v5003_v62 }
0x2fce   :  { %v4841_v3 = vmul.f32 %v4839_v10, %v10245_v9 }
0x2fcf   :  { %v5006_v14 = vmul.f32 %v5004_v25, %v10250_v22 }
0x3009   :  { %v4844_v60 = vpop.permute.xlu0 %4843 }
0x300a   :  { %v4846_v18 = vmul.f32 %v4844_v60, %v4839_v10 }
0x300c   :  { %4848 = vrot.lane.b32.xlu0 %v4846_v18, %s9301_s27 }
0x303b   :  { %v5009_v12 = vpop.permute.xlu1 %5008 }
0x303c   :  { %v5011_v13 = vmul.f32 %v5009_v12, %v5004_v25 }
0x303e   :  { %5013 = vrot.lane.b32.xlu1 %v5011_v13, %s9301_s27 }
0x307e   :  { %v4849_v0 = vpop.permute.xlu0 %4848 }
0x307f   :  { %v10286_v5 = vadd.f32 %v4849_v0, %v4841_v3 }
0x3081   :  { %9169 = vtanh.f32 %v10286_v5 }
0x308b   :  { %v9170_v1 = vpop.eup %9169 }
0x308c   :  { %4854 = vrot.lane.b32.xlu0 %v9170_v1, %s9300_s26  ;;  %v314_v1 = vadd.f32 %v10189_v16, %v9449_v27 }
0x30b0   :  { %v5014_v36 = vpop.permute.xlu1 %5013 }
0x30b1   :  { %v10291_v37 = vadd.f32 %v5014_v36, %v5006_v14 }
0x30b3   :  { %9171 = vtanh.f32 %v10291_v37 }
0x30bd   :  { %v9172_v42 = vpop.eup %9171 }
0x30be   :  { %5019 = vrot.lane.b32.xlu1 %v9172_v42, %s9300_s26 }
0x30fe   :  { %v4855_v21 = vpop.permute.xlu0 %4854 }
0x30ff   :  { %v4857_v34 = vmul.f32 %v4855_v21, %v4839_v10 }
0x3101   :  { %5030 = vrot.lane.b32.xlu0 %v4857_v34, %s9301_s27 }
0x3130   :  { %v5020_v35 = vpop.permute.xlu1 %5019 }
0x3131   :  { %v5022_v40 = vmul.f32 %v5020_v35, %v5004_v25 }
0x3133   :  { %5024 = vrot.lane.b32.xlu1 %v5022_v40, %s9301_s27 }
0x3173   :  { %v5031_v9 = vpop.permute.xlu0 %5030 }
0x3174   :  { %8267 = vmatmul.mubr.msk.f32.vlgmr.msra.gmra.mrb[60].mxu0 %vm362_vm2, %v5031_v9 }
0x3175   :  { %8842 = vmatpush3.bf16.msra.mxu0 %v9479_v51  ;;  %8288 = vmatprep.mubr.msk.f32.mxu0 %vm9298_vm1, %v9299_v20 }
0x3176   :  { %8843 = vmatprep.subr.bf16.mxu0 %v9297_v7 }
0x3179   :  { %8845 = vmatpush3.bf16.msra.mxu0 %v9489_v56 }
0x317a   :  { %8852 = vmatprep.subr.bf16.mxu0 %v9297_v7 }
0x317c   :  { %8289 = vmatmul.mubr.msk.f32.vlgmr.msra.gmra.mrb[62].mxu0 %vm362_vm2, %v5031_v9 }
0x317d   :  { %8854 = vmatpush3.bf16.msra.mxu0 %v9500_v59  ;;  %8310 = vmatprep.mubr.msk.f32.mxu0 %vm9298_vm1, %v9299_v20 }
0x317e   :  { %8855 = vmatprep.subr.bf16.mxu0 %v9297_v7 }
0x3181   :  { %8857 = vmatpush3.bf16.msra.mxu0 %v9510_v63 }
0x3182   :  { %8864 = vmatprep.subr.bf16.mxu0 %v9297_v7 }
0x31a5   :  { %v5025_v26 = vpop.permute.xlu1 %5024 }
0x31a6   :  { %5027 = vst.msk [vmem:[#allocation3 + $0x60] sm:$0xff] %vm362_vm2, %v5025_v26  ;;  %8278 = vmatmul.mubr.msk.f32.vlgmr.msra.gmra.mrb[68].mxu1 %vm362_vm2, %v5025_v26 }
0x31a7   :  { %8848 = vmatpush3.bf16.msra.mxu1 %v9376_v6  ;;  %8299 = vmatprep.mubr.msk.f32.mxu1 %vm9298_vm1, %v9299_v20 }
0x31a8   :  { %8849 = vmatprep.subr.bf16.mxu1 %v9297_v7 }
0x31ab   :  { %8851 = vmatpush3.bf16.msra.mxu1 %v9391_v11 }
0x31ac   :  { %8858 = vmatprep.subr.bf16.mxu1 %v9297_v7 }
0x3247   :  { %v5100_v39 = vpop.f32.mrb[60].mxu0 }
0x3248   :  { %v5104_v22 = vadd.f32 %v5100_v39, %v309_v43  ;;  %v8268_v50 = vpop.f32.mrb[61].mxu0 }
0x324a   :  { %9173 = vtanh.f32 %v5104_v22  ;;  %v5105_v46 = vmul.f32 0.5, %v5104_v22 }
0x324f   :  { %v5265_v61 = vpop.f32.mrb[62].mxu0 }
0x3250   :  { %v8290_v2 = vpop.f32.mrb[63].mxu0 }
0x3254   :  { %v9174_v45 = vpop.eup %9173 }
0x3255   :  { %5112 = vrot.lane.b32.xlu0 %v9174_v45, %s9300_s26 }
0x3279   :  { %v5195_v47 = vpop.f32.mrb[68].mxu1 }
0x327a   :  { %v5266_v49 = vadd.f32 %v5265_v61, %v5195_v47  ;;  %v8279_v38 = vpop.f32.mrb[69].mxu1 }
0x327c   :  { %v5269_v41 = vadd.f32 %v10238_v31, %v5266_v49 }
0x327e   :  { %9175 = vtanh.f32 %v5269_v41  ;;  %v5270_v24 = vmul.f32 0.5, %v5269_v41 }
0x327f   :  { %9177 = vtanh.f32 %v5105_v46 }
0x3280   :  { %9179 = vtanh.f32 %v5270_v24 }
0x3288   :  { %v9176_v19 = vpop.eup %9175 }
0x3289   :  { %5277 = vrot.lane.b32.xlu1 %v9176_v19, %s9300_s26  ;;  %v9178_v28 = vpop.eup %9177 }
0x328a   :  { %v5107_v48 = vmul.f32 0.5, %v9178_v28  ;;  %v9180_v54 = vpop.eup %9179 }
0x328b   :  { %v5272_v4 = vmul.f32 0.5, %v9180_v54 }
0x328c   :  { %v5108_v44 = vadd.f32 0.5, %v5107_v48 }
0x328d   :  { %v5273_v55 = vadd.f32 0.5, %v5272_v4 }
0x328e   :  { %v5110_v23 = vmul.f32 %v5108_v44, %v10286_v5 }
0x328f   :  { %v5275_v18 = vmul.f32 %v5273_v55, %v10291_v37 }
0x32c7   :  { %v5113_v52 = vpop.permute.xlu0 %5112 }
0x32c8   :  { %v5115_v53 = vmul.f32 %v5113_v52, %v5108_v44 }
0x32ca   :  { %5117 = vrot.lane.b32.xlu0 %v5115_v53, %s9301_s27 }
0x32fb   :  { %v5278_v57 = vpop.permute.xlu1 %5277 }
0x32fc   :  { %v5280_v17 = vmul.f32 %v5278_v57, %v5273_v55 }
0x32fe   :  { %5282 = vrot.lane.b32.xlu1 %v5280_v17, %s9301_s27 }
0x333c   :  { %v5118_v58 = vpop.permute.xlu0 %5117 }
0x333d   :  { %v10327_v10 = vadd.f32 %v5118_v58, %v5110_v23 }
0x333f   :  { %9181 = vtanh.f32 %v10327_v10 }
0x3349   :  { %v9182_v60 = vpop.eup %9181 }
0x334a   :  { %5123 = vrot.lane.b32.xlu0 %v9182_v60, %s9300_s26 }
0x3370   :  { %v5283_v8 = vpop.permute.xlu1 %5282 }
0x3371   :  { %v10332_v15 = vadd.f32 %v5283_v8, %v5275_v18 }
0x3373   :  { %9183 = vtanh.f32 %v10332_v15 }
0x337d   :  { %v9184_v62 = vpop.eup %9183 }
0x337e   :  { %5288 = vrot.lane.b32.xlu1 %v9184_v62, %s9300_s26 }
0x33bc   :  { %v5124_v25 = vpop.permute.xlu0 %5123 }
0x33bd   :  { %v5126_v12 = vmul.f32 %v5124_v25, %v5108_v44 }
0x33bf   :  { %5299 = vrot.lane.b32.xlu0 %v5126_v12, %s9301_s27 }
0x33f0   :  { %v5289_v13 = vpop.permute.xlu1 %5288 }
0x33f1   :  { %v5291_v3 = vmul.f32 %v5289_v13, %v5273_v55 }
0x33f3   :  { %5293 = vrot.lane.b32.xlu1 %v5291_v3, %s9301_s27 }
0x3431   :  { %v5300_v0 = vpop.permute.xlu0 %5299 }
0x3432   :  { %8300 = vmatmul.mubr.msk.f32.vlgmr.msra.gmra.mrb[70].mxu1 %vm362_vm2, %v5300_v0 }
0x3433   :  { %8860 = vmatpush3.bf16.msra.mxu1 %v9479_v51  ;;  %8321 = vmatprep.mubr.msk.f32.mxu1 %vm9298_vm1, %v9299_v20 }
0x3434   :  { %8861 = vmatprep.subr.bf16.mxu1 %v9297_v7 }
0x3437   :  { %8863 = vmatpush3.bf16.msra.mxu1 %v9489_v56 }
0x3438   :  { %8870 = vmatprep.subr.bf16.mxu1 %v9297_v7 }
0x343a   :  { %8322 = vmatmul.mubr.msk.f32.vlgmr.msra.gmra.mrb[72].mxu1 %vm362_vm2, %v5300_v0 }
0x343b   :  { %8872 = vmatpush3.bf16.msra.mxu1 %v9500_v59  ;;  %8343 = vmatprep.mubr.msk.f32.mxu1 %vm9298_vm1, %v9299_v20 }
0x343c   :  { %8873 = vmatprep.subr.bf16.mxu1 %v9297_v7 }
0x343f   :  { %8875 = vmatpush3.bf16.msra.mxu1 %v9510_v63 }
0x3440   :  { %8882 = vmatprep.subr.bf16.mxu1 %v9297_v7 }
0x3465   :  { %v5294_v5 = vpop.permute.xlu1 %5293 }
0x3466   :  { %5296 = vst.msk [vmem:[#allocation3 + $0x68] sm:$0xff] %vm362_vm2, %v5294_v5  ;;  %8311 = vmatmul.mubr.msk.f32.vlgmr.msra.gmra.mrb[64].mxu0 %vm362_vm2, %v5294_v5 }
0x3467   :  { %8866 = vmatpush3.bf16.msra.mxu0 %v9376_v6  ;;  %8332 = vmatprep.mubr.msk.f32.mxu0 %vm9298_vm1, %v9299_v20 }
0x3468   :  { %8867 = vmatprep.subr.bf16.mxu0 %v9297_v7 }
0x346b   :  { %8869 = vmatpush3.bf16.msra.mxu0 %v9391_v11 }
0x346c   :  { %8876 = vmatprep.subr.bf16.mxu0 %v9297_v7 }
0x3505   :  { %v5369_v14 = vpop.f32.mrb[70].mxu1 }
0x3506   :  { %v5373_v36 = vadd.f32 %v5369_v14, %v314_v1  ;;  %v8301_v37 = vpop.f32.mrb[71].mxu1 }
0x3508   :  { %9185 = vtanh.f32 %v5373_v36  ;;  %v5374_v39 = vmul.f32 0.5, %v5373_v36 }
0x350d   :  { %v5534_v42 = vpop.f32.mrb[72].mxu1 }
0x350e   :  { %v8323_v21 = vpop.f32.mrb[73].mxu1 }
0x3512   :  { %v9186_v34 = vpop.eup %9185 }
0x3513   :  { %5381 = vrot.lane.b32.xlu0 %v9186_v34, %s9300_s26 }
0x3539   :  { %v5464_v35 = vpop.f32.mrb[64].mxu0 }
0x353a   :  { %v5535_v40 = vadd.f32 %v5534_v42, %v5464_v35  ;;  %v8312_v9 = vpop.f32.mrb[65].mxu0 }
0x353c   :  { %v5538_v26 = vadd.f32 %v10238_v31, %v5535_v40 }
0x353e   :  { %9187 = vtanh.f32 %v5538_v26  ;;  %v5539_v45 = vmul.f32 0.5, %v5538_v26 }
0x353f   :  { %9189 = vtanh.f32 %v5374_v39 }
0x3540   :  { %9191 = vtanh.f32 %v5539_v45 }
0x3548   :  { %v9188_v43 = vpop.eup %9187 }
0x3549   :  { %5546 = vrot.lane.b32.xlu1 %v9188_v43, %s9300_s26  ;;  %v9190_v27 = vpop.eup %9189 }
0x354a   :  { %v5376_v22 = vmul.f32 0.5, %v9190_v27  ;;  %v9192_v47 = vpop.eup %9191 }
0x354b   :  { %v5541_v49 = vmul.f32 0.5, %v9192_v47 }
0x354c   :  { %v5377_v50 = vadd.f32 0.5, %v5376_v22 }
0x354d   :  { %v5542_v38 = vadd.f32 0.5, %v5541_v49 }
0x354e   :  { %v5379_v46 = vmul.f32 %v5377_v50, %v10327_v10  ;;  %v319_v10 = vadd.f32 %v10189_v16, %v9455_v30 }
0x354f   :  { %v5544_v52 = vmul.f32 %v5542_v38, %v10332_v15 }
0x3585   :  { %v5382_v61 = vpop.permute.xlu0 %5381 }
0x3586   :  { %v5384_v2 = vmul.f32 %v5382_v61, %v5377_v50 }
0x3588   :  { %5386 = vrot.lane.b32.xlu0 %v5384_v2, %s9301_s27 }
0x35bb   :  { %v5547_v41 = vpop.permute.xlu1 %5546 }
0x35bc   :  { %v5549_v19 = vmul.f32 %v5547_v41, %v5542_v38 }
0x35be   :  { %5551 = vrot.lane.b32.xlu1 %v5549_v19, %s9301_s27 }
0x35fa   :  { %v5387_v28 = vpop.permute.xlu0 %5386 }
0x35fb   :  { %v10368_v48 = vadd.f32 %v5387_v28, %v5379_v46  ;;  %v324_v28 = vadd.f32 %v10189_v16, %v9453_v29 }
0x35fd   :  { %9193 = vtanh.f32 %v10368_v48 }
0x3607   :  { %v9194_v44 = vpop.eup %9193 }
0x3608   :  { %5392 = vrot.lane.b32.xlu0 %v9194_v44, %s9300_s26 }
0x3630   :  { %v5552_v53 = vpop.permute.xlu1 %5551 }
0x3631   :  { %v10373_v24 = vadd.f32 %v5552_v53, %v5544_v52 }
0x3633   :  { %9195 = vtanh.f32 %v10373_v24 }
0x363d   :  { %v9196_v54 = vpop.eup %9195 }
0x363e   :  { %5557 = vrot.lane.b32.xlu1 %v9196_v54, %s9300_s26 }
0x367a   :  { %v5393_v4 = vpop.permute.xlu0 %5392 }
0x367b   :  { %v5395_v55 = vmul.f32 %v5393_v4, %v5377_v50 }
0x367d   :  { %5568 = vrot.lane.b32.xlu0 %v5395_v55, %s9301_s27 }
0x36b0   :  { %v5558_v57 = vpop.permute.xlu1 %5557 }
0x36b1   :  { %v5560_v17 = vmul.f32 %v5558_v57, %v5542_v38 }
0x36b3   :  { %5562 = vrot.lane.b32.xlu1 %v5560_v17, %s9301_s27 }
0x36ef   :  { %v5569_v23 = vpop.permute.xlu0 %5568 }
0x36f0   :  { %8333 = vmatmul.mubr.msk.f32.vlgmr.msra.gmra.mrb[66].mxu0 %vm362_vm2, %v5569_v23 }
0x36f1   :  { %8878 = vmatpush3.bf16.msra.mxu0 %v9479_v51  ;;  %8354 = vmatprep.mubr.msk.f32.mxu0 %vm9298_vm1, %v9299_v20 }
0x36f2   :  { %8879 = vmatprep.subr.bf16.mxu0 %v9297_v7 }
0x36f5   :  { %8881 = vmatpush3.bf16.msra.mxu0 %v9489_v56 }
0x36f6   :  { %8888 = vmatprep.subr.bf16.mxu0 %v9297_v7 }
0x36f8   :  { %8355 = vmatmul.mubr.msk.f32.vlgmr.msra.gmra.mrb[68].mxu0 %vm362_vm2, %v5569_v23 }
0x36f9   :  { %8890 = vmatpush3.bf16.msra.mxu0 %v9500_v59  ;;  %8376 = vmatprep.mubr.msk.f32.mxu0 %vm9298_vm1, %v9299_v20 }
0x36fa   :  { %8891 = vmatprep.subr.bf16.mxu0 %v9297_v7 }
0x36fd   :  { %8893 = vmatpush3.bf16.msra.mxu0 %v9510_v63 }
0x36fe   :  { %8900 = vmatprep.subr.bf16.mxu0 %v9297_v7 }
0x3725   :  { %v5563_v58 = vpop.permute.xlu1 %5562 }
0x3726   :  { %5565 = vst.msk [vmem:[#allocation3 + $0x70] sm:$0xff] %vm362_vm2, %v5563_v58  ;;  %8344 = vmatmul.mubr.msk.f32.vlgmr.msra.gmra.mrb[74].mxu1 %vm362_vm2, %v5563_v58 }
0x3727   :  { %8884 = vmatpush3.bf16.msra.mxu1 %v9376_v6  ;;  %8365 = vmatprep.mubr.msk.f32.mxu1 %vm9298_vm1, %v9299_v20 }
0x3728   :  { %8885 = vmatprep.subr.bf16.mxu1 %v9297_v7 }
0x372b   :  { %8887 = vmatpush3.bf16.msra.mxu1 %v9391_v11 }
0x372c   :  { %8894 = vmatprep.subr.bf16.mxu1 %v9297_v7 }
0x37c3   :  { %v5638_v60 = vpop.f32.mrb[66].mxu0 }
0x37c4   :  { %v5642_v18 = vadd.f32 %v5638_v60, %v319_v10  ;;  %v8334_v8 = vpop.f32.mrb[67].mxu0 }
0x37c6   :  { %9197 = vtanh.f32 %v5642_v18  ;;  %v5643_v1 = vmul.f32 0.5, %v5642_v18 }
0x37cb   :  { %v5803_v15 = vpop.f32.mrb[68].mxu0 }
0x37cc   :  { %v8356_v62 = vpop.f32.mrb[69].mxu0 }
0x37d0   :  { %v9198_v25 = vpop.eup %9197 }
0x37d1   :  { %5650 = vrot.lane.b32.xlu0 %v9198_v25, %s9300_s26 }
0x37f9   :  { %v5733_v12 = vpop.f32.mrb[74].mxu1 }
0x37fa   :  { %v5804_v13 = vadd.f32 %v5803_v15, %v5733_v12  ;;  %v8345_v3 = vpop.f32.mrb[75].mxu1 }
0x37fc   :  { %v5807_v0 = vadd.f32 %v10238_v31, %v5804_v13 }
0x37fe   :  { %9199 = vtanh.f32 %v5807_v0  ;;  %v5808_v21 = vmul.f32 0.5, %v5807_v0 }
0x37ff   :  { %9201 = vtanh.f32 %v5643_v1 }
0x3800   :  { %9203 = vtanh.f32 %v5808_v21 }
0x3808   :  { %v9200_v5 = vpop.eup %9199 }
0x3809   :  { %5815 = vrot.lane.b32.xlu1 %v9200_v5, %s9300_s26  ;;  %v9202_v30 = vpop.eup %9201 }
0x380a   :  { %v5645_v14 = vmul.f32 0.5, %v9202_v30  ;;  %v9204_v34 = vpop.eup %9203 }
0x380b   :  { %v5810_v35 = vmul.f32 0.5, %v9204_v34 }
0x380c   :  { %v5646_v36 = vadd.f32 0.5, %v5645_v14 }
0x380d   :  { %v5811_v40 = vadd.f32 0.5, %v5810_v35 }
0x380e   :  { %v5648_v43 = vmul.f32 %v5646_v36, %v10368_v48 }
0x380f   :  { %v5813_v50 = vmul.f32 %v5811_v40, %v10373_v24 }
0x3843   :  { %v5651_v37 = vpop.permute.xlu0 %5650 }
0x3844   :  { %v5653_v42 = vmul.f32 %v5651_v37, %v5646_v36 }
0x3846   :  { %5655 = vrot.lane.b32.xlu0 %v5653_v42, %s9301_s27 }
0x387b   :  { %v5816_v9 = vpop.permute.xlu1 %5815 }
0x387c   :  { %v5818_v26 = vmul.f32 %v5816_v9, %v5811_v40 }
0x387e   :  { %5820 = vrot.lane.b32.xlu1 %v5818_v26, %s9301_s27 }
0x38b8   :  { %v5656_v39 = vpop.permute.xlu0 %5655 }
0x38b9   :  { %v10409_v27 = vadd.f32 %v5656_v39, %v5648_v43  ;;  %v329_v43 = vadd.f32 %v10189_v16, %v9464_v33 }
0x38bb   :  { %9205 = vtanh.f32 %v10409_v27 }
0x38c5   :  { %v9206_v22 = vpop.eup %9205 }
0x38c6   :  { %5661 = vrot.lane.b32.xlu0 %v9206_v22, %s9300_s26 }
0x38f0   :  { %v5821_v61 = vpop.permute.xlu1 %5820 }
0x38f1   :  { %v10414_v2 = vadd.f32 %v5821_v61, %v5813_v50 }
0x38f3   :  { %9207 = vtanh.f32 %v10414_v2 }
0x38fd   :  { %v9208_v45 = vpop.eup %9207 }
0x38fe   :  { %5826 = vrot.lane.b32.xlu1 %v9208_v45, %s9300_s26 }
0x3938   :  { %v5662_v47 = vpop.permute.xlu0 %5661 }
0x3939   :  { %v5664_v49 = vmul.f32 %v5662_v47, %v5646_v36 }
0x393b   :  { %5837 = vrot.lane.b32.xlu0 %v5664_v49, %s9301_s27 }
0x3970   :  { %v5827_v38 = vpop.permute.xlu1 %5826 }
0x3971   :  { %v5829_v41 = vmul.f32 %v5827_v38, %v5811_v40 }
0x3973   :  { %5831 = vrot.lane.b32.xlu1 %v5829_v41, %s9301_s27 }
0x39ad   :  { %v5838_v19 = vpop.permute.xlu0 %5837 }
0x39ae   :  { %8366 = vmatmul.mubr.msk.f32.vlgmr.msra.gmra.mrb[76].mxu1 %vm362_vm2, %v5838_v19 }
0x39af   :  { %8896 = vmatpush3.bf16.msra.mxu1 %v9479_v51  ;;  %8387 = vmatprep.mubr.msk.f32.mxu1 %vm9298_vm1, %v9299_v20 }
0x39b0   :  { %8897 = vmatprep.subr.bf16.mxu1 %v9297_v7 }
0x39b3   :  { %8899 = vmatpush3.bf16.msra.mxu1 %v9489_v56 }
0x39b4   :  { %8906 = vmatprep.subr.bf16.mxu1 %v9297_v7 }
0x39b6   :  { %8388 = vmatmul.mubr.msk.f32.vlgmr.msra.gmra.mrb[78].mxu1 %vm362_vm2, %v5838_v19 }
0x39b7   :  { %8908 = vmatpush3.bf16.msra.mxu1 %v9500_v59  ;;  %8409 = vmatprep.mubr.msk.f32.mxu1 %vm9298_vm1, %v9299_v20 }
0x39b8   :  { %8909 = vmatprep.subr.bf16.mxu1 %v9297_v7 }
0x39bb   :  { %8911 = vmatpush3.bf16.msra.mxu1 %v9510_v63 }
0x39bc   :  { %8918 = vmatprep.subr.bf16.mxu1 %v9297_v7 }
0x39e5   :  { %v5832_v46 = vpop.permute.xlu1 %5831 }
0x39e6   :  { %5834 = vst.msk [vmem:[#allocation3 + $0x78] sm:$0xff] %vm362_vm2, %v5832_v46  ;;  %8377 = vmatmul.mubr.msk.f32.vlgmr.msra.gmra.mrb[70].mxu0 %vm362_vm2, %v5832_v46 }
0x39e7   :  { %8902 = vmatpush3.bf16.msra.mxu0 %v9376_v6  ;;  %8398 = vmatprep.mubr.msk.f32.mxu0 %vm9298_vm1, %v9299_v20 }
0x39e8   :  { %8903 = vmatprep.subr.bf16.mxu0 %v9297_v7 }
0x39eb   :  { %8905 = vmatpush3.bf16.msra.mxu0 %v9391_v11 }
0x39ec   :  { %8912 = vmatprep.subr.bf16.mxu0 %v9297_v7 }
0x3a81   :  { %v5907_v48 = vpop.f32.mrb[76].mxu1 }
0x3a82   :  { %v5911_v44 = vadd.f32 %v5907_v48, %v324_v28  ;;  %v8367_v52 = vpop.f32.mrb[77].mxu1 }
0x3a84   :  { %9209 = vtanh.f32 %v5911_v44  ;;  %v5912_v58 = vmul.f32 0.5, %v5911_v44 }
0x3a89   :  { %v6072_v53 = vpop.f32.mrb[78].mxu1 }
0x3a8a   :  { %v8389_v24 = vpop.f32.mrb[79].mxu1 }
0x3a8e   :  { %v9210_v54 = vpop.eup %9209 }
0x3a8f   :  { %5919 = vrot.lane.b32.xlu0 %v9210_v54, %s9300_s26 }
0x3ab9   :  { %v6002_v4 = vpop.f32.mrb[70].mxu0 }
0x3aba   :  { %v6073_v55 = vadd.f32 %v6072_v53, %v6002_v4  ;;  %v8378_v57 = vpop.f32.mrb[71].mxu0 }
0x3abc   :  { %v6076_v17 = vadd.f32 %v10238_v31, %v6073_v55 }
0x3abe   :  { %9211 = vtanh.f32 %v6076_v17  ;;  %v6077_v15 = vmul.f32 0.5, %v6076_v17 }
0x3abf   :  { %9213 = vtanh.f32 %v5912_v58 }
0x3ac0   :  { %9215 = vtanh.f32 %v6077_v15 }
0x3ac8   :  { %v9212_v23 = vpop.eup %9211 }
0x3ac9   :  { %6084 = vrot.lane.b32.xlu1 %v9212_v23, %s9300_s26  ;;  %v9214_v29 = vpop.eup %9213 }
0x3aca   :  { %v5914_v10 = vmul.f32 0.5, %v9214_v29  ;;  %v9216_v62 = vpop.eup %9215 }
0x3acb   :  { %v6079_v25 = vmul.f32 0.5, %v9216_v62 }
0x3acc   :  { %v5915_v60 = vadd.f32 0.5, %v5914_v10 }
0x3acd   :  { %v6080_v12 = vadd.f32 0.5, %v6079_v25 }
0x3ace   :  { %v5917_v0 = vmul.f32 %v5915_v60, %v10409_v27 }
0x3acf   :  { %v6082_v14 = vmul.f32 %v6080_v12, %v10414_v2 }
0x3b01   :  { %v5920_v18 = vpop.permute.xlu0 %5919 }
0x3b02   :  { %v5922_v8 = vmul.f32 %v5920_v18, %v5915_v60 }
0x3b04   :  { %5924 = vrot.lane.b32.xlu0 %v5922_v8, %s9301_s27 }
0x3b3b   :  { %v6085_v13 = vpop.permute.xlu1 %6084 }
0x3b3c   :  { %v6087_v3 = vmul.f32 %v6085_v13, %v6080_v12 }
0x3b3e   :  { %6089 = vrot.lane.b32.xlu1 %v6087_v3, %s9301_s27 }
0x3b76   :  { %v5925_v5 = vpop.permute.xlu0 %5924 }
0x3b77   :  { %v10450_v1 = vadd.f32 %v5925_v5, %v5917_v0 }
0x3b79   :  { %9217 = vtanh.f32 %v10450_v1 }
0x3b83   :  { %v9218_v30 = vpop.eup %9217 }
0x3b84   :  { %5930 = vrot.lane.b32.xlu0 %v9218_v30, %s9300_s26 }
0x3bb0   :  { %v6090_v36 = vpop.permute.xlu1 %6089 }
0x3bb1   :  { %v10455_v37 = vadd.f32 %v6090_v36, %v6082_v14 }
0x3bb3   :  { %9219 = vtanh.f32 %v10455_v37 }
0x3bbd   :  { %v9220_v42 = vpop.eup %9219 }
0x3bbe   :  { %6095 = vrot.lane.b32.xlu1 %v9220_v42, %s9300_s26 }
0x3bf6   :  { %v5931_v21 = vpop.permute.xlu0 %5930 }
0x3bf7   :  { %v5933_v34 = vmul.f32 %v5931_v21, %v5915_v60 }
0x3bf9   :  { %6106 = vrot.lane.b32.xlu0 %v5933_v34, %s9301_s27 }
0x3c30   :  { %v6096_v35 = vpop.permute.xlu1 %6095 }
0x3c31   :  { %v6098_v40 = vmul.f32 %v6096_v35, %v6080_v12 }
0x3c33   :  { %6100 = vrot.lane.b32.xlu1 %v6098_v40, %s9301_s27 }
0x3c6b   :  { %v6107_v9 = vpop.permute.xlu0 %6106 }
0x3c6c   :  { %8399 = vmatmul.mubr.msk.f32.vlgmr.msra.gmra.mrb[72].mxu0 %vm362_vm2, %v6107_v9 }
0x3c6d   :  { %8914 = vmatpush3.bf16.msra.mxu0 %v9479_v51  ;;  %8420 = vmatprep.mubr.msk.f32.mxu0 %vm9298_vm1, %v9299_v20 }
0x3c6e   :  { %8915 = vmatprep.subr.bf16.mxu0 %v9297_v7 }
0x3c71   :  { %8917 = vmatpush3.bf16.msra.mxu0 %v9489_v56 }
0x3c72   :  { %8924 = vmatprep.subr.bf16.mxu0 %v9297_v7 }
0x3c74   :  { %8421 = vmatmul.mubr.msk.f32.vlgmr.msra.gmra.mrb[74].mxu0 %vm362_vm2, %v6107_v9 }
0x3c75   :  { %8926 = vmatpush3.bf16.msra.mxu0 %v9500_v59  ;;  %8442 = vmatprep.mubr.msk.f32.mxu0 %vm9298_vm1, %v9299_v20 }
0x3c76   :  { %8927 = vmatprep.subr.bf16.mxu0 %v9297_v7 }
0x3c79   :  { %8929 = vmatpush3.bf16.msra.mxu0 %v9510_v63 }
0x3c7a   :  { %8936 = vmatprep.subr.bf16.mxu0 %v9297_v7 }
0x3ca5   :  { %v6101_v26 = vpop.permute.xlu1 %6100 }
0x3ca6   :  { %6103 = vst.msk [vmem:[#allocation3 + $0x80] sm:$0xff] %vm362_vm2, %v6101_v26  ;;  %8410 = vmatmul.mubr.msk.f32.vlgmr.msra.gmra.mrb[80].mxu1 %vm362_vm2, %v6101_v26 }
0x3ca7   :  { %8920 = vmatpush3.bf16.msra.mxu1 %v9376_v6  ;;  %8431 = vmatprep.mubr.msk.f32.mxu1 %vm9298_vm1, %v9299_v20 }
0x3ca8   :  { %8921 = vmatprep.subr.bf16.mxu1 %v9297_v7 }
0x3cab   :  { %8923 = vmatpush3.bf16.msra.mxu1 %v9391_v11 }
0x3cac   :  { %8930 = vmatprep.subr.bf16.mxu1 %v9297_v7 }
0x3d3f   :  { %v6176_v39 = vpop.f32.mrb[72].mxu0 }
0x3d40   :  { %v6180_v27 = vadd.f32 %v6176_v39, %v329_v43  ;;  %v8400_v22 = vpop.f32.mrb[73].mxu0 }
0x3d42   :  { %9221 = vtanh.f32 %v6180_v27  ;;  %v6181_v38 = vmul.f32 0.5, %v6180_v27 }
0x3d47   :  { %v6341_v50 = vpop.f32.mrb[74].mxu0 }
0x3d48   :  { %v8422_v61 = vpop.f32.mrb[75].mxu0 }
0x3d4c   :  { %v9222_v2 = vpop.eup %9221 }
0x3d4d   :  { %6188 = vrot.lane.b32.xlu0 %v9222_v2, %s9300_s26 }
0x3d79   :  { %v6271_v6 = vpop.f32.mrb[80].mxu1 }
0x3d7a   :  { %v6342_v45 = vadd.f32 %v6341_v50, %v6271_v6  ;;  %v8411_v47 = vpop.f32.mrb[81].mxu1  ;;  %v6838_v6 = vld [vmem:[%s10684_s7] sm:$0xff] }
0x3d7c   :  { %v6345_v49 = vadd.f32 %v10238_v31, %v6342_v45  ;;  %v6839_v45 = vld [vmem:[%s10684_s7 + $0x8] sm:$0xff] }
0x3d7d   :  { %v8948_v47 = vpack.c.bf16 %v6839_v45, %v6838_v6 }
0x3d7e   :  { %9223 = vtanh.f32 %v6345_v49  ;;  %v6346_v28 = vmul.f32 0.5, %v6345_v49 }
0x3d7f   :  { %9225 = vtanh.f32 %v6181_v38 }
0x3d80   :  { %9227 = vtanh.f32 %v6346_v28 }
0x3d88   :  { %v9224_v11 = vpop.eup %9223 }
0x3d89   :  { %6353 = vrot.lane.b32.xlu1 %v9224_v11, %s9300_s26  ;;  %v9226_v33 = vpop.eup %9225 }
0x3d8a   :  { %v6183_v16 = vmul.f32 0.5, %v9226_v33  ;;  %v9228_v48 = vpop.eup %9227 }
0x3d8b   :  { %v6348_v44 = vmul.f32 0.5, %v9228_v48  ;;  %v6818_v48 = vld [vmem:[#allocation3] sm:$0xff] }
0x3d8c   :  { %v6184_v41 = vadd.f32 0.5, %v6183_v16 }
0x3d8d   :  { %v6349_v52 = vadd.f32 0.5, %v6348_v44  ;;  %v6819_v44 = vld [vmem:[#allocation3 + $0x8] sm:$0xff] }
0x3d8e   :  { %v6186_v54 = vmul.f32 %v6184_v41, %v10450_v1 }
0x3d8f   :  { %v6351_v17 = vmul.f32 %v6349_v52, %v10455_v37 }
0x3dbf   :  { %v6189_v19 = vpop.permute.xlu0 %6188 }
0x3dc0   :  { %v6191_v46 = vmul.f32 %v6189_v19, %v6184_v41  ;;  %v6841_v19 = vld [vmem:[%s10684_s7 + $0x18] sm:$0xff] }
0x3dc2   :  { %6193 = vrot.lane.b32.xlu0 %v6191_v46, %s9301_s27 }
0x3dfb   :  { %v6354_v53 = vpop.permute.xlu1 %6353 }
0x3dfc   :  { %v6356_v24 = vmul.f32 %v6354_v53, %v6349_v52  ;;  %v6821_v53 = vld [vmem:[#allocation3 + $0x18] sm:$0xff] }
0x3dfe   :  { %6358 = vrot.lane.b32.xlu1 %v6356_v24, %s9301_s27  ;;  %v6822_v24 = vld [vmem:[#allocation3 + $0x20] sm:$0xff] }
0x3e34   :  { %v6194_v4 = vpop.permute.xlu0 %6193 }
0x3e35   :  { %v10491_v55 = vadd.f32 %v6194_v4, %v6186_v54  ;;  %v6823_v54 = vld [vmem:[#allocation3 + $0x28] sm:$0xff]  ;;  %v6824_v4 = vld [vmem:[#allocation3 + $0x30] sm:$0xff] }
0x3e37   :  { %9229 = vtanh.f32 %v10491_v55 }
0x3e41   :  { %v9230_v57 = vpop.eup %9229 }
0x3e42   :  { %6199 = vrot.lane.b32.xlu0 %v9230_v57, %s9300_s26  ;;  %v6826_v57 = vld [vmem:[#allocation3 + $0x40] sm:$0xff] }
0x3e70   :  { %v6359_v23 = vpop.permute.xlu1 %6358 }
0x3e71   :  { %v10496_v58 = vadd.f32 %v6359_v23, %v6351_v17  ;;  %v6827_v17 = vld [vmem:[#allocation3 + $0x48] sm:$0xff]  ;;  %v6828_v23 = vld [vmem:[#allocation3 + $0x50] sm:$0xff] }
0x3e73   :  { %9231 = vtanh.f32 %v10496_v58 }
0x3e7d   :  { %v9232_v29 = vpop.eup %9231 }
0x3e7e   :  { %6364 = vrot.lane.b32.xlu1 %v9232_v29, %s9300_s26  ;;  %v6830_v29 = vld [vmem:[#allocation3 + $0x60] sm:$0xff] }
0x3eb4   :  { %v6200_v10 = vpop.permute.xlu0 %6199 }
0x3eb5   :  { %v6202_v60 = vmul.f32 %v6200_v10, %v6184_v41  ;;  %v6840_v41 = vld [vmem:[%s10684_s7 + $0x10] sm:$0xff]  ;;  %v6831_v10 = vld [vmem:[#allocation3 + $0x68] sm:$0xff] }
0x3eb6   :  { %v8952_v46 = vpack.c.bf16 %v6841_v19, %v6840_v41 }
0x3eb7   :  { %6375 = vrot.lane.b32.xlu0 %v6202_v60, %s9301_s27  ;;  %v6832_v60 = vld [vmem:[#allocation3 + $0x70] sm:$0xff] }
0x3ef0   :  { %v6365_v18 = vpop.permute.xlu1 %6364 }
0x3ef1   :  { %v6367_v8 = vmul.f32 %v6365_v18, %v6349_v52  ;;  %v6820_v52 = vld [vmem:[#allocation3 + $0x10] sm:$0xff]  ;;  %v6833_v18 = vld [vmem:[#allocation3 + $0x78] sm:$0xff] }
0x3ef3   :  { %6369 = vrot.lane.b32.xlu1 %v6367_v8, %s9301_s27  ;;  %v6834_v8 = vld [vmem:[#allocation3 + $0x80] sm:$0xff] }
0x3f29   :  { %v6376_v15 = vpop.permute.xlu0 %6375 }
0x3f2a   :  { %8432 = vmatmul.mubr.msk.f32.vlgmr.msra.gmra.mrb[82].mxu1 %vm362_vm2, %v6376_v15 }
0x3f2b   :  { %8932 = vmatpush3.bf16.msra.mxu1 %v9479_v51  ;;  %8453 = vmatprep.mubr.msk.f32.mxu1 %vm9298_vm1, %v9299_v20 }
0x3f2c   :  { %8933 = vmatprep.subr.bf16.mxu1 %v9297_v7 }
0x3f2f   :  { %8935 = vmatpush3.bf16.msra.mxu1 %v9489_v56 }
0x3f30   :  { %8942 = vmatprep.subr.bf16.mxu1 %v9297_v7 }
0x3f32   :  { %8454 = vmatmul.mubr.msk.f32.vlgmr.msra.gmra.mrb[84].mxu1 %vm362_vm2, %v6376_v15 }
0x3f33   :  { %8944 = vmatpush3.bf16.msra.mxu1 %v9479_v51  ;;  %8475 = vmatprep.mubr.msk.f32.mxu1 %vm9298_vm1, %v9299_v20  ;;  %v9295_v51 = vld [vmem:[%s10680_s3] ss:$0 sm:$0xff] }
0x3f34   :  { %8945 = vmatprep.subr.bf16.mxu1 %v9297_v7 }
0x3f37   :  { %8947 = vmatpush3.bf16.msra.mxu1 %v9489_v56  ;;  %v334_v56 = vadd.f32 %v9295_v51, %v9462_v32 }
0x3f65   :  { %v6370_v62 = vpop.permute.xlu1 %6369 }
0x3f66   :  { %6372 = vst.msk [vmem:[#allocation3 + $0x88] sm:$0xff] %vm362_vm2, %v6370_v62  ;;  %8443 = vmatmul.mubr.msk.f32.vlgmr.msra.gmra.mrb[76].mxu0 %vm362_vm2, %v6370_v62 }
0x3f67   :  { %8938 = vmatpush3.bf16.msra.mxu0 %v9500_v59  ;;  %8464 = vmatprep.mubr.msk.f32.mxu0 %vm9298_vm1, %v9299_v20 }
0x3f68   :  { %8939 = vmatprep.subr.bf16.mxu0 %v9297_v7 }
0x3f6b   :  { %8941 = vmatpush3.bf16.msra.mxu0 %v9510_v63 }
0x3f6c   :  { %8949 = vmatprep.subr.bf16.mxu0 %v8948_v47 }
0x3f6d   :  { %v6835_v15 = vld [vmem:[#allocation3 + $0x88] sm:$0xff] }
0x3ffd   :  { %v6445_v25 = vpop.f32.mrb[82].mxu1 }
0x3ffe   :  { %v6449_v12 = vadd.f32 %v6445_v25, %v334_v56  ;;  %v8433_v13 = vpop.f32.mrb[83].mxu1 }
0x4000   :  { %9233 = vtanh.f32 %v6449_v12  ;;  %v6450_v30 = vmul.f32 0.5, %v6449_v12 }
0x4005   :  { %v6610_v3 = vpop.f32.mrb[84].mxu1 }
0x4006   :  { %v8455_v0 = vpop.f32.mrb[85].mxu1 }
0x400a   :  { %v9234_v59 = vpop.eup %9233 }
0x400b   :  { %6457 = vrot.lane.b32.xlu0 %v9234_v59, %s9300_s26  ;;  %v10583_v59 = vld [vmem:[%s10685_s8] ss:$0 sm:$0xff] }
0x4039   :  { %v6540_v20 = vpop.f32.mrb[76].mxu0 }
0x403a   :  { %v6611_v5 = vadd.f32 %v6610_v3, %v6540_v20  ;;  %v8444_v7 = vpop.f32.mrb[77].mxu0  ;;  %v9296_v3 = vld [vmem:[%s10683_s6] ss:$0 sm:$0xff] }
0x403c   :  { %v6614_v63 = vadd.f32 %v10238_v31, %v6611_v5 }
0x403e   :  { %9235 = vtanh.f32 %v6614_v63  ;;  %v6615_v21 = vmul.f32 0.5, %v6614_v63 }
0x403f   :  { %9237 = vtanh.f32 %v6450_v30 }
0x4040   :  { %9239 = vtanh.f32 %v6615_v21 }
0x4048   :  { %v9236_v1 = vpop.eup %9235 }
0x4049   :  { %6622 = vrot.lane.b32.xlu1 %v9236_v1, %s9300_s26  ;;  %v9238_v32 = vpop.eup %9237 }
0x404a   :  { %v6452_v14 = vmul.f32 0.5, %v9238_v32  ;;  %v9240_v34 = vpop.eup %9239 }
0x404b   :  { %v6617_v35 = vmul.f32 0.5, %v9240_v34 }
0x404c   :  { %v6453_v36 = vadd.f32 0.5, %v6452_v14 }
0x404d   :  { %v6618_v40 = vadd.f32 0.5, %v6617_v35 }
0x404e   :  { %v6455_v26 = vmul.f32 %v6453_v36, %v10491_v55  ;;  %v6825_v55 = vld [vmem:[#allocation3 + $0x38] sm:$0xff] }
0x404f   :  { %v6620_v22 = vmul.f32 %v6618_v40, %v10496_v58  ;;  %v6829_v58 = vld [vmem:[#allocation3 + $0x58] sm:$0xff] }
0x407d   :  { %v6458_v37 = vpop.permute.xlu0 %6457 }
0x407e   :  { %v6460_v42 = vmul.f32 %v6458_v37, %v6453_v36 }
0x4080   :  { %6462 = vrot.lane.b32.xlu0 %v6460_v42, %s9301_s27 }
0x40bb   :  { %v6623_v9 = vpop.permute.xlu1 %6622 }
0x40bc   :  { %v6625_v31 = vmul.f32 %v6623_v9, %v6618_v40 }
0x40be   :  { %6627 = vrot.lane.b32.xlu1 %v6625_v31, %s9301_s27 }
0x40f2   :  { %v6463_v43 = vpop.permute.xlu0 %6462 }
0x40f3   :  { %v6465_v39 = vadd.f32 %v6463_v43, %v6455_v26 }
0x40f5   :  { %9241 = vtanh.f32 %v6465_v39 }
0x40ff   :  { %v9242_v27 = vpop.eup %9241 }
0x4100   :  { %6468 = vrot.lane.b32.xlu0 %v9242_v27, %s9300_s26 }
0x4130   :  { %v6628_v50 = vpop.permute.xlu1 %6627 }
0x4131   :  { %v10534_v61 = vadd.f32 %v6628_v50, %v6620_v22 }
0x4133   :  { %9243 = vtanh.f32 %v10534_v61 }
0x413d   :  { %v9244_v2 = vpop.eup %9243 }
0x413e   :  { %6633 = vrot.lane.b32.xlu1 %v9244_v2, %s9300_s26 }
0x4172   :  { %v6469_v49 = vpop.permute.xlu0 %6468 }
0x4173   :  { %v6471_v11 = vmul.f32 %v6469_v49, %v6453_v36 }
0x4175   :  { %6715 = vrot.lane.b32.xlu1 %v6471_v11, %s9301_s27 }
0x41b0   :  { %v6634_v38 = vpop.permute.xlu1 %6633 }
0x41b1   :  { %v6636_v33 = vmul.f32 %v6634_v38, %v6618_v40 }
0x41b3   :  { %6638 = vrot.lane.b32.xlu0 %v6636_v33, %s9301_s27 }
0x41e7   :  { %v6716_v16 = vpop.permute.xlu1 %6715 }
0x41e8   :  { %8476 = vmatmul.mubr.msk.f32.vlgmr.msra.gmra.mrb[86].mxu1 %vm362_vm2, %v6716_v16 }
0x4225   :  { %v6639_v28 = vpop.permute.xlu0 %6638 }
0x4226   :  { %6641 = vst.msk [vmem:[#allocation3 + $0x90] sm:$0xff] %vm362_vm2, %v6639_v28  ;;  %8465 = vmatmul.mubr.msk.f32.vlgmr.msra.gmra.mrb[78].mxu0 %vm362_vm2, %v6639_v28 }
0x4227   :  { %8951 = vmatpush3.bf16.msra.mxu0 %v8948_v47  ;;  %8486 = vmatprep.mubr.msk.f32.mxu0 %vm362_vm2, %v6818_v48 }
0x4228   :  { %8953 = vmatprep.subr.bf16.mxu0 %v8952_v46 }
0x422b   :  { %8955 = vmatpush3.bf16.msra.mxu0 %v8952_v46 }
0x422d   :  { %v6836_v62 = vld [vmem:[#allocation3 + $0x90] sm:$0xff] }
0x422e   :  { %8487 = vmatmul.mubr.msk.f32.vlgmr.msra.gmra.mrb[80].mxu0 %vm362_vm2, %v6819_v44 }
0x422f   :  { %8489 = vmatprep.mubr.msk.f32.mxu0 %vm362_vm2, %v6820_v52 }
0x4232   :  { %8490 = vmatmul.mubr.msk.f32.gmra.mrb[82].mxu0 %vm362_vm2, %v6821_v53 }
0x4233   :  { %8492 = vmatprep.mubr.msk.f32.mxu0 %vm362_vm2, %v6822_v24 }
0x4236   :  { %8493 = vmatmul.mubr.msk.f32.gmra.mrb[84].mxu0 %vm362_vm2, %v6823_v54 }
0x4237   :  { %8495 = vmatprep.mubr.msk.f32.mxu0 %vm362_vm2, %v6824_v4 }
0x423a   :  { %8496 = vmatmul.mubr.msk.f32.gmra.mrb[86].mxu0 %vm362_vm2, %v6825_v55 }
0x423b   :  { %8498 = vmatprep.mubr.msk.f32.mxu0 %vm362_vm2, %v6826_v57 }
0x423e   :  { %8499 = vmatmul.mubr.msk.f32.gmra.mrb[88].mxu0 %vm362_vm2, %v6827_v17 }
0x423f   :  { %8501 = vmatprep.mubr.msk.f32.mxu0 %vm362_vm2, %v6828_v23 }
0x4242   :  { %8502 = vmatmul.mubr.msk.f32.gmra.mrb[90].mxu0 %vm362_vm2, %v6829_v58 }
0x4243   :  { %8504 = vmatprep.mubr.msk.f32.mxu0 %vm362_vm2, %v6830_v29 }
0x4246   :  { %8505 = vmatmul.mubr.msk.f32.gmra.mrb[92].mxu0 %vm362_vm2, %v6831_v10 }
0x4247   :  { %8507 = vmatprep.mubr.msk.f32.mxu0 %vm362_vm2, %v6832_v60 }
0x424a   :  { %8508 = vmatmul.mubr.msk.f32.gmra.mrb[94].mxu0 %vm362_vm2, %v6833_v18 }
0x424b   :  { %8510 = vmatprep.mubr.msk.f32.mxu0 %vm362_vm2, %v6834_v8 }
0x424e   :  { %8511 = vmatmul.mubr.msk.f32.gmra.mrb[96].mxu0 %vm362_vm2, %v6835_v15 }
0x424f   :  { %8513 = vmatprep.mubr.msk.f32.mxu0 %vm362_vm2, %v6836_v62 }
0x42bb   :  { %v6785_v51 = vpop.f32.mrb[86].mxu1 }
0x42bc   :  { %v8477_v56 = vpop.f32.mrb[87].mxu1 }
0x42f9   :  { %v6710_v25 = vpop.f32.mrb[78].mxu0 }
0x42fa   :  { %v6786_v12 = vadd.f32 %v6785_v51, %v6710_v25  ;;  %v8466_v13 = vpop.f32.mrb[79].mxu0 }
0x42fc   :  { %v10577_v0 = vadd.f32 %v9296_v3, %v6786_v12 }
0x42fe   :  { %9245 = vtanh.f32 %v10577_v0  ;;  %v6790_v51 = vmul.f32 0.5, %v10577_v0 }
0x4301   :  { %v8488_v20 = vpop.f32.mrb[80].mxu0 }
0x4302   :  { %v6981_v5 = vadd.f32 %v8488_v20, %v10583_v59  ;;  %v6975_v7 = vpop.f32.mrb[81].mxu0 }
0x4303   :  { %v6976_v63 = vadd.f32 %v10583_v59, %v6975_v7 }
0x4304   :  { %9247 = vtanh.f32 %v6981_v5 }
0x4305   :  { %9249 = vtanh.f32 %v6976_v63  ;;  %v8491_v1 = vpop.f32.mrb[82].mxu0 }
0x4306   :  { %v6991_v30 = vadd.f32 %v8491_v1, %v10583_v59  ;;  %v6985_v32 = vpop.f32.mrb[83].mxu0 }
0x4307   :  { %v6986_v14 = vadd.f32 %v10583_v59, %v6985_v32 }
0x4308   :  { %v9246_v36 = vpop.eup %9245  ;;  %9251 = vtanh.f32 %v6991_v30 }
0x4309   :  { %9253 = vtanh.f32 %v6986_v14  ;;  %v8494_v37 = vpop.f32.mrb[84].mxu0  ;;  %6797 = vrot.lane.b32.xlu0 %v9246_v36, %s9300_s26 }
0x430a   :  { %v7001_v42 = vadd.f32 %v8494_v37, %v10583_v59  ;;  %v6995_v21 = vpop.f32.mrb[85].mxu0 }
0x430b   :  { %v6996_v34 = vadd.f32 %v10583_v59, %v6995_v21 }
0x430c   :  { %9255 = vtanh.f32 %v7001_v42 }
0x430d   :  { %9257 = vtanh.f32 %v6996_v34  ;;  %v8497_v35 = vpop.f32.mrb[86].mxu0 }
0x430e   :  { %v9248_v40 = vpop.eup %9247  ;;  %v7011_v9 = vadd.f32 %v8497_v35, %v10583_v59  ;;  %v7005_v31 = vpop.f32.mrb[87].mxu0 }
0x430f   :  { %v9250_v26 = vpop.eup %9249  ;;  %7095 = vst [vmem:[%s10686_s9 + $0x8] sm:$0xff] %v9248_v40  ;;  %v7006_v43 = vadd.f32 %v10583_v59, %v7005_v31 }
0x4310   :  { %7094 = vst [vmem:[%s10686_s9] sm:$0xff] %v9250_v26  ;;  %9259 = vtanh.f32 %v7011_v9 }
0x4311   :  { %9261 = vtanh.f32 %v7006_v43  ;;  %v8500_v39 = vpop.f32.mrb[88].mxu0 }
0x4312   :  { %v9252_v27 = vpop.eup %9251  ;;  %v7021_v22 = vadd.f32 %v8500_v39, %v10583_v59  ;;  %v7015_v50 = vpop.f32.mrb[89].mxu0 }
0x4313   :  { %v9254_v2 = vpop.eup %9253  ;;  %7097 = vst [vmem:[%s10686_s9 + $0x18] sm:$0xff] %v9252_v27  ;;  %v7016_v6 = vadd.f32 %v10583_v59, %v7015_v50 }
0x4314   :  { %7096 = vst [vmem:[%s10686_s9 + $0x10] sm:$0xff] %v9254_v2  ;;  %9263 = vtanh.f32 %v7021_v22 }
0x4315   :  { %9265 = vtanh.f32 %v7016_v6  ;;  %v8503_v45 = vpop.f32.mrb[90].mxu0 }
0x4316   :  { %v9256_v47 = vpop.eup %9255  ;;  %v7031_v49 = vadd.f32 %v8503_v45, %v10583_v59  ;;  %v7025_v11 = vpop.f32.mrb[91].mxu0 }
0x4317   :  { %v9258_v38 = vpop.eup %9257  ;;  %7099 = vst [vmem:[%s10686_s9 + $0x28] sm:$0xff] %v9256_v47  ;;  %v7026_v33 = vadd.f32 %v10583_v59, %v7025_v11 }
0x4318   :  { %7098 = vst [vmem:[%s10686_s9 + $0x20] sm:$0xff] %v9258_v38  ;;  %9267 = vtanh.f32 %v7031_v49 }
0x4319   :  { %9269 = vtanh.f32 %v7026_v33  ;;  %v8506_v16 = vpop.f32.mrb[92].mxu0 }
0x431a   :  { %v9260_v41 = vpop.eup %9259  ;;  %v7041_v19 = vadd.f32 %v8506_v16, %v10583_v59  ;;  %v7035_v46 = vpop.f32.mrb[93].mxu0 }
0x431b   :  { %v9262_v28 = vpop.eup %9261  ;;  %7101 = vst [vmem:[%s10686_s9 + $0x38] sm:$0xff] %v9260_v41  ;;  %v7036_v48 = vadd.f32 %v10583_v59, %v7035_v46 }
0x431c   :  { %7100 = vst [vmem:[%s10686_s9 + $0x30] sm:$0xff] %v9262_v28  ;;  %9271 = vtanh.f32 %v7041_v19 }
0x431d   :  { %9273 = vtanh.f32 %v7036_v48  ;;  %v8509_v44 = vpop.f32.mrb[94].mxu0 }
0x431e   :  { %v9264_v52 = vpop.eup %9263  ;;  %v7051_v53 = vadd.f32 %v8509_v44, %v10583_v59  ;;  %v7045_v24 = vpop.f32.mrb[95].mxu0 }
0x431f   :  { %v9266_v54 = vpop.eup %9265  ;;  %7103 = vst [vmem:[%s10686_s9 + $0x48] sm:$0xff] %v9264_v52  ;;  %v7046_v4 = vadd.f32 %v10583_v59, %v7045_v24 }
0x4320   :  { %7102 = vst [vmem:[%s10686_s9 + $0x40] sm:$0xff] %v9266_v54  ;;  %9275 = vtanh.f32 %v7051_v53 }
0x4321   :  { %9277 = vtanh.f32 %v7046_v4  ;;  %v8512_v55 = vpop.f32.mrb[96].mxu0 }
0x4322   :  { %v9268_v57 = vpop.eup %9267  ;;  %v7061_v17 = vadd.f32 %v8512_v55, %v10583_v59  ;;  %v7055_v23 = vpop.f32.mrb[97].mxu0 }
0x4323   :  { %v9270_v58 = vpop.eup %9269  ;;  %7105 = vst [vmem:[%s10686_s9 + $0x58] sm:$0xff] %v9268_v57  ;;  %v7056_v29 = vadd.f32 %v10583_v59, %v7055_v23 }
0x4324   :  { %7104 = vst [vmem:[%s10686_s9 + $0x50] sm:$0xff] %v9270_v58  ;;  %9279 = vtanh.f32 %v7061_v17 }
0x4325   :  { %9281 = vtanh.f32 %v7056_v29 }
0x4326   :  { %v9272_v10 = vpop.eup %9271  ;;  %9283 = vtanh.f32 %v6790_v51 }
0x4327   :  { %v9274_v60 = vpop.eup %9273  ;;  %7107 = vst [vmem:[%s10686_s9 + $0x68] sm:$0xff] %v9272_v10 }
0x4328   :  { %7106 = vst [vmem:[%s10686_s9 + $0x60] sm:$0xff] %v9274_v60 }
0x432a   :  { %v9276_v18 = vpop.eup %9275 }
0x432b   :  { %v9278_v8 = vpop.eup %9277  ;;  %7109 = vst [vmem:[%s10686_s9 + $0x78] sm:$0xff] %v9276_v18 }
0x432c   :  { %7108 = vst [vmem:[%s10686_s9 + $0x70] sm:$0xff] %v9278_v8 }
0x432e   :  { %v9280_v15 = vpop.eup %9279 }
0x432f   :  { %v9282_v62 = vpop.eup %9281  ;;  %7111 = vst [vmem:[%s10686_s9 + $0x88] sm:$0xff] %v9280_v15 }
0x4330   :  { %7110 = vst [vmem:[%s10686_s9 + $0x80] sm:$0xff] %v9282_v62  ;;  %v9284_v56 = vpop.eup %9283 }
0x4331   :  { %v6792_v25 = vmul.f32 0.5, %v9284_v56 }
0x4333   :  { %v6793_v12 = vadd.f32 0.5, %v6792_v25 }
0x4335   :  { %v6795_v20 = vmul.f32 %v6793_v12, %v10534_v61 }
0x437b   :  { %v6798_v13 = vpop.permute.xlu0 %6797 }
0x437c   :  { %v6800_v3 = vmul.f32 %v6798_v13, %v6793_v12 }
0x437e   :  { %6802 = vrot.lane.b32.xlu1 %v6800_v3, %s9301_s27 }
0x43f0   :  { %v6803_v5 = vpop.permute.xlu1 %6802 }
0x43f1   :  { %v6805_v7 = vadd.f32 %v6803_v5, %v6795_v20 }
0x43f3   :  { %9285 = vtanh.f32 %v6805_v7 }
0x43fd   :  { %v9286_v63 = vpop.eup %9285 }
0x43fe   :  { %6808 = vrot.lane.b32.xlu0 %v9286_v63, %s9300_s26 }
0x4470   :  { %v6809_v1 = vpop.permute.xlu0 %6808 }
0x4471   :  { %v6811_v30 = vmul.f32 %v6809_v1, %v6793_v12 }
0x4473   :  { %6813 = vrot.lane.b32.xlu1 %v6811_v30, %s9301_s27 }
0x44e5   :  { %v6814_v0 = vpop.permute.xlu1 %6813 }
0x44e6   :  { %6816 = vst.msk [vmem:[#allocation3 + $0x98] sm:$0xff] %vm362_vm2, %v6814_v0  ;;  %6817 = vst.msk [vmem:[%s10687_s10] sm:$0xff] %vm362_vm2, %v6814_v0 }
0x44ed   :  { %v6837_v32 = vld [vmem:[#allocation3 + $0x98] sm:$0xff] }
0x44ee   :  { %8514 = vmatmul.mubr.msk.f32.gmra.mrb[98].mxu0 %vm362_vm2, %v6837_v32 }
0x45c1   :  { %v8515_v61 = vpop.f32.mrb[98].mxu0 }
0x45c2   :  { %v7071_v14 = vadd.f32 %v8515_v61, %v10583_v59  ;;  %v7065_v36 = vpop.f32.mrb[99].mxu0 }
0x45c3   :  { %v7066_v37 = vadd.f32 %v10583_v59, %v7065_v36 }
0x45c4   :  { %9287 = vtanh.f32 %v7071_v14 }
0x45c5   :  { %9289 = vtanh.f32 %v7066_v37 }
0x45ce   :  { %v9288_v42 = vpop.eup %9287 }
0x45cf   :  { %v9290_v21 = vpop.eup %9289  ;;  %7113 = vst [vmem:[%s10686_s9 + $0x98] sm:$0xff] %v9288_v42 }
0x45d0   :  { %7112 = vst [vmem:[%s10686_s9 + $0x90] sm:$0xff] %v9290_v21 }

</bundles_post_ra>
